<compile_context>
chip_gen: v6e
topology: v6e:2x2x1
jax: 0.10.0
libtpu: 0.0.40
codegen_flags: <defaults>
</compile_context>

<pallas_src>
import functools

import jax
import jax.numpy as jnp
from jax import lax
from jax.experimental import pallas as pl
from jax.experimental.pallas import tpu as pltpu

BLOCK_SIZE = 128   # max sequence length supported by the causal mask
EMBED_SIZE = 510   # C, matches the module constant
N_HEADS = 6        # `HEAD_SIZE` in the module is used as the number of heads
HEAD_DIM = EMBED_SIZE // N_HEADS   # 85, `h_size` in Block


def _mha_heads_kernel(x_ref, w_ref, o_ref, *, n_heads, head_pad):
    """x_ref: (Bb, Tp, Cp) bf16;  w_ref: (Cp, 3*n_heads*head_pad) bf16;
    o_ref: (Bb, Tp, n_heads*head_pad) f32 (final lane layout, head h at
    lane offset h*head_pad)."""
    Bb, Tp, Cp = x_ref.shape
    Hn = n_heads * head_pad

    # One big lane-dense QKV projection for the whole batch block (M = Bb*Tp
    # rows -> fills the MXU), then a single f32->bf16 conversion pass.
    x2 = x_ref[...].reshape(Bb * Tp, Cp)
    qkv = jnp.dot(x2, w_ref[...], preferred_element_type=jnp.float32)
    qkv = qkv.astype(jnp.bfloat16)                                  # (Bb*Tp, 3*Hn)

    # Causal mask built once and reused across heads (scale 1/sqrt(C) is folded
    # into Wq in the wrapper, so no per-score multiply here).
    row = lax.broadcasted_iota(jnp.int32, (Tp, Tp), 0)
    col = lax.broadcasted_iota(jnp.int32, (Tp, Tp), 1)
    causal = (col <= row)[None]                                     # (1, Tp, Tp)

    # Short head loop (n_heads = 6).  Every dot below is batched over the Bb
    # batch dim and every lane slice / store is 128-aligned (head_pad = 128),
    # so there is no relayout and no masked store.
    for h in range(n_heads):
        c0 = h * head_pad
        q = qkv[:, c0:c0 + head_pad].reshape(Bb, Tp, head_pad)
        k = qkv[:, Hn + c0:Hn + c0 + head_pad].reshape(Bb, Tp, head_pad)
        v = qkv[:, 2 * Hn + c0:2 * Hn + c0 + head_pad].reshape(Bb, Tp, head_pad)

        # scores = q @ k^T, contracting the head dim, batched over Bb.
        s = lax.dot_general(q, k, (((2,), (2,)), ((0,), (0,))),
                            preferred_element_type=jnp.float32)     # (Bb, Tp, Tp)
        s = jnp.where(causal, s, -jnp.inf)

        # numerically stable softmax (f32 on the VPU, reciprocal on the EUP).
        m = jnp.max(s, axis=-1, keepdims=True)
        e = jnp.exp(s - m)
        p = e * pl.reciprocal(jnp.sum(e, axis=-1, keepdims=True), approx=True)

        # attention dropout (p=0.2): identity (eval mode).
        o = lax.dot_general(p.astype(jnp.bfloat16), v,
                            (((2,), (1,)), ((0,), (0,))),
                            preferred_element_type=jnp.float32)     # (Bb, Tp, head_pad)

        # Store directly in the final lane layout (no wrapper transpose needed).
        o_ref[:, :, c0:c0 + head_pad] = o.astype(o_ref.dtype)


def _pack_weights(wq, wk, wv, c_pad, head_pad):
    """w*: (n_heads, C, Hd) f32  ->  fused bf16 weight (c_pad, 3*n_heads*head_pad).

    Zero-pads C -> c_pad and Hd -> head_pad, folds the 1/sqrt(C) attention scale
    into the query weight, and lays heads out contiguously along lanes."""
    nh, C, Hd = wq.shape
    scale = jnp.float32(C) ** jnp.float32(-0.5)

    def pad(w):
        w = jnp.pad(w, ((0, 0), (0, c_pad - C), (0, head_pad - Hd)))
        return jnp.transpose(w, (1, 0, 2)).reshape(c_pad, nh * head_pad)

    fused = jnp.concatenate([pad(wq * scale), pad(wk), pad(wv)], axis=1)
    return fused.astype(jnp.bfloat16)


def mha_heads_forward(x, wq, wk, wv, *, batch_block=None):
    """x: (B, T, C) f32; wq/wk/wv: (n_heads, C, Hd) f32 (transposed nn.Linear
    weights). Returns (B, T, n_heads*Hd) f32 = concat of all head outputs."""
    B, T, C = x.shape
    nh, C2, Hd = wq.shape
    assert C2 == C and wk.shape == wq.shape and wv.shape == wq.shape
    assert T <= BLOCK_SIZE, "sequence length exceeds causal mask buffer"

    c_pad = ((C + 127) // 128) * 128       # 510 -> 512
    head_pad = ((Hd + 127) // 128) * 128   # 85  -> 128
    t_pad = max(8, ((T + 7) // 8) * 8)     # keep sublane tiles dense
    Hn = nh * head_pad

    w_fused = _pack_weights(wq, wk, wv, c_pad, head_pad)           # (512, 2304) bf16
    x_pad = jnp.pad(x, ((0, 0), (0, t_pad - T), (0, c_pad - C))).astype(jnp.bfloat16)

    if batch_block is None:
        # >=256 projection rows per step fills the 256-wide MXU (v6e/v7x) and
        # amortizes per-grid-step overhead; keep >=2 grid steps when the batch
        # allows so both v7x TensorCores get work via the "parallel" axis.
        target_rows = 256
        batch_block = max(1, target_rows // t_pad)
        if B > 1:
            batch_block = min(batch_block, (B + 1) // 2)
    batch_block = max(1, min(batch_block, B))

    # Pad B up to a multiple of the batch block (zero rows are sliced off at
    # the end) instead of shrinking the block for awkward batch sizes.
    b_pad = pl.cdiv(B, batch_block) * batch_block
    if b_pad != B:
        x_pad = jnp.pad(x_pad, ((0, b_pad - B), (0, 0), (0, 0)))
    grid = (b_pad // batch_block,)

    kernel = functools.partial(_mha_heads_kernel, n_heads=nh, head_pad=head_pad)

    out_padded = pl.pallas_call(
        kernel,
        out_shape=jax.ShapeDtypeStruct((b_pad, t_pad, Hn), jnp.float32),
        grid_spec=pltpu.PrefetchScalarGridSpec(
            num_scalar_prefetch=0,
            grid=grid,
            in_specs=[
                pl.BlockSpec((batch_block, t_pad, c_pad), lambda i: (i, 0, 0)),
                # constant block index -> fused weight stays resident in VMEM
                pl.BlockSpec((c_pad, 3 * Hn), lambda i: (0, 0)),
            ],
            out_specs=pl.BlockSpec((batch_block, t_pad, Hn),
                                   lambda i: (i, 0, 0)),
        ),
        compiler_params=pltpu.CompilerParams(
            dimension_semantics=("parallel",),
        ),
    )(x_pad, w_fused)

    # Wrapper-side plumbing is now only dropping the zero padding (no transpose
    # pass): head h lives at lanes [h*head_pad, h*head_pad + Hd).
    out = out_padded[:B, :T].reshape(B, T, nh, head_pad)[..., :Hd]
    return out.reshape(B, T, nh * Hd).astype(x.dtype)


def _reference(x, wq, wk, wv):
    """Pure-JAX f32 reference of the fused heads (matches the PyTorch math)."""
    B, T, C = x.shape
    nh = wq.shape[0]
    mask = jnp.tril(jnp.ones((T, T), dtype=bool))
    outs = []
    for h in range(nh):
        q = x @ wq[h]
        k = x @ wk[h]
        v = x @ wv[h]
        s = (q @ jnp.swapaxes(k, 1, 2)) * (C ** -0.5)
        s = jnp.where(mask[None, :, :], s, -jnp.inf)
        p = jax.nn.softmax(s, axis=-1)
        outs.append(p @ v)
    return jnp.concatenate(outs, axis=-1)


if __name__ == "__main__":
    key = jax.random.PRNGKey(0)
    B, T = 2, 8
    C, nh, Hd = EMBED_SIZE, N_HEADS, HEAD_DIM   # 510, 6, 85

    kx, kq, kk, kv = jax.random.split(key, 4)
    bound = 1.0 / (C ** 0.5)                    # PyTorch default nn.Linear init range
    x = jax.random.normal(kx, (B, T, C), dtype=jnp.float32)
    wq = jax.random.uniform(kq, (nh, C, Hd), minval=-bound, maxval=bound, dtype=jnp.float32)
    wk = jax.random.uniform(kk, (nh, C, Hd), minval=-bound, maxval=bound, dtype=jnp.float32)
    wv = jax.random.uniform(kv, (nh, C, Hd), minval=-bound, maxval=bound, dtype=jnp.float32)

    out = mha_heads_forward(x, wq, wk, wv)
    jax.block_until_ready(out)

    ref = _reference(x, wq, wk, wv)
    assert out.shape == (B, T, nh * Hd)
    # bf16 MXU inputs (f32 accumulation) -> relaxed but meaningful tolerance
    assert jnp.allclose(out, ref, atol=2e-2, rtol=2e-2), "mismatch vs reference"

    print("KERNEL_OK")
</pallas_src>

<mosaic_0001>
module attributes {stable_mosaic.version = 11 : i64} {
  func.func @_mha_heads_kernel(%arg0: i32, %arg1: memref<1x8x512xbf16, #tpu.memory_space<vmem>>, %arg2: memref<512x2304xbf16, #tpu.memory_space<vmem>>, %arg3: memref<1x8x768xf32, #tpu.memory_space<vmem>>) attributes {dimension_semantics = [#tpu.dimension_semantics<parallel>], iteration_bounds = array<i64: 2>, scalar_prefetch = 0 : i64, scratch_operands = 0 : i64, tpu.core_type = #tpu.core_type<tc>, window_params = [{transform_indices = @transform_0, window_bounds = array<i64: 1, 8, 512>}, {pipeline_mode = #tpu.pipeline_mode<synchronous>, transform_indices = @transform_1, window_bounds = array<i64: 512, 2304>}, {transform_indices = @transform_2, window_bounds = array<i64: 1, 8, 768>}]} {
    %c0 = arith.constant 0 : index
    %c0_0 = arith.constant 0 : index
    %c0_1 = arith.constant 0 : index
    %0 = vector.load %arg1[%c0, %c0_0, %c0_1] : memref<1x8x512xbf16, #tpu.memory_space<vmem>>, vector<1x8x512xbf16>
    %1 = vector.shape_cast %0 : vector<1x8x512xbf16> to vector<8x512xbf16>
    %c0_2 = arith.constant 0 : index
    %c0_3 = arith.constant 0 : index
    %2 = vector.load %arg2[%c0_2, %c0_3] : memref<512x2304xbf16, #tpu.memory_space<vmem>>, vector<512x2304xbf16>
    %cst = arith.constant dense<0.000000e+00> : vector<8x2304xf32>
    %3 = tpu.matmul %1, %2, %cst {dimension_numbers = #tpu.dot_dimension_numbers<[1], [0], [0], [1], [0, 0, 1, 1], [], []>} : vector<8x512xbf16>, vector<512x2304xbf16>, vector<8x2304xf32> -> vector<8x2304xf32>
    %4 = arith.truncf %3 : vector<8x2304xf32> to vector<8x2304xbf16>
    %5 = tpu.iota {dimensions = array<i32: 0>} : vector<8x8xi32>
    %6 = tpu.iota {dimensions = array<i32: 1>} : vector<8x8xi32>
    %7 = arith.cmpi sle, %6, %5 : vector<8x8xi32>
    %8 = vector.shape_cast %7 : vector<8x8xi1> to vector<1x8x8xi1>
    %9 = vector.extract_strided_slice %4 {offsets = [0, 0], sizes = [8, 128], strides = [1, 1]} : vector<8x2304xbf16> to vector<8x128xbf16>
    %10 = vector.shape_cast %9 : vector<8x128xbf16> to vector<1x8x128xbf16>
    %11 = vector.extract_strided_slice %4 {offsets = [0, 768], sizes = [8, 128], strides = [1, 1]} : vector<8x2304xbf16> to vector<8x128xbf16>
    %12 = vector.shape_cast %11 : vector<8x128xbf16> to vector<1x8x128xbf16>
    %13 = vector.extract_strided_slice %4 {offsets = [0, 1536], sizes = [8, 128], strides = [1, 1]} : vector<8x2304xbf16> to vector<8x128xbf16>
    %14 = vector.shape_cast %13 : vector<8x128xbf16> to vector<1x8x128xbf16>
    %cst_4 = arith.constant dense<0.000000e+00> : vector<1x8x8xf32>
    %15 = tpu.matmul %10, %12, %cst_4 {dimension_numbers = #tpu.dot_dimension_numbers<[2], [2], [1], [1], [0, 0, 0, 1, 1, 1], [0], [0]>} : vector<1x8x128xbf16>, vector<1x8x128xbf16>, vector<1x8x8xf32> -> vector<1x8x8xf32>
    %cst_5 = arith.constant 0xFF800000 : f32
    %16 = vector.broadcast %cst_5 : f32 to vector<1x8x8xf32>
    %17 = arith.select %8, %15, %16 : vector<1x8x8xi1>, vector<1x8x8xf32>
    %cst_6 = arith.constant dense<0xFF800000> : vector<1x8xf32>
    %18 = vector.multi_reduction <maximumf>, %17, %cst_6 [2] : vector<1x8x8xf32> to vector<1x8xf32>
    %19 = vector.shape_cast %18 : vector<1x8xf32> to vector<1x8x1xf32>
    %20 = vector.broadcast %19 : vector<1x8x1xf32> to vector<1x8x8xf32>
    %21 = arith.subf %17, %20 : vector<1x8x8xf32>
    %22 = math.exp %21 : vector<1x8x8xf32>
    %cst_7 = arith.constant dense<0.000000e+00> : vector<1x8xf32>
    %23 = vector.multi_reduction <add>, %22, %cst_7 [2] : vector<1x8x8xf32> to vector<1x8xf32>
    %24 = vector.shape_cast %23 : vector<1x8xf32> to vector<1x8x1xf32>
    %25 = tpu.reciprocal %24 {approx = true} : vector<1x8x1xf32> -> vector<1x8x1xf32>
    %26 = vector.broadcast %25 : vector<1x8x1xf32> to vector<1x8x8xf32>
    %27 = arith.mulf %22, %26 : vector<1x8x8xf32>
    %28 = arith.truncf %27 : vector<1x8x8xf32> to vector<1x8x8xbf16>
    %cst_8 = arith.constant dense<0.000000e+00> : vector<1x8x128xf32>
    %29 = tpu.matmul %28, %14, %cst_8 {dimension_numbers = #tpu.dot_dimension_numbers<[2], [1], [1], [2], [0, 0, 0, 1, 1, 2], [0], [0]>} : vector<1x8x8xbf16>, vector<1x8x128xbf16>, vector<1x8x128xf32> -> vector<1x8x128xf32>
    %c0_9 = arith.constant 0 : index
    %c0_10 = arith.constant 0 : index
    %c0_11 = arith.constant 0 : index
    %30 = vector.load %arg3[%c0_9, %c0_10, %c0_11] : memref<1x8x768xf32, #tpu.memory_space<vmem>>, vector<1x8x128xf32>
    tpu.vector_store %arg3[%c0_9, %c0_10, %c0_11], %29 {strides = array<i32>} : memref<1x8x768xf32, #tpu.memory_space<vmem>>, vector<1x8x128xf32>,
    %31 = vector.extract_strided_slice %4 {offsets = [0, 128], sizes = [8, 128], strides = [1, 1]} : vector<8x2304xbf16> to vector<8x128xbf16>
    %32 = vector.shape_cast %31 : vector<8x128xbf16> to vector<1x8x128xbf16>
    %33 = vector.extract_strided_slice %4 {offsets = [0, 896], sizes = [8, 128], strides = [1, 1]} : vector<8x2304xbf16> to vector<8x128xbf16>
    %34 = vector.shape_cast %33 : vector<8x128xbf16> to vector<1x8x128xbf16>
    %35 = vector.extract_strided_slice %4 {offsets = [0, 1664], sizes = [8, 128], strides = [1, 1]} : vector<8x2304xbf16> to vector<8x128xbf16>
    %36 = vector.shape_cast %35 : vector<8x128xbf16> to vector<1x8x128xbf16>
    %cst_12 = arith.constant dense<0.000000e+00> : vector<1x8x8xf32>
    %37 = tpu.matmul %32, %34, %cst_12 {dimension_numbers = #tpu.dot_dimension_numbers<[2], [2], [1], [1], [0, 0, 0, 1, 1, 1], [0], [0]>} : vector<1x8x128xbf16>, vector<1x8x128xbf16>, vector<1x8x8xf32> -> vector<1x8x8xf32>
    %cst_13 = arith.constant 0xFF800000 : f32
    %38 = vector.broadcast %cst_13 : f32 to vector<1x8x8xf32>
    %39 = arith.select %8, %37, %38 : vector<1x8x8xi1>, vector<1x8x8xf32>
    %cst_14 = arith.constant dense<0xFF800000> : vector<1x8xf32>
    %40 = vector.multi_reduction <maximumf>, %39, %cst_14 [2] : vector<1x8x8xf32> to vector<1x8xf32>
    %41 = vector.shape_cast %40 : vector<1x8xf32> to vector<1x8x1xf32>
    %42 = vector.broadcast %41 : vector<1x8x1xf32> to vector<1x8x8xf32>
    %43 = arith.subf %39, %42 : vector<1x8x8xf32>
    %44 = math.exp %43 : vector<1x8x8xf32>
    %cst_15 = arith.constant dense<0.000000e+00> : vector<1x8xf32>
    %45 = vector.multi_reduction <add>, %44, %cst_15 [2] : vector<1x8x8xf32> to vector<1x8xf32>
    %46 = vector.shape_cast %45 : vector<1x8xf32> to vector<1x8x1xf32>
    %47 = tpu.reciprocal %46 {approx = true} : vector<1x8x1xf32> -> vector<1x8x1xf32>
    %48 = vector.broadcast %47 : vector<1x8x1xf32> to vector<1x8x8xf32>
    %49 = arith.mulf %44, %48 : vector<1x8x8xf32>
    %50 = arith.truncf %49 : vector<1x8x8xf32> to vector<1x8x8xbf16>
    %cst_16 = arith.constant dense<0.000000e+00> : vector<1x8x128xf32>
    %51 = tpu.matmul %50, %36, %cst_16 {dimension_numbers = #tpu.dot_dimension_numbers<[2], [1], [1], [2], [0, 0, 0, 1, 1, 2], [0], [0]>} : vector<1x8x8xbf16>, vector<1x8x128xbf16>, vector<1x8x128xf32> -> vector<1x8x128xf32>
    %c0_17 = arith.constant 0 : index
    %c0_18 = arith.constant 0 : index
    %c128 = arith.constant 128 : index
    %52 = vector.load %arg3[%c0_17, %c0_18, %c128] : memref<1x8x768xf32, #tpu.memory_space<vmem>>, vector<1x8x128xf32>
    tpu.vector_store %arg3[%c0_17, %c0_18, %c128], %51 {strides = array<i32>} : memref<1x8x768xf32, #tpu.memory_space<vmem>>, vector<1x8x128xf32>,
    %53 = vector.extract_strided_slice %4 {offsets = [0, 256], sizes = [8, 128], strides = [1, 1]} : vector<8x2304xbf16> to vector<8x128xbf16>
    %54 = vector.shape_cast %53 : vector<8x128xbf16> to vector<1x8x128xbf16>
    %55 = vector.extract_strided_slice %4 {offsets = [0, 1024], sizes = [8, 128], strides = [1, 1]} : vector<8x2304xbf16> to vector<8x128xbf16>
    %56 = vector.shape_cast %55 : vector<8x128xbf16> to vector<1x8x128xbf16>
    %57 = vector.extract_strided_slice %4 {offsets = [0, 1792], sizes = [8, 128], strides = [1, 1]} : vector<8x2304xbf16> to vector<8x128xbf16>
    %58 = vector.shape_cast %57 : vector<8x128xbf16> to vector<1x8x128xbf16>
    %cst_19 = arith.constant dense<0.000000e+00> : vector<1x8x8xf32>
    %59 = tpu.matmul %54, %56, %cst_19 {dimension_numbers = #tpu.dot_dimension_numbers<[2], [2], [1], [1], [0, 0, 0, 1, 1, 1], [0], [0]>} : vector<1x8x128xbf16>, vector<1x8x128xbf16>, vector<1x8x8xf32> -> vector<1x8x8xf32>
    %cst_20 = arith.constant 0xFF800000 : f32
    %60 = vector.broadcast %cst_20 : f32 to vector<1x8x8xf32>
    %61 = arith.select %8, %59, %60 : vector<1x8x8xi1>, vector<1x8x8xf32>
    %cst_21 = arith.constant dense<0xFF800000> : vector<1x8xf32>
    %62 = vector.multi_reduction <maximumf>, %61, %cst_21 [2] : vector<1x8x8xf32> to vector<1x8xf32>
    %63 = vector.shape_cast %62 : vector<1x8xf32> to vector<1x8x1xf32>
    %64 = vector.broadcast %63 : vector<1x8x1xf32> to vector<1x8x8xf32>
    %65 = arith.subf %61, %64 : vector<1x8x8xf32>
    %66 = math.exp %65 : vector<1x8x8xf32>
    %cst_22 = arith.constant dense<0.000000e+00> : vector<1x8xf32>
    %67 = vector.multi_reduction <add>, %66, %cst_22 [2] : vector<1x8x8xf32> to vector<1x8xf32>
    %68 = vector.shape_cast %67 : vector<1x8xf32> to vector<1x8x1xf32>
    %69 = tpu.reciprocal %68 {approx = true} : vector<1x8x1xf32> -> vector<1x8x1xf32>
    %70 = vector.broadcast %69 : vector<1x8x1xf32> to vector<1x8x8xf32>
    %71 = arith.mulf %66, %70 : vector<1x8x8xf32>
    %72 = arith.truncf %71 : vector<1x8x8xf32> to vector<1x8x8xbf16>
    %cst_23 = arith.constant dense<0.000000e+00> : vector<1x8x128xf32>
    %73 = tpu.matmul %72, %58, %cst_23 {dimension_numbers = #tpu.dot_dimension_numbers<[2], [1], [1], [2], [0, 0, 0, 1, 1, 2], [0], [0]>} : vector<1x8x8xbf16>, vector<1x8x128xbf16>, vector<1x8x128xf32> -> vector<1x8x128xf32>
    %c0_24 = arith.constant 0 : index
    %c0_25 = arith.constant 0 : index
    %c256 = arith.constant 256 : index
    %74 = vector.load %arg3[%c0_24, %c0_25, %c256] : memref<1x8x768xf32, #tpu.memory_space<vmem>>, vector<1x8x128xf32>
    tpu.vector_store %arg3[%c0_24, %c0_25, %c256], %73 {strides = array<i32>} : memref<1x8x768xf32, #tpu.memory_space<vmem>>, vector<1x8x128xf32>,
    %75 = vector.extract_strided_slice %4 {offsets = [0, 384], sizes = [8, 128], strides = [1, 1]} : vector<8x2304xbf16> to vector<8x128xbf16>
    %76 = vector.shape_cast %75 : vector<8x128xbf16> to vector<1x8x128xbf16>
    %77 = vector.extract_strided_slice %4 {offsets = [0, 1152], sizes = [8, 128], strides = [1, 1]} : vector<8x2304xbf16> to vector<8x128xbf16>
    %78 = vector.shape_cast %77 : vector<8x128xbf16> to vector<1x8x128xbf16>
    %79 = vector.extract_strided_slice %4 {offsets = [0, 1920], sizes = [8, 128], strides = [1, 1]} : vector<8x2304xbf16> to vector<8x128xbf16>
    %80 = vector.shape_cast %79 : vector<8x128xbf16> to vector<1x8x128xbf16>
    %cst_26 = arith.constant dense<0.000000e+00> : vector<1x8x8xf32>
    %81 = tpu.matmul %76, %78, %cst_26 {dimension_numbers = #tpu.dot_dimension_numbers<[2], [2], [1], [1], [0, 0, 0, 1, 1, 1], [0], [0]>} : vector<1x8x128xbf16>, vector<1x8x128xbf16>, vector<1x8x8xf32> -> vector<1x8x8xf32>
    %cst_27 = arith.constant 0xFF800000 : f32
    %82 = vector.broadcast %cst_27 : f32 to vector<1x8x8xf32>
    %83 = arith.select %8, %81, %82 : vector<1x8x8xi1>, vector<1x8x8xf32>
    %cst_28 = arith.constant dense<0xFF800000> : vector<1x8xf32>
    %84 = vector.multi_reduction <maximumf>, %83, %cst_28 [2] : vector<1x8x8xf32> to vector<1x8xf32>
    %85 = vector.shape_cast %84 : vector<1x8xf32> to vector<1x8x1xf32>
    %86 = vector.broadcast %85 : vector<1x8x1xf32> to vector<1x8x8xf32>
    %87 = arith.subf %83, %86 : vector<1x8x8xf32>
    %88 = math.exp %87 : vector<1x8x8xf32>
    %cst_29 = arith.constant dense<0.000000e+00> : vector<1x8xf32>
    %89 = vector.multi_reduction <add>, %88, %cst_29 [2] : vector<1x8x8xf32> to vector<1x8xf32>
    %90 = vector.shape_cast %89 : vector<1x8xf32> to vector<1x8x1xf32>
    %91 = tpu.reciprocal %90 {approx = true} : vector<1x8x1xf32> -> vector<1x8x1xf32>
    %92 = vector.broadcast %91 : vector<1x8x1xf32> to vector<1x8x8xf32>
    %93 = arith.mulf %88, %92 : vector<1x8x8xf32>
    %94 = arith.truncf %93 : vector<1x8x8xf32> to vector<1x8x8xbf16>
    %cst_30 = arith.constant dense<0.000000e+00> : vector<1x8x128xf32>
    %95 = tpu.matmul %94, %80, %cst_30 {dimension_numbers = #tpu.dot_dimension_numbers<[2], [1], [1], [2], [0, 0, 0, 1, 1, 2], [0], [0]>} : vector<1x8x8xbf16>, vector<1x8x128xbf16>, vector<1x8x128xf32> -> vector<1x8x128xf32>
    %c0_31 = arith.constant 0 : index
    %c0_32 = arith.constant 0 : index
    %c384 = arith.constant 384 : index
    %96 = vector.load %arg3[%c0_31, %c0_32, %c384] : memref<1x8x768xf32, #tpu.memory_space<vmem>>, vector<1x8x128xf32>
    tpu.vector_store %arg3[%c0_31, %c0_32, %c384], %95 {strides = array<i32>} : memref<1x8x768xf32, #tpu.memory_space<vmem>>, vector<1x8x128xf32>,
    %97 = vector.extract_strided_slice %4 {offsets = [0, 512], sizes = [8, 128], strides = [1, 1]} : vector<8x2304xbf16> to vector<8x128xbf16>
    %98 = vector.shape_cast %97 : vector<8x128xbf16> to vector<1x8x128xbf16>
    %99 = vector.extract_strided_slice %4 {offsets = [0, 1280], sizes = [8, 128], strides = [1, 1]} : vector<8x2304xbf16> to vector<8x128xbf16>
    %100 = vector.shape_cast %99 : vector<8x128xbf16> to vector<1x8x128xbf16>
    %101 = vector.extract_strided_slice %4 {offsets = [0, 2048], sizes = [8, 128], strides = [1, 1]} : vector<8x2304xbf16> to vector<8x128xbf16>
    %102 = vector.shape_cast %101 : vector<8x128xbf16> to vector<1x8x128xbf16>
    %cst_33 = arith.constant dense<0.000000e+00> : vector<1x8x8xf32>
    %103 = tpu.matmul %98, %100, %cst_33 {dimension_numbers = #tpu.dot_dimension_numbers<[2], [2], [1], [1], [0, 0, 0, 1, 1, 1], [0], [0]>} : vector<1x8x128xbf16>, vector<1x8x128xbf16>, vector<1x8x8xf32> -> vector<1x8x8xf32>
    %cst_34 = arith.constant 0xFF800000 : f32
    %104 = vector.broadcast %cst_34 : f32 to vector<1x8x8xf32>
    %105 = arith.select %8, %103, %104 : vector<1x8x8xi1>, vector<1x8x8xf32>
    %cst_35 = arith.constant dense<0xFF800000> : vector<1x8xf32>
    %106 = vector.multi_reduction <maximumf>, %105, %cst_35 [2] : vector<1x8x8xf32> to vector<1x8xf32>
    %107 = vector.shape_cast %106 : vector<1x8xf32> to vector<1x8x1xf32>
    %108 = vector.broadcast %107 : vector<1x8x1xf32> to vector<1x8x8xf32>
    %109 = arith.subf %105, %108 : vector<1x8x8xf32>
    %110 = math.exp %109 : vector<1x8x8xf32>
    %cst_36 = arith.constant dense<0.000000e+00> : vector<1x8xf32>
    %111 = vector.multi_reduction <add>, %110, %cst_36 [2] : vector<1x8x8xf32> to vector<1x8xf32>
    %112 = vector.shape_cast %111 : vector<1x8xf32> to vector<1x8x1xf32>
    %113 = tpu.reciprocal %112 {approx = true} : vector<1x8x1xf32> -> vector<1x8x1xf32>
    %114 = vector.broadcast %113 : vector<1x8x1xf32> to vector<1x8x8xf32>
    %115 = arith.mulf %110, %114 : vector<1x8x8xf32>
    %116 = arith.truncf %115 : vector<1x8x8xf32> to vector<1x8x8xbf16>
    %cst_37 = arith.constant dense<0.000000e+00> : vector<1x8x128xf32>
    %117 = tpu.matmul %116, %102, %cst_37 {dimension_numbers = #tpu.dot_dimension_numbers<[2], [1], [1], [2], [0, 0, 0, 1, 1, 2], [0], [0]>} : vector<1x8x8xbf16>, vector<1x8x128xbf16>, vector<1x8x128xf32> -> vector<1x8x128xf32>
    %c0_38 = arith.constant 0 : index
    %c0_39 = arith.constant 0 : index
    %c512 = arith.constant 512 : index
    %118 = vector.load %arg3[%c0_38, %c0_39, %c512] : memref<1x8x768xf32, #tpu.memory_space<vmem>>, vector<1x8x128xf32>
    tpu.vector_store %arg3[%c0_38, %c0_39, %c512], %117 {strides = array<i32>} : memref<1x8x768xf32, #tpu.memory_space<vmem>>, vector<1x8x128xf32>,
    %119 = vector.extract_strided_slice %4 {offsets = [0, 640], sizes = [8, 128], strides = [1, 1]} : vector<8x2304xbf16> to vector<8x128xbf16>
    %120 = vector.shape_cast %119 : vector<8x128xbf16> to vector<1x8x128xbf16>
    %121 = vector.extract_strided_slice %4 {offsets = [0, 1408], sizes = [8, 128], strides = [1, 1]} : vector<8x2304xbf16> to vector<8x128xbf16>
    %122 = vector.shape_cast %121 : vector<8x128xbf16> to vector<1x8x128xbf16>
    %123 = vector.extract_strided_slice %4 {offsets = [0, 2176], sizes = [8, 128], strides = [1, 1]} : vector<8x2304xbf16> to vector<8x128xbf16>
    %124 = vector.shape_cast %123 : vector<8x128xbf16> to vector<1x8x128xbf16>
    %cst_40 = arith.constant dense<0.000000e+00> : vector<1x8x8xf32>
    %125 = tpu.matmul %120, %122, %cst_40 {dimension_numbers = #tpu.dot_dimension_numbers<[2], [2], [1], [1], [0, 0, 0, 1, 1, 1], [0], [0]>} : vector<1x8x128xbf16>, vector<1x8x128xbf16>, vector<1x8x8xf32> -> vector<1x8x8xf32>
    %cst_41 = arith.constant 0xFF800000 : f32
    %126 = vector.broadcast %cst_41 : f32 to vector<1x8x8xf32>
    %127 = arith.select %8, %125, %126 : vector<1x8x8xi1>, vector<1x8x8xf32>
    %cst_42 = arith.constant dense<0xFF800000> : vector<1x8xf32>
    %128 = vector.multi_reduction <maximumf>, %127, %cst_42 [2] : vector<1x8x8xf32> to vector<1x8xf32>
    %129 = vector.shape_cast %128 : vector<1x8xf32> to vector<1x8x1xf32>
    %130 = vector.broadcast %129 : vector<1x8x1xf32> to vector<1x8x8xf32>
    %131 = arith.subf %127, %130 : vector<1x8x8xf32>
    %132 = math.exp %131 : vector<1x8x8xf32>
    %cst_43 = arith.constant dense<0.000000e+00> : vector<1x8xf32>
    %133 = vector.multi_reduction <add>, %132, %cst_43 [2] : vector<1x8x8xf32> to vector<1x8xf32>
    %134 = vector.shape_cast %133 : vector<1x8xf32> to vector<1x8x1xf32>
    %135 = tpu.reciprocal %134 {approx = true} : vector<1x8x1xf32> -> vector<1x8x1xf32>
    %136 = vector.broadcast %135 : vector<1x8x1xf32> to vector<1x8x8xf32>
    %137 = arith.mulf %132, %136 : vector<1x8x8xf32>
    %138 = arith.truncf %137 : vector<1x8x8xf32> to vector<1x8x8xbf16>
    %cst_44 = arith.constant dense<0.000000e+00> : vector<1x8x128xf32>
    %139 = tpu.matmul %138, %124, %cst_44 {dimension_numbers = #tpu.dot_dimension_numbers<[2], [1], [1], [2], [0, 0, 0, 1, 1, 2], [0], [0]>} : vector<1x8x8xbf16>, vector<1x8x128xbf16>, vector<1x8x128xf32> -> vector<1x8x128xf32>
    %c0_45 = arith.constant 0 : index
    %c0_46 = arith.constant 0 : index
    %c640 = arith.constant 640 : index
    %140 = vector.load %arg3[%c0_45, %c0_46, %c640] : memref<1x8x768xf32, #tpu.memory_space<vmem>>, vector<1x8x128xf32>
    tpu.vector_store %arg3[%c0_45, %c0_46, %c640], %139 {strides = array<i32>} : memref<1x8x768xf32, #tpu.memory_space<vmem>>, vector<1x8x128xf32>,
    return
  }
  func.func @transform_0(%arg0: i32) -> (i32, i32, i32) {
    %c0_i32 = arith.constant 0 : i32
    %c0_i32_0 = arith.constant 0 : i32
    %c0_i32_1 = arith.constant 0 : i32
    return %arg0, %c0_i32, %c0_i32_0 : i32, i32, i32
  }
  func.func @transform_1(%arg0: i32) -> (i32, i32) {
    %c0_i32 = arith.constant 0 : i32
    %c0_i32_0 = arith.constant 0 : i32
    %c0_i32_1 = arith.constant 0 : i32
    return %c0_i32, %c0_i32_0 : i32, i32
  }
  func.func @transform_2(%arg0: i32) -> (i32, i32, i32) {
    %c0_i32 = arith.constant 0 : i32
    %c0_i32_0 = arith.constant 0 : i32
    %c0_i32_1 = arith.constant 0 : i32
    return %arg0, %c0_i32, %c0_i32_0 : i32, i32, i32
  }
}

</mosaic_0001>

<bundles_post_ra>
// kernel: tpu_custom_call.1
= control target key start
LH: loop header
LB: loop body
LE: loop exit
PB: predicated region body
PF: predicated region fallthrough
CT: control target
= control target key end

     0   :  { %7 = vsyncpa [#allocation3], 0  ;;  %s7254_s0 = inlined_call_operand.hbm [shape: bf16[2,8,512], index: 0, kind: input, shape index: {}]   ;;  %s7255_s1 = inlined_call_operand.hbm [shape: bf16[512,2304], index: 1, kind: input, shape index: {}]   ;;  %s7256_s2 = inlined_call_operand.hbm [shape: f32[2,8,768], index: 2, kind: output, shape index: {}]  }
   0x1   :  { %9 = vsyncpa [#allocation3 + $0x1], 0 }
   0x2   :  { %10 = vsyncpa [#allocation6], 0 }
   0x3   :  { %11 = vsyncpa [#allocation4], 0 }
   0x4   :  { %13 = vsyncpa [#allocation4 + $0x1], 0  ;;  %s6903_s9 = smov 0   ;;  %s6905_s10 = smov 0  }
   0x5   :  { %s6907_s11 = smov 0   ;;  %s6909_s12 = smov 0  }
   0x6 LB: > { %s6924_s13 = sadd.s32 4294967295, %s6879_s12   ;;  %s5106_s14 = sadd.s32 4294967294, %s6879_s12   ;;  %s6879_s12 = sphi %s6909_s12, %s7280_s12   ;;  %s6875_s11 = sphi %s6907_s11, %s7279_s11   ;;  %s6871_s10 = sphi %s6905_s10, %s7278_s10   ;;  %s6867_s9 = sphi %s6903_s9, %s7277_s9  }
   0x7   : > { %p39_p0 = scmp.ne.s32.totalorder %s6871_s10, %s6867_s9  ;;  %p7257_p1 = scmp.eq.s32.totalorder %s6924_s13, 0 }
   0x8   : > { %p90_p3 = scmp.eq.s32.totalorder %s5106_s14, 1  ;;  %p5107_p5 = scmp.ge.s32.totalorder %s6879_s12, 1 }
   0x9   : > { %p6933_p4 = por %p7257_p1, %p39_p0  ;;  %p97_p7 = scmp.lt.s32.totalorder %s6879_s12, 3 }
   0xa   : > { %p6938_p6 = por %p90_p3, %p39_p0  ;;  %s6881_s18 = smov [#allocation5]  }
   0xb   : > { %s7261_s15 = scalar_select %p6933_p4, 1, 0 }
   0xc   : > { %s7262_s16 = scalar_select %p6938_p6, 1, 0 }
   0xd   : > { %p6943_p8 = pnand %p5107_p5, %p97_p7  ;;  %s109_s19 = sshll.u32 %s6881_s18, 4  ;;  %s110_s19 = int_to_ptr.vmem [resolvable:$true] %s109_s19 }
   0xe   : > { %s6957_s21 = sadd.s32 1, %s6879_s12   ;;  %s26_s22 = sadd.s32 1, %s6875_s11 }
   0xf   : > { %s7263_s17 = scalar_select %p6943_p8, 1, 0 }
  0x10   : > { %p5812_p9 = pneg %p6943_p8  ;;  %s23_s23 = ssub.s32 %s6879_s12, %s6957_s21 }
  0x11   : > { %s6768_s24 = scalar_lea.vmem %s110_s19, 73728  ;;  %p6776_p5 = scmp.lt.s32.totalorder %s110_s19, %s110_s19 }
  0x12   : > { %p6952_p11 = pnand %p5812_p9, %p7257_p1  ;;  %p6769_p13 = scmp.ne.s32.totalorder %s110_s19, %s6768_s24 }
  0x13   : > { %p6777_p7 = scmp.lt.s32.totalorder %s6768_s24, %s6768_s24 }
  0x14   : > { %p6759_p12 = pneg %p6952_p11 }
  0x15   : > { %p6778_p10 = por %p6777_p7, %p6776_p5 }
  0x16   : > { %p6771_p0 = pnand %p6769_p13, %p6759_p12 }
  0x18   : > { %p6772_p3 = pneg %p6771_p0 }
  0x1a   : > { %p6779_p2 = pnand %p6778_p10, %p6772_p3 }
  0x1c   : > { %6782 = shalt.err (!%p6779_p2)
}
  0x1d   : > { %s6882_s25 = smov 1152   ;;  %s6883_s26 = smov 72  }
  0x1e   : > { %5815 = dma.hbm_to_vmem [thread:$0]  (!%p6952_p11), %s7255_s1, 73728, %s110_s19, [#allocation6], %s6882_s25, %s6882_s25, %s6883_s26  }
  0x1f   : > { %p24_p9 = scmp.eq.s32.totalorder %s23_s23, 0  ;;  %p33_p12 = scmp.ne.s32.totalorder %s6875_s11, %s6871_s10 }
  0x20   : > { %p34_p10 = scmp.eq.s32.totalorder %s6879_s12, 0  ;;  %p5825_p2 = scmp.lt.s32.totalorder %s6879_s12, 2 }
  0x21   : > { %s6974_s29 = scalar_select %p24_p9, %s6875_s11, %s26_s22  }
  0x22   : > { %p35_p13 = por %p34_p10, %p33_p12  ;;  %p7265_p0 = scmp.eq.s32.totalorder %s6924_s13, 1 }
  0x23   : > { %s123_s3 = sand.u32 1, %s6875_s11   ;;  %s5705_s4 = sshll.u32 %s6879_s12, 8 }
  0x24   : > { %p6978_p3 = por %p7265_p0, %p33_p12  ;;  %s5110_s5 = sshll.u32 %s123_s3, 4 }
  0x25   : > { %s6987_s8 = scalar_lea.hbm %s7254_s0, %s5705_s4  ;;  %s127_s14 = scalar_lea.vmem [#allocation2], %s5110_s5 }
  0x26   : > { %s7266_s30 = scalar_select %p6978_p3, 1, 0 }
  0x27   : > { %s135_s18 = sshll.u32 %s127_s14, 4  ;;  %p6989_p11 = pnand %p5825_p2, %p35_p13  ;;  %s136_s18 = int_to_ptr.vmem [resolvable:$true] %s135_s18 }
  0x28   : > { %s124_s20 = scalar_lea.sflag [#allocation3], %s123_s3  ;;  %s6783_s22 = scalar_lea.hbm %s6987_s8, 256 }
  0x29   : > { %p6784_p5 = scmp.ne.s32.totalorder %s6987_s8, %s6783_s22  ;;  %p6785_p7 = pneg %p6989_p11 }
  0x2a   : > { %s6788_s25 = scalar_lea.hbm %s7254_s0, 512  ;;  %p6789_p10 = scmp.lt.s32.totalorder %s6987_s8, %s7254_s0 }
  0x2b   : > { %p6786_p9 = pnand %p6785_p7, %p6784_p5  ;;  %p6790_p2 = scmp.lt.s32.totalorder %s6788_s25, %s6783_s22 }
  0x2d   : > { %p6787_p12 = pneg %p6786_p9  ;;  %p6791_p13 = por %p6790_p2, %p6789_p10 }
  0x2f   : > { %p6792_p0 = pnand %p6791_p13, %p6787_p12 }
  0x31   : > { %6795 = shalt.err (!%p6792_p0)
}
  0x32   : > { %s6796_s28 = scalar_lea.vmem %s136_s18, 256  ;;  %s6884_s3 = smov [#allocation2]  }
  0x33   : > { %p6797_p1 = scmp.ne.s32.totalorder %s136_s18, %s6796_s28  ;;  %s6801_s4 = sshll.u32 %s6884_s3, 4  ;;  %s6802_s4 = int_to_ptr.vmem [resolvable:$false] %s6801_s4 }
  0x34   : > { %s6803_s5 = scalar_lea.vmem %s6802_s4, 512  ;;  %p6804_p5 = scmp.lt.s32.totalorder %s136_s18, %s6802_s4 }
  0x35   : > { %p6799_p6 = pnand %p6797_p1, %p6785_p7  ;;  %p6805_p9 = scmp.lt.s32.totalorder %s6803_s5, %s6796_s28 }
  0x37   : > { %p6800_p3 = pneg %p6799_p6  ;;  %p6806_p4 = por %p6805_p9, %p6804_p5 }
  0x39   : > { %p6807_p8 = pnand %p6806_p4, %p6800_p3 }
  0x3b   : > { %6810 = shalt.err (!%p6807_p8)
}
  0x3c   : > { %5819 = dma.hbm_to_vmem [thread:$0]  (!%p6989_p11), %s6987_s8, 256, %s136_s18, %s124_s20  }
  0x3d   : > { %p7268_p12 = scmp.ne.s32.totalorder %s7263_s17, 0 }
  0x3e   : > { %s7010_s6 = sand.u32 (!%p7268_p12), 1, %s6871_s10   ;;  %p7269_p1 = scmp.ne.s32.totalorder (!%p7268_p12), %s7261_s15, 0 }
  0x3f   : > { %144 = sbr.rel (%p7268_p12) target bundleno = 1414 (0x586), region = 28  ;;  %s5114_s7 = sshll.u32 (!%p7268_p12), %s7010_s6, 4 }
  0x40   : > { %s147_s14 = scalar_lea.sflag (!%p7268_p12), [#allocation3], %s7010_s6  ;;  %s7014_s22 = scalar_lea.vmem (!%p7268_p12), [#allocation2], %s5114_s7 }
  0x44   : > { %6854 = dma.done.wait (%p7269_p1), %s147_s14, 256  }
  0x45   : > { %6856 = vsyncadd (%p7269_p1), %s147_s14, 4294967040  ;;  %p7270_p4 = scmp.eq.s32.totalorder %s6924_s13, 0 }
  0x47   : > { %6858 = dma.done.wait (%p7270_p4), [#allocation6], 73728   ;;  %p7271_p6 = pmov %p7270_p4 }
  0x48   : > { %v5865_v0 = vld [vmem:[#allocation5 + $0x3f4] ss:$72 sps:$4 sm:$0xff]   ;;  %v5869_v2 = vld [vmem:[#allocation5 + $0x3f0] ss:$72 sps:$4 sm:$0xff]   ;;  %v5871_v4 = vld [vmem:[#allocation5 + $0x364] ss:$72 sps:$4 sm:$0xff]  }
  0x49   : > { %6860 = vsyncadd (%p7271_p6), [#allocation6], 4294893568  ;;  %v5867_v1 = vld [vmem:[#allocation5 + $0xcf4] ss:$72 sps:$4 sm:$0xff]   ;;  %3648 = vmatprep.subr.bf16.mxu0 %v5865_v0  ;;  %v5870_v3 = vld [vmem:[#allocation5 + $0xcf0] ss:$72 sps:$4 sm:$0xff]  }
  0x4a   : > { %3689 = vmatprep.subr.bf16.mxu1 %v5867_v1  ;;  %3649 = vmatpush1.bf16.msra.mxu0 %v5869_v2  ;;  %v5873_v5 = vld [vmem:[#allocation5 + $0xc64] ss:$72 sps:$4 sm:$0xff]   ;;  %v5875_v6 = vld [vmem:[#allocation5 + $0x360] ss:$72 sps:$4 sm:$0xff]   ;;  %v5877_v8 = vld [vmem:[#allocation5 + $0x2d4] ss:$72 sps:$4 sm:$0xff]  }
  0x4b   : > { %3690 = vmatpush1.bf16.msra.mxu1 %v5870_v3  ;;  %3650 = vmatprep.subr.bf16.mxu0 %v5871_v4  ;;  %v5876_v7 = vld [vmem:[#allocation5 + $0xc60] ss:$72 sps:$4 sm:$0xff]   ;;  %v5879_v9 = vld [vmem:[#allocation5 + $0xbd4] ss:$72 sps:$4 sm:$0xff]   ;;  %v5881_v10 = vld [vmem:[#allocation5 + $0x2d0] ss:$72 sps:$4 sm:$0xff]  }
  0x4c   : > { %3691 = vmatprep.subr.bf16.mxu1 %v5873_v5  ;;  %v5882_v11 = vld [vmem:[#allocation5 + $0xbd0] ss:$72 sps:$4 sm:$0xff]   ;;  %v5883_v12 = vld [vmem:[#allocation5 + $0x244] ss:$72 sps:$4 sm:$0xff]   ;;  %v5887_v14 = vld [vmem:[#allocation5 + $0x240] ss:$72 sps:$4 sm:$0xff]  }
  0x4d   : > { %v5885_v13 = vld [vmem:[#allocation5 + $0xb44] ss:$72 sps:$4 sm:$0xff]   ;;  %v5888_v15 = vld [vmem:[#allocation5 + $0xb40] ss:$72 sps:$4 sm:$0xff]   ;;  %v5889_v16 = vld [vmem:[#allocation5 + $0x1b4] ss:$72 sps:$4 sm:$0xff]  }
  0x4e   : > { %3651 = vmatpush1.bf16.msra.mxu0 %v5875_v6  ;;  %v5891_v17 = vld [vmem:[#allocation5 + $0xab4] ss:$72 sps:$4 sm:$0xff]   ;;  %v5893_v18 = vld [vmem:[#allocation5 + $0x1b0] ss:$72 sps:$4 sm:$0xff]   ;;  %v5895_v20 = vld [vmem:[#allocation5 + $0x124] ss:$72 sps:$4 sm:$0xff]  }
  0x4f   : > { %3692 = vmatpush1.bf16.msra.mxu1 %v5876_v7  ;;  %3652 = vmatprep.subr.bf16.mxu0 %v5877_v8  ;;  %v5894_v19 = vld [vmem:[#allocation5 + $0xab0] ss:$72 sps:$4 sm:$0xff]   ;;  %v5897_v21 = vld [vmem:[#allocation5 + $0xa24] ss:$72 sps:$4 sm:$0xff]   ;;  %v5899_v22 = vld [vmem:[#allocation5 + $0x120] ss:$72 sps:$4 sm:$0xff]  }
  0x50   : > { %3693 = vmatprep.subr.bf16.mxu1 %v5879_v9  ;;  %v5900_v23 = vld [vmem:[#allocation5 + $0xa20] ss:$72 sps:$4 sm:$0xff]   ;;  %v5901_v24 = vld [vmem:[#allocation5 + $0x94] ss:$72 sps:$4 sm:$0xff]   ;;  %v5905_v26 = vld [vmem:[#allocation5 + $0x90] ss:$72 sps:$4 sm:$0xff]  }
  0x51   : > { %v5903_v25 = vld [vmem:[#allocation5 + $0x994] ss:$72 sps:$4 sm:$0xff]   ;;  %v5906_v27 = vld [vmem:[#allocation5 + $0x990] ss:$72 sps:$4 sm:$0xff]   ;;  %v5907_v28 = vld [vmem:[#allocation5 + $0x4] ss:$72 sps:$4 sm:$0xff]  }
  0x52   : > { %3653 = vmatpush1.bf16.msra.mxu0 %v5881_v10  ;;  %v5909_v29 = vld [vmem:[#allocation5 + $0x904] ss:$72 sps:$4 sm:$0xff]   ;;  %v5911_v30 = vld [vmem:[#allocation5] ss:$72 sps:$4 sm:$0xff]   ;;  %v5913_v32 = vld [vmem:[#allocation5 + $0x874] ss:$72 sps:$4 sm:$0xff]  }
  0x53   : > { %3694 = vmatpush1.bf16.msra.mxu1 %v5882_v11  ;;  %3654 = vmatprep.subr.bf16.mxu0 %v5883_v12  ;;  %v5912_v31 = vld [vmem:[#allocation5 + $0x900] ss:$72 sps:$4 sm:$0xff]   ;;  %v5915_v33 = vld [vmem:[#allocation5 + $0x1174] ss:$72 sps:$4 sm:$0xff]   ;;  %v5917_v34 = vld [vmem:[#allocation5 + $0x870] ss:$72 sps:$4 sm:$0xff]  }
  0x54   : > { %3695 = vmatprep.subr.bf16.mxu1 %v5885_v13  ;;  %v5918_v35 = vld [vmem:[#allocation5 + $0x1170] ss:$72 sps:$4 sm:$0xff]   ;;  %v5919_v36 = vld [vmem:[#allocation5 + $0x7e4] ss:$72 sps:$4 sm:$0xff]   ;;  %v5923_v38 = vld [vmem:[#allocation5 + $0x7e0] ss:$72 sps:$4 sm:$0xff]  }
  0x55   : > { %v5921_v37 = vld [vmem:[#allocation5 + $0x10e4] ss:$72 sps:$4 sm:$0xff]   ;;  %v5924_v39 = vld [vmem:[#allocation5 + $0x10e0] ss:$72 sps:$4 sm:$0xff]   ;;  %v5925_v40 = vld [vmem:[#allocation5 + $0x754] ss:$72 sps:$4 sm:$0xff]  }
  0x56   : > { %3655 = vmatpush1.bf16.msra.mxu0 %v5887_v14  ;;  %v5927_v41 = vld [vmem:[#allocation5 + $0x1054] ss:$72 sps:$4 sm:$0xff]   ;;  %v5929_v42 = vld [vmem:[#allocation5 + $0x750] ss:$72 sps:$4 sm:$0xff]   ;;  %v5931_v44 = vld [vmem:[#allocation5 + $0x6c4] ss:$72 sps:$4 sm:$0xff]  }
  0x57   : > { %3696 = vmatpush1.bf16.msra.mxu1 %v5888_v15  ;;  %3656 = vmatprep.subr.bf16.mxu0 %v5889_v16  ;;  %v5930_v43 = vld [vmem:[#allocation5 + $0x1050] ss:$72 sps:$4 sm:$0xff]   ;;  %v5933_v45 = vld [vmem:[#allocation5 + $0xfc4] ss:$72 sps:$4 sm:$0xff]   ;;  %v5935_v49 = vld [vmem:[#allocation5 + $0x6c0] ss:$72 sps:$4 sm:$0xff]  }
  0x58   : > { %3697 = vmatprep.subr.bf16.mxu1 %v5891_v17  ;;  %v176_v46 = vld [vmem:[%s7014_s22] sm:$0xff]  ;;  %v177_v48 = vld [vmem:[%s7014_s22 + $0x8] sm:$0xff]  ;;  %vm6886_vm0 = vmmov 0   ;;  %vm4466_vm1 = vcmask 1043456   ;;  %vm4450_vm3 = vcmask 64512   ;;  %s5802_s15 = smul.u32 48, %s7010_s6 }
  0x59   : > { %v7025_v47 = vcombine.high %v176_v46, %v176_v46  ;;  %v5936_v50 = vld [vmem:[#allocation5 + $0xfc0] ss:$72 sps:$4 sm:$0xff]   ;;  %v7028_v51 = vcombine.high %v177_v48, %v177_v48  ;;  %v5937_v52 = vld [vmem:[#allocation5 + $0x634] ss:$72 sps:$4 sm:$0xff]   ;;  %v5941_v54 = vld [vmem:[#allocation5 + $0x630] ss:$72 sps:$4 sm:$0xff]   ;;  %v7032_v6 = vcombine.low %v176_v46, %v176_v46  ;;  %v7034_v7 = vcombine.low %v177_v48, %v177_v48 }
  0x5a   : > { %3657 = vmatpush1.bf16.msra.mxu0 %v5893_v18  ;;  %v5939_v53 = vld [vmem:[#allocation5 + $0xf34] ss:$72 sps:$4 sm:$0xff]   ;;  %v5942_v55 = vld [vmem:[#allocation5 + $0xf30] ss:$72 sps:$4 sm:$0xff]   ;;  %v5943_v56 = vld [vmem:[#allocation5 + $0x5a4] ss:$72 sps:$4 sm:$0xff]  }
  0x5b   : > { %3698 = vmatpush1.bf16.msra.mxu1 %v5894_v19  ;;  %3658 = vmatprep.subr.bf16.mxu0 %v5895_v20  ;;  %v5945_v57 = vld [vmem:[#allocation5 + $0xea4] ss:$72 sps:$4 sm:$0xff]   ;;  %v5947_v58 = vld [vmem:[#allocation5 + $0x5a0] ss:$72 sps:$4 sm:$0xff]   ;;  %v5949_v60 = vld [vmem:[#allocation5 + $0x514] ss:$72 sps:$4 sm:$0xff]  }
  0x5c   : > { %3699 = vmatprep.subr.bf16.mxu1 %v5897_v21  ;;  %3680 = vmatprep.mubr.bf16.mxu0 %v7025_v47  ;;  %v5948_v59 = vld [vmem:[#allocation5 + $0xea0] ss:$72 sps:$4 sm:$0xff]   ;;  %v5951_v61 = vld [vmem:[#allocation5 + $0xe14] ss:$72 sps:$4 sm:$0xff]   ;;  %v5953_v62 = vld [vmem:[#allocation5 + $0x510] ss:$72 sps:$4 sm:$0xff]  }
  0x5d   : > { %3721 = vmatprep.mubr.bf16.mxu1 %v7028_v51  ;;  %v5954_v63 = vld [vmem:[#allocation5 + $0xe10] ss:$72 sps:$4 sm:$0xff]   ;;  %v5955_v0 = vld [vmem:[#allocation5 + $0x484] ss:$72 sps:$4 sm:$0xff]   ;;  %v5959_v2 = vld [vmem:[#allocation5 + $0x480] ss:$72 sps:$4 sm:$0xff]  }
  0x5e   : > { %3659 = vmatpush1.bf16.msra.mxu0 %v5899_v22  ;;  %v5957_v1 = vld [vmem:[#allocation5 + $0xd84] ss:$72 sps:$4 sm:$0xff]   ;;  %v5960_v3 = vld [vmem:[#allocation5 + $0xd80] ss:$72 sps:$4 sm:$0xff]   ;;  %s174_s17 = scalar_lea.vmem [#allocation7], %s5802_s15  ;;  %s5803_s8 = smul.u32 768, %s6924_s13 }
  0x5f   : > { %3700 = vmatpush1.bf16.msra.mxu1 %v5900_v23  ;;  %3660 = vmatprep.subr.bf16.mxu0 %v5901_v24  ;;  %v5967_v4 = vld [vmem:[#allocation5 + $0x3fc] ss:$72 sps:$4 sm:$0xff]   ;;  %v5965_v8 = vld [vmem:[#allocation5 + $0x3f8] ss:$72 sps:$4 sm:$0xff]   ;;  %v5973_v10 = vld [vmem:[#allocation5 + $0x36c] ss:$72 sps:$4 sm:$0xff]  }
  0x60   : > { %3701 = vmatprep.subr.bf16.mxu1 %v5903_v25  ;;  %v5970_v5 = vld [vmem:[#allocation5 + $0xcfc] ss:$72 sps:$4 sm:$0xff]   ;;  %v5968_v9 = vld [vmem:[#allocation5 + $0xcf8] ss:$72 sps:$4 sm:$0xff]   ;;  %v5976_v11 = vld [vmem:[#allocation5 + $0xc6c] ss:$72 sps:$4 sm:$0xff]   ;;  %s7211_s23 = scalar_lea.hbm %s7256_s2, %s5803_s8 }
  0x61   : > { %v5971_v12 = vld [vmem:[#allocation5 + $0x368] ss:$72 sps:$4 sm:$0xff]   ;;  %v5979_v14 = vld [vmem:[#allocation5 + $0x2dc] ss:$72 sps:$4 sm:$0xff]   ;;  %v5977_v16 = vld [vmem:[#allocation5 + $0x2d8] ss:$72 sps:$4 sm:$0xff]  }
  0x62   : > { %3661 = vmatpush1.bf16.msra.mxu0 %v5905_v26  ;;  %v5974_v13 = vld [vmem:[#allocation5 + $0xc68] ss:$72 sps:$4 sm:$0xff]   ;;  %v5982_v15 = vld [vmem:[#allocation5 + $0xbdc] ss:$72 sps:$4 sm:$0xff]   ;;  %v5980_v17 = vld [vmem:[#allocation5 + $0xbd8] ss:$72 sps:$4 sm:$0xff]  }
  0x63   : > { %3702 = vmatpush1.bf16.msra.mxu1 %v5906_v27  ;;  %3662 = vmatprep.subr.bf16.mxu0 %v5907_v28  ;;  %v5985_v18 = vld [vmem:[#allocation5 + $0x24c] ss:$72 sps:$4 sm:$0xff]   ;;  %v5983_v20 = vld [vmem:[#allocation5 + $0x248] ss:$72 sps:$4 sm:$0xff]   ;;  %v5991_v22 = vld [vmem:[#allocation5 + $0x1bc] ss:$72 sps:$4 sm:$0xff]  }
  0x64   : > { %3703 = vmatprep.subr.bf16.mxu1 %v5909_v29  ;;  %v5988_v19 = vld [vmem:[#allocation5 + $0xb4c] ss:$72 sps:$4 sm:$0xff]   ;;  %v5986_v21 = vld [vmem:[#allocation5 + $0xb48] ss:$72 sps:$4 sm:$0xff]   ;;  %v5994_v23 = vld [vmem:[#allocation5 + $0xabc] ss:$72 sps:$4 sm:$0xff]  }
  0x65   : > { %v5989_v24 = vld [vmem:[#allocation5 + $0x1b8] ss:$72 sps:$4 sm:$0xff]   ;;  %v5997_v26 = vld [vmem:[#allocation5 + $0x12c] ss:$72 sps:$4 sm:$0xff]   ;;  %v5995_v28 = vld [vmem:[#allocation5 + $0x128] ss:$72 sps:$4 sm:$0xff]  }
  0x66   : > { %3663 = vmatpush1.bf16.msra.mxu0 %v5911_v30  ;;  %v5992_v25 = vld [vmem:[#allocation5 + $0xab8] ss:$72 sps:$4 sm:$0xff]   ;;  %v6000_v27 = vld [vmem:[#allocation5 + $0xa2c] ss:$72 sps:$4 sm:$0xff]   ;;  %v5998_v29 = vld [vmem:[#allocation5 + $0xa28] ss:$72 sps:$4 sm:$0xff]  }
  0x67   : > { %3704 = vmatpush1.bf16.msra.mxu1 %v5912_v31  ;;  %3664 = vmatprep.subr.bf16.mxu0 %v5913_v32  ;;  %v6003_v30 = vld [vmem:[#allocation5 + $0x9c] ss:$72 sps:$4 sm:$0xff]   ;;  %v6001_v32 = vld [vmem:[#allocation5 + $0x98] ss:$72 sps:$4 sm:$0xff]   ;;  %s5026_s18 = sshll.u32 %s174_s17, 4  ;;  %s5012_s24 = scalar_lea.sflag [#allocation4], %s7010_s6  ;;  %s7213_s18 = int_to_ptr.vmem [resolvable:$true] %s5026_s18 }
  0x68   : > { %3705 = vmatprep.subr.bf16.mxu1 %v5915_v33  ;;  %v6006_v31 = vld [vmem:[#allocation5 + $0x99c] ss:$72 sps:$4 sm:$0xff]   ;;  %v6004_v33 = vld [vmem:[#allocation5 + $0x998] ss:$72 sps:$4 sm:$0xff]   ;;  %s6811_s25 = scalar_lea.vmem %s7213_s18, 768  ;;  %p7274_p3 = scmp.ne.s32.totalorder %s7266_s30, 0 }
  0x69   : > { %v6027_v46 = vld [vmem:[#allocation5 + $0x75c] ss:$72 sps:$4 sm:$0xff]   ;;  %p6812_p8 = scmp.ne.s32.totalorder %s7213_s18, %s6811_s25  ;;  %s6887_s13 = smov [#allocation7]  }
  0x6a   : > { %3665 = vmatpush2.bf16.msra.mxu0 %v5917_v34  ;;  %v6009_v34 = vld [vmem:[#allocation5 + $0xc] ss:$72 sps:$4 sm:$0xff]   ;;  %v6030_v48 = vld [vmem:[#allocation5 + $0x105c] ss:$72 sps:$4 sm:$0xff]   ;;  %s6815_s26 = sshll.u32 %s6887_s13, 4  ;;  %s6816_s26 = int_to_ptr.vmem [resolvable:$false] %s6815_s26 }
  0x6b   : > { %3706 = vmatpush2.bf16.msra.mxu1 %v5918_v35  ;;  %3666 = vmatprep.subr.bf16.mxu0 %v5919_v36  ;;  %v6012_v35 = vld [vmem:[#allocation5 + $0x90c] ss:$72 sps:$4 sm:$0xff]   ;;  %v6007_v36 = vld [vmem:[#allocation5 + $0x8] ss:$72 sps:$4 sm:$0xff]   ;;  %p6813_p11 = pnand %p6812_p8, %p7274_p3  ;;  %s6817_s27 = scalar_lea.vmem %s6816_s26, 1536 }
  0x6c   : > { %3707 = vmatprep.subr.bf16.mxu1 %v5921_v37  ;;  %v6010_v37 = vld [vmem:[#allocation5 + $0x908] ss:$72 sps:$4 sm:$0xff]   ;;  %p6818_p10 = scmp.lt.s32.totalorder %s7213_s18, %s6816_s26  ;;  %p6819_p2 = scmp.lt.s32.totalorder %s6817_s27, %s6811_s25 }
  0x6d   : > { %p6814_p7 = pneg %p6813_p11 }
  0x6e   : > { %3667 = vmatpush2.bf16.msra.mxu0 %v5923_v38  ;;  %v6015_v38 = vld [vmem:[#allocation5 + $0x87c] ss:$72 sps:$4 sm:$0xff]   ;;  %p6820_p13 = por %p6819_p2, %p6818_p10 }
  0x6f   : > { %3708 = vmatpush2.bf16.msra.mxu1 %v5924_v39  ;;  %3668 = vmatprep.subr.bf16.mxu0 %v5925_v40  ;;  %v6018_v39 = vld [vmem:[#allocation5 + $0x117c] ss:$72 sps:$4 sm:$0xff]   ;;  %v6013_v40 = vld [vmem:[#allocation5 + $0x878] ss:$72 sps:$4 sm:$0xff]  }
  0x70   : > { %3709 = vmatprep.subr.bf16.mxu1 %v5927_v41  ;;  %v6016_v41 = vld [vmem:[#allocation5 + $0x1178] ss:$72 sps:$4 sm:$0xff]   ;;  %p6821_p0 = pnand %p6820_p13, %p6814_p7 }
  0x72   : > { %3669 = vmatpush2.bf16.msra.mxu0 %v5929_v42  ;;  %v6021_v42 = vld [vmem:[#allocation5 + $0x7ec] ss:$72 sps:$4 sm:$0xff]  }
  0x73   : > { %3710 = vmatpush2.bf16.msra.mxu1 %v5930_v43  ;;  %3670 = vmatprep.subr.bf16.mxu0 %v5931_v44  ;;  %v6024_v43 = vld [vmem:[#allocation5 + $0x10ec] ss:$72 sps:$4 sm:$0xff]   ;;  %v6019_v44 = vld [vmem:[#allocation5 + $0x7e8] ss:$72 sps:$4 sm:$0xff]  }
  0x74   : > { %3711 = vmatprep.subr.bf16.mxu1 %v5933_v45  ;;  %v6022_v45 = vld [vmem:[#allocation5 + $0x10e8] ss:$72 sps:$4 sm:$0xff]  }
  0x76   : > { %3671 = vmatpush2.bf16.msra.mxu0 %v5935_v49  ;;  %v6025_v49 = vld [vmem:[#allocation5 + $0x758] ss:$72 sps:$4 sm:$0xff]  }
  0x77   : > { %3712 = vmatpush2.bf16.msra.mxu1 %v5936_v50  ;;  %3672 = vmatprep.subr.bf16.mxu0 %v5937_v52  ;;  %v6028_v50 = vld [vmem:[#allocation5 + $0x1058] ss:$72 sps:$4 sm:$0xff]   ;;  %v6033_v52 = vld [vmem:[#allocation5 + $0x6cc] ss:$72 sps:$4 sm:$0xff]  }
  0x78   : > { %3713 = vmatprep.subr.bf16.mxu1 %v5939_v53  ;;  %v6036_v53 = vld [vmem:[#allocation5 + $0xfcc] ss:$72 sps:$4 sm:$0xff]  }
  0x7a   : > { %3673 = vmatpush2.bf16.msra.mxu0 %v5941_v54  ;;  %v6031_v54 = vld [vmem:[#allocation5 + $0x6c8] ss:$72 sps:$4 sm:$0xff]  }
  0x7b   : > { %3714 = vmatpush2.bf16.msra.mxu1 %v5942_v55  ;;  %3674 = vmatprep.subr.bf16.mxu0 %v5943_v56  ;;  %v6034_v55 = vld [vmem:[#allocation5 + $0xfc8] ss:$72 sps:$4 sm:$0xff]   ;;  %v6039_v56 = vld [vmem:[#allocation5 + $0x63c] ss:$72 sps:$4 sm:$0xff]  }
  0x7c   : > { %3715 = vmatprep.subr.bf16.mxu1 %v5945_v57  ;;  %v6042_v57 = vld [vmem:[#allocation5 + $0xf3c] ss:$72 sps:$4 sm:$0xff]  }
  0x7e   : > { %3675 = vmatpush2.bf16.msra.mxu0 %v5947_v58  ;;  %v6037_v58 = vld [vmem:[#allocation5 + $0x638] ss:$72 sps:$4 sm:$0xff]  }
  0x7f   : > { %3716 = vmatpush2.bf16.msra.mxu1 %v5948_v59  ;;  %3676 = vmatprep.subr.bf16.mxu0 %v5949_v60  ;;  %v6040_v59 = vld [vmem:[#allocation5 + $0xf38] ss:$72 sps:$4 sm:$0xff]   ;;  %v6045_v60 = vld [vmem:[#allocation5 + $0x5ac] ss:$72 sps:$4 sm:$0xff]  }
  0x80   : > { %3717 = vmatprep.subr.bf16.mxu1 %v5951_v61  ;;  %v6048_v61 = vld [vmem:[#allocation5 + $0xeac] ss:$72 sps:$4 sm:$0xff]  }
  0x82   : > { %3677 = vmatpush2.bf16.msra.mxu0 %v5953_v62  ;;  %v6043_v62 = vld [vmem:[#allocation5 + $0x5a8] ss:$72 sps:$4 sm:$0xff]  }
  0x83   : > { %3718 = vmatpush2.bf16.msra.mxu1 %v5954_v63  ;;  %3678 = vmatprep.subr.bf16.mxu0 %v5955_v0  ;;  %v6046_v63 = vld [vmem:[#allocation5 + $0xea8] ss:$72 sps:$4 sm:$0xff]   ;;  %v6051_v0 = vld [vmem:[#allocation5 + $0x51c] ss:$72 sps:$4 sm:$0xff]  }
  0x84   : > { %3719 = vmatprep.subr.bf16.mxu1 %v5957_v1  ;;  %v6054_v1 = vld [vmem:[#allocation5 + $0xe1c] ss:$72 sps:$4 sm:$0xff]  }
  0x86   : > { %3679 = vmatpush2.bf16.msra.mxu0 %v5959_v2  ;;  %v6049_v2 = vld [vmem:[#allocation5 + $0x518] ss:$72 sps:$4 sm:$0xff]  }
  0x87   : > { %3720 = vmatpush2.bf16.msra.mxu1 %v5960_v3  ;;  %3730 = vmatprep.subr.bf16.mxu0 %v5967_v4  ;;  %v6052_v3 = vld [vmem:[#allocation5 + $0xe18] ss:$72 sps:$4 sm:$0xff]   ;;  %v6057_v4 = vld [vmem:[#allocation5 + $0x48c] ss:$72 sps:$4 sm:$0xff]  }
  0x88   : > { %3771 = vmatprep.subr.bf16.mxu1 %v5970_v5  ;;  %v6060_v5 = vld [vmem:[#allocation5 + $0xd8c] ss:$72 sps:$4 sm:$0xff]  }
  0x89   : > { %3681 = vmatmul.mubr.bf16.vlgmr.msra.gmra.mxu0 %v7032_v6 }
  0x8a   : > { %3722 = vmatmul.mubr.bf16.vlgmr.msra.gmra.mxu1 %v7034_v7  ;;  %3731 = vmatpush1.bf16.msra.mxu0 %v5965_v8  ;;  %v6055_v8 = vld [vmem:[#allocation5 + $0x488] ss:$72 sps:$4 sm:$0xff]  }
  0x8b   : > { %3772 = vmatpush1.bf16.msra.mxu1 %v5968_v9  ;;  %3732 = vmatprep.subr.bf16.mxu0 %v5973_v10  ;;  %v6058_v9 = vld [vmem:[#allocation5 + $0xd88] ss:$72 sps:$4 sm:$0xff]   ;;  %v6063_v10 = vld [vmem:[#allocation5 + $0x404] ss:$72 sps:$4 sm:$0xff]  }
  0x8c   : > { %3773 = vmatprep.subr.bf16.mxu1 %v5976_v11  ;;  %3762 = vmatprep.mubr.bf16.mxu0 %v7025_v47  ;;  %v6066_v11 = vld [vmem:[#allocation5 + $0xd04] ss:$72 sps:$4 sm:$0xff]  }
  0x8d   : > { %3803 = vmatprep.mubr.bf16.mxu1 %v7028_v51 }
  0x8e   : > { %3733 = vmatpush1.bf16.msra.mxu0 %v5971_v12  ;;  %v6061_v12 = vld [vmem:[#allocation5 + $0x400] ss:$72 sps:$4 sm:$0xff]  }
  0x8f   : > { %3774 = vmatpush1.bf16.msra.mxu1 %v5974_v13  ;;  %3734 = vmatprep.subr.bf16.mxu0 %v5979_v14  ;;  %v6064_v13 = vld [vmem:[#allocation5 + $0xd00] ss:$72 sps:$4 sm:$0xff]   ;;  %v6069_v14 = vld [vmem:[#allocation5 + $0x374] ss:$72 sps:$4 sm:$0xff]  }
  0x90   : > { %3775 = vmatprep.subr.bf16.mxu1 %v5982_v15  ;;  %v6072_v15 = vld [vmem:[#allocation5 + $0xc74] ss:$72 sps:$4 sm:$0xff]  }
  0x92   : > { %3735 = vmatpush1.bf16.msra.mxu0 %v5977_v16  ;;  %v6067_v16 = vld [vmem:[#allocation5 + $0x370] ss:$72 sps:$4 sm:$0xff]  }
  0x93   : > { %3776 = vmatpush1.bf16.msra.mxu1 %v5980_v17  ;;  %3736 = vmatprep.subr.bf16.mxu0 %v5985_v18  ;;  %v6070_v17 = vld [vmem:[#allocation5 + $0xc70] ss:$72 sps:$4 sm:$0xff]   ;;  %v6075_v18 = vld [vmem:[#allocation5 + $0x2e4] ss:$72 sps:$4 sm:$0xff]  }
  0x94   : > { %3777 = vmatprep.subr.bf16.mxu1 %v5988_v19  ;;  %v6078_v19 = vld [vmem:[#allocation5 + $0xbe4] ss:$72 sps:$4 sm:$0xff]  }
  0x96   : > { %3737 = vmatpush1.bf16.msra.mxu0 %v5983_v20  ;;  %v6073_v20 = vld [vmem:[#allocation5 + $0x2e0] ss:$72 sps:$4 sm:$0xff]  }
  0x97   : > { %3778 = vmatpush1.bf16.msra.mxu1 %v5986_v21  ;;  %3738 = vmatprep.subr.bf16.mxu0 %v5991_v22  ;;  %v6076_v21 = vld [vmem:[#allocation5 + $0xbe0] ss:$72 sps:$4 sm:$0xff]   ;;  %v6081_v22 = vld [vmem:[#allocation5 + $0x254] ss:$72 sps:$4 sm:$0xff]  }
  0x98   : > { %3779 = vmatprep.subr.bf16.mxu1 %v5994_v23  ;;  %v6084_v23 = vld [vmem:[#allocation5 + $0xb54] ss:$72 sps:$4 sm:$0xff]  }
  0x9a   : > { %3739 = vmatpush1.bf16.msra.mxu0 %v5989_v24  ;;  %v6079_v24 = vld [vmem:[#allocation5 + $0x250] ss:$72 sps:$4 sm:$0xff]  }
  0x9b   : > { %3780 = vmatpush1.bf16.msra.mxu1 %v5992_v25  ;;  %3740 = vmatprep.subr.bf16.mxu0 %v5997_v26  ;;  %v6082_v25 = vld [vmem:[#allocation5 + $0xb50] ss:$72 sps:$4 sm:$0xff]   ;;  %v6087_v26 = vld [vmem:[#allocation5 + $0x1c4] ss:$72 sps:$4 sm:$0xff]  }
  0x9c   : > { %3781 = vmatprep.subr.bf16.mxu1 %v6000_v27  ;;  %v6090_v27 = vld [vmem:[#allocation5 + $0xac4] ss:$72 sps:$4 sm:$0xff]  }
  0x9e   : > { %3741 = vmatpush1.bf16.msra.mxu0 %v5995_v28  ;;  %v6085_v28 = vld [vmem:[#allocation5 + $0x1c0] ss:$72 sps:$4 sm:$0xff]  }
  0x9f   : > { %3782 = vmatpush1.bf16.msra.mxu1 %v5998_v29  ;;  %3742 = vmatprep.subr.bf16.mxu0 %v6003_v30  ;;  %v6088_v29 = vld [vmem:[#allocation5 + $0xac0] ss:$72 sps:$4 sm:$0xff]   ;;  %v6093_v30 = vld [vmem:[#allocation5 + $0x134] ss:$72 sps:$4 sm:$0xff]  }
  0xa0   : > { %3783 = vmatprep.subr.bf16.mxu1 %v6006_v31  ;;  %v6096_v31 = vld [vmem:[#allocation5 + $0xa34] ss:$72 sps:$4 sm:$0xff]  }
  0xa2   : > { %3743 = vmatpush1.bf16.msra.mxu0 %v6001_v32  ;;  %v6091_v32 = vld [vmem:[#allocation5 + $0x130] ss:$72 sps:$4 sm:$0xff]  }
  0xa3   : > { %3784 = vmatpush1.bf16.msra.mxu1 %v6004_v33  ;;  %3744 = vmatprep.subr.bf16.mxu0 %v6009_v34  ;;  %v6094_v33 = vld [vmem:[#allocation5 + $0xa30] ss:$72 sps:$4 sm:$0xff]   ;;  %v6099_v34 = vld [vmem:[#allocation5 + $0xa4] ss:$72 sps:$4 sm:$0xff]  }
  0xa4   : > { %3785 = vmatprep.subr.bf16.mxu1 %v6012_v35  ;;  %v6102_v35 = vld [vmem:[#allocation5 + $0x9a4] ss:$72 sps:$4 sm:$0xff]  }
  0xa6   : > { %3745 = vmatpush1.bf16.msra.mxu0 %v6007_v36  ;;  %v6097_v36 = vld [vmem:[#allocation5 + $0xa0] ss:$72 sps:$4 sm:$0xff]  }
  0xa7   : > { %3786 = vmatpush1.bf16.msra.mxu1 %v6010_v37  ;;  %3746 = vmatprep.subr.bf16.mxu0 %v6015_v38  ;;  %v6100_v37 = vld [vmem:[#allocation5 + $0x9a0] ss:$72 sps:$4 sm:$0xff]   ;;  %v6105_v38 = vld [vmem:[#allocation5 + $0x14] ss:$72 sps:$4 sm:$0xff]  }
  0xa8   : > { %3787 = vmatprep.subr.bf16.mxu1 %v6018_v39  ;;  %v6108_v39 = vld [vmem:[#allocation5 + $0x914] ss:$72 sps:$4 sm:$0xff]  }
  0xaa   : > { %3747 = vmatpush2.bf16.msra.mxu0 %v6013_v40  ;;  %v6103_v40 = vld [vmem:[#allocation5 + $0x10] ss:$72 sps:$4 sm:$0xff]  }
  0xab   : > { %3788 = vmatpush2.bf16.msra.mxu1 %v6016_v41  ;;  %3748 = vmatprep.subr.bf16.mxu0 %v6021_v42  ;;  %v6106_v41 = vld [vmem:[#allocation5 + $0x910] ss:$72 sps:$4 sm:$0xff]   ;;  %v6111_v42 = vld [vmem:[#allocation5 + $0x884] ss:$72 sps:$4 sm:$0xff]  }
  0xac   : > { %3789 = vmatprep.subr.bf16.mxu1 %v6024_v43  ;;  %v6114_v43 = vld [vmem:[#allocation5 + $0x1184] ss:$72 sps:$4 sm:$0xff]  }
  0xae   : > { %3749 = vmatpush2.bf16.msra.mxu0 %v6019_v44  ;;  %v6109_v44 = vld [vmem:[#allocation5 + $0x880] ss:$72 sps:$4 sm:$0xff]  }
  0xaf   : > { %3790 = vmatpush2.bf16.msra.mxu1 %v6022_v45  ;;  %3750 = vmatprep.subr.bf16.mxu0 %v6027_v46  ;;  %v6112_v45 = vld [vmem:[#allocation5 + $0x1180] ss:$72 sps:$4 sm:$0xff]   ;;  %v6117_v46 = vld [vmem:[#allocation5 + $0x7f4] ss:$72 sps:$4 sm:$0xff]  }
  0xb0   : > { %3791 = vmatprep.subr.bf16.mxu1 %v6030_v48  ;;  %v6120_v48 = vld [vmem:[#allocation5 + $0x10f4] ss:$72 sps:$4 sm:$0xff]  }
  0xb2   : > { %3751 = vmatpush2.bf16.msra.mxu0 %v6025_v49  ;;  %v6115_v49 = vld [vmem:[#allocation5 + $0x7f0] ss:$72 sps:$4 sm:$0xff]  }
  0xb3   : > { %3792 = vmatpush2.bf16.msra.mxu1 %v6028_v50  ;;  %3752 = vmatprep.subr.bf16.mxu0 %v6033_v52  ;;  %v6118_v50 = vld [vmem:[#allocation5 + $0x10f0] ss:$72 sps:$4 sm:$0xff]   ;;  %v6123_v52 = vld [vmem:[#allocation5 + $0x764] ss:$72 sps:$4 sm:$0xff]  }
  0xb4   : > { %3793 = vmatprep.subr.bf16.mxu1 %v6036_v53  ;;  %v6126_v53 = vld [vmem:[#allocation5 + $0x1064] ss:$72 sps:$4 sm:$0xff]  }
  0xb6   : > { %3753 = vmatpush2.bf16.msra.mxu0 %v6031_v54  ;;  %v6121_v54 = vld [vmem:[#allocation5 + $0x760] ss:$72 sps:$4 sm:$0xff]  }
  0xb7   : > { %3794 = vmatpush2.bf16.msra.mxu1 %v6034_v55  ;;  %3754 = vmatprep.subr.bf16.mxu0 %v6039_v56  ;;  %v6124_v55 = vld [vmem:[#allocation5 + $0x1060] ss:$72 sps:$4 sm:$0xff]   ;;  %v6129_v56 = vld [vmem:[#allocation5 + $0x6d4] ss:$72 sps:$4 sm:$0xff]  }
  0xb8   : > { %3795 = vmatprep.subr.bf16.mxu1 %v6042_v57  ;;  %v6132_v57 = vld [vmem:[#allocation5 + $0xfd4] ss:$72 sps:$4 sm:$0xff]  }
  0xba   : > { %3755 = vmatpush2.bf16.msra.mxu0 %v6037_v58  ;;  %v6127_v58 = vld [vmem:[#allocation5 + $0x6d0] ss:$72 sps:$4 sm:$0xff]  }
  0xbb   : > { %3796 = vmatpush2.bf16.msra.mxu1 %v6040_v59  ;;  %3756 = vmatprep.subr.bf16.mxu0 %v6045_v60  ;;  %v6130_v59 = vld [vmem:[#allocation5 + $0xfd0] ss:$72 sps:$4 sm:$0xff]   ;;  %v6135_v60 = vld [vmem:[#allocation5 + $0x644] ss:$72 sps:$4 sm:$0xff]  }
  0xbc   : > { %3797 = vmatprep.subr.bf16.mxu1 %v6048_v61  ;;  %v6138_v61 = vld [vmem:[#allocation5 + $0xf44] ss:$72 sps:$4 sm:$0xff]  }
  0xbe   : > { %3757 = vmatpush2.bf16.msra.mxu0 %v6043_v62  ;;  %v6133_v62 = vld [vmem:[#allocation5 + $0x640] ss:$72 sps:$4 sm:$0xff]  }
  0xbf   : > { %3798 = vmatpush2.bf16.msra.mxu1 %v6046_v63  ;;  %3758 = vmatprep.subr.bf16.mxu0 %v6051_v0  ;;  %v6136_v63 = vld [vmem:[#allocation5 + $0xf40] ss:$72 sps:$4 sm:$0xff]   ;;  %v6141_v0 = vld [vmem:[#allocation5 + $0x5b4] ss:$72 sps:$4 sm:$0xff]  }
  0xc0   : > { %3799 = vmatprep.subr.bf16.mxu1 %v6054_v1  ;;  %v6144_v1 = vld [vmem:[#allocation5 + $0xeb4] ss:$72 sps:$4 sm:$0xff]  }
  0xc2   : > { %3759 = vmatpush2.bf16.msra.mxu0 %v6049_v2  ;;  %v6139_v2 = vld [vmem:[#allocation5 + $0x5b0] ss:$72 sps:$4 sm:$0xff]  }
  0xc3   : > { %3800 = vmatpush2.bf16.msra.mxu1 %v6052_v3  ;;  %3760 = vmatprep.subr.bf16.mxu0 %v6057_v4  ;;  %v6142_v3 = vld [vmem:[#allocation5 + $0xeb0] ss:$72 sps:$4 sm:$0xff]   ;;  %v6147_v4 = vld [vmem:[#allocation5 + $0x524] ss:$72 sps:$4 sm:$0xff]  }
  0xc4   : > { %3801 = vmatprep.subr.bf16.mxu1 %v6060_v5  ;;  %v6150_v5 = vld [vmem:[#allocation5 + $0xe24] ss:$72 sps:$4 sm:$0xff]  }
  0xc6   : > { %3761 = vmatpush2.bf16.msra.mxu0 %v6055_v8  ;;  %v6145_v8 = vld [vmem:[#allocation5 + $0x520] ss:$72 sps:$4 sm:$0xff]  }
  0xc7   : > { %3802 = vmatpush2.bf16.msra.mxu1 %v6058_v9  ;;  %3812 = vmatprep.subr.bf16.mxu0 %v6063_v10  ;;  %v6148_v9 = vld [vmem:[#allocation5 + $0xe20] ss:$72 sps:$4 sm:$0xff]   ;;  %v6153_v10 = vld [vmem:[#allocation5 + $0x494] ss:$72 sps:$4 sm:$0xff]  }
  0xc8   : > { %3853 = vmatprep.subr.bf16.mxu1 %v6066_v11  ;;  %v6156_v11 = vld [vmem:[#allocation5 + $0xd94] ss:$72 sps:$4 sm:$0xff]  }
  0xc9   : > { %3763 = vmatmul.mubr.bf16.vlgmr.msra.gmra.mxu0 %v7032_v6 }
  0xca   : > { %3804 = vmatmul.mubr.bf16.vlgmr.msra.gmra.mxu1 %v7034_v7  ;;  %3813 = vmatpush1.bf16.msra.mxu0 %v6061_v12  ;;  %v6151_v12 = vld [vmem:[#allocation5 + $0x490] ss:$72 sps:$4 sm:$0xff]  }
  0xcb   : > { %3854 = vmatpush1.bf16.msra.mxu1 %v6064_v13  ;;  %3814 = vmatprep.subr.bf16.mxu0 %v6069_v14  ;;  %v6154_v13 = vld [vmem:[#allocation5 + $0xd90] ss:$72 sps:$4 sm:$0xff]   ;;  %v6159_v14 = vld [vmem:[#allocation5 + $0x40c] ss:$72 sps:$4 sm:$0xff]  }
  0xcc   : > { %3855 = vmatprep.subr.bf16.mxu1 %v6072_v15  ;;  %3844 = vmatprep.mubr.bf16.mxu0 %v7025_v47  ;;  %v6162_v15 = vld [vmem:[#allocation5 + $0xd0c] ss:$72 sps:$4 sm:$0xff]  }
  0xcd   : > { %3885 = vmatprep.mubr.bf16.mxu1 %v7028_v51 }
  0xce   : > { %3815 = vmatpush1.bf16.msra.mxu0 %v6067_v16  ;;  %v6157_v16 = vld [vmem:[#allocation5 + $0x408] ss:$72 sps:$4 sm:$0xff]  }
  0xcf   : > { %3856 = vmatpush1.bf16.msra.mxu1 %v6070_v17  ;;  %3816 = vmatprep.subr.bf16.mxu0 %v6075_v18  ;;  %v6160_v17 = vld [vmem:[#allocation5 + $0xd08] ss:$72 sps:$4 sm:$0xff]   ;;  %v6165_v18 = vld [vmem:[#allocation5 + $0x37c] ss:$72 sps:$4 sm:$0xff]  }
  0xd0   : > { %3857 = vmatprep.subr.bf16.mxu1 %v6078_v19  ;;  %v6168_v19 = vld [vmem:[#allocation5 + $0xc7c] ss:$72 sps:$4 sm:$0xff]  }
  0xd2   : > { %3817 = vmatpush1.bf16.msra.mxu0 %v6073_v20  ;;  %v6163_v20 = vld [vmem:[#allocation5 + $0x378] ss:$72 sps:$4 sm:$0xff]  }
  0xd3   : > { %3858 = vmatpush1.bf16.msra.mxu1 %v6076_v21  ;;  %3818 = vmatprep.subr.bf16.mxu0 %v6081_v22  ;;  %v6166_v21 = vld [vmem:[#allocation5 + $0xc78] ss:$72 sps:$4 sm:$0xff]   ;;  %v6171_v22 = vld [vmem:[#allocation5 + $0x2ec] ss:$72 sps:$4 sm:$0xff]  }
  0xd4   : > { %3859 = vmatprep.subr.bf16.mxu1 %v6084_v23  ;;  %v6174_v23 = vld [vmem:[#allocation5 + $0xbec] ss:$72 sps:$4 sm:$0xff]  }
  0xd6   : > { %3819 = vmatpush1.bf16.msra.mxu0 %v6079_v24  ;;  %v6169_v24 = vld [vmem:[#allocation5 + $0x2e8] ss:$72 sps:$4 sm:$0xff]  }
  0xd7   : > { %3860 = vmatpush1.bf16.msra.mxu1 %v6082_v25  ;;  %3820 = vmatprep.subr.bf16.mxu0 %v6087_v26  ;;  %v6172_v25 = vld [vmem:[#allocation5 + $0xbe8] ss:$72 sps:$4 sm:$0xff]   ;;  %v6177_v26 = vld [vmem:[#allocation5 + $0x25c] ss:$72 sps:$4 sm:$0xff]  }
  0xd8   : > { %3861 = vmatprep.subr.bf16.mxu1 %v6090_v27  ;;  %v6180_v27 = vld [vmem:[#allocation5 + $0xb5c] ss:$72 sps:$4 sm:$0xff]  }
  0xda   : > { %3821 = vmatpush1.bf16.msra.mxu0 %v6085_v28  ;;  %v6175_v28 = vld [vmem:[#allocation5 + $0x258] ss:$72 sps:$4 sm:$0xff]  }
  0xdb   : > { %3862 = vmatpush1.bf16.msra.mxu1 %v6088_v29  ;;  %3822 = vmatprep.subr.bf16.mxu0 %v6093_v30  ;;  %v6178_v29 = vld [vmem:[#allocation5 + $0xb58] ss:$72 sps:$4 sm:$0xff]   ;;  %v6183_v30 = vld [vmem:[#allocation5 + $0x1cc] ss:$72 sps:$4 sm:$0xff]  }
  0xdc   : > { %3863 = vmatprep.subr.bf16.mxu1 %v6096_v31  ;;  %v6186_v31 = vld [vmem:[#allocation5 + $0xacc] ss:$72 sps:$4 sm:$0xff]  }
  0xde   : > { %3823 = vmatpush1.bf16.msra.mxu0 %v6091_v32  ;;  %v6181_v32 = vld [vmem:[#allocation5 + $0x1c8] ss:$72 sps:$4 sm:$0xff]  }
  0xdf   : > { %3864 = vmatpush1.bf16.msra.mxu1 %v6094_v33  ;;  %3824 = vmatprep.subr.bf16.mxu0 %v6099_v34  ;;  %v6184_v33 = vld [vmem:[#allocation5 + $0xac8] ss:$72 sps:$4 sm:$0xff]   ;;  %v6189_v34 = vld [vmem:[#allocation5 + $0x13c] ss:$72 sps:$4 sm:$0xff]  }
  0xe0   : > { %3865 = vmatprep.subr.bf16.mxu1 %v6102_v35  ;;  %v6192_v35 = vld [vmem:[#allocation5 + $0xa3c] ss:$72 sps:$4 sm:$0xff]  }
  0xe2   : > { %3825 = vmatpush1.bf16.msra.mxu0 %v6097_v36  ;;  %v6187_v36 = vld [vmem:[#allocation5 + $0x138] ss:$72 sps:$4 sm:$0xff]  }
  0xe3   : > { %3866 = vmatpush1.bf16.msra.mxu1 %v6100_v37  ;;  %3826 = vmatprep.subr.bf16.mxu0 %v6105_v38  ;;  %v6190_v37 = vld [vmem:[#allocation5 + $0xa38] ss:$72 sps:$4 sm:$0xff]   ;;  %v6195_v38 = vld [vmem:[#allocation5 + $0xac] ss:$72 sps:$4 sm:$0xff]  }
  0xe4   : > { %3867 = vmatprep.subr.bf16.mxu1 %v6108_v39  ;;  %v6198_v39 = vld [vmem:[#allocation5 + $0x9ac] ss:$72 sps:$4 sm:$0xff]  }
  0xe6   : > { %3827 = vmatpush1.bf16.msra.mxu0 %v6103_v40  ;;  %v6193_v40 = vld [vmem:[#allocation5 + $0xa8] ss:$72 sps:$4 sm:$0xff]  }
  0xe7   : > { %3868 = vmatpush1.bf16.msra.mxu1 %v6106_v41  ;;  %3828 = vmatprep.subr.bf16.mxu0 %v6111_v42  ;;  %v6196_v41 = vld [vmem:[#allocation5 + $0x9a8] ss:$72 sps:$4 sm:$0xff]   ;;  %v6201_v42 = vld [vmem:[#allocation5 + $0x1c] ss:$72 sps:$4 sm:$0xff]  }
  0xe8   : > { %3869 = vmatprep.subr.bf16.mxu1 %v6114_v43  ;;  %v6204_v43 = vld [vmem:[#allocation5 + $0x91c] ss:$72 sps:$4 sm:$0xff]  }
  0xea   : > { %3829 = vmatpush2.bf16.msra.mxu0 %v6109_v44  ;;  %v6199_v44 = vld [vmem:[#allocation5 + $0x18] ss:$72 sps:$4 sm:$0xff]  }
  0xeb   : > { %3870 = vmatpush2.bf16.msra.mxu1 %v6112_v45  ;;  %3830 = vmatprep.subr.bf16.mxu0 %v6117_v46  ;;  %v6202_v45 = vld [vmem:[#allocation5 + $0x918] ss:$72 sps:$4 sm:$0xff]   ;;  %v6207_v46 = vld [vmem:[#allocation5 + $0x88c] ss:$72 sps:$4 sm:$0xff]  }
  0xec   : > { %3871 = vmatprep.subr.bf16.mxu1 %v6120_v48  ;;  %v6210_v48 = vld [vmem:[#allocation5 + $0x118c] ss:$72 sps:$4 sm:$0xff]  }
  0xee   : > { %3831 = vmatpush2.bf16.msra.mxu0 %v6115_v49  ;;  %v6205_v49 = vld [vmem:[#allocation5 + $0x888] ss:$72 sps:$4 sm:$0xff]  }
  0xef   : > { %3872 = vmatpush2.bf16.msra.mxu1 %v6118_v50  ;;  %3832 = vmatprep.subr.bf16.mxu0 %v6123_v52  ;;  %v6208_v50 = vld [vmem:[#allocation5 + $0x1188] ss:$72 sps:$4 sm:$0xff]   ;;  %v6213_v52 = vld [vmem:[#allocation5 + $0x7fc] ss:$72 sps:$4 sm:$0xff]  }
  0xf0   : > { %3873 = vmatprep.subr.bf16.mxu1 %v6126_v53  ;;  %v6216_v53 = vld [vmem:[#allocation5 + $0x10fc] ss:$72 sps:$4 sm:$0xff]  }
  0xf2   : > { %3833 = vmatpush2.bf16.msra.mxu0 %v6121_v54  ;;  %v6211_v54 = vld [vmem:[#allocation5 + $0x7f8] ss:$72 sps:$4 sm:$0xff]  }
  0xf3   : > { %3874 = vmatpush2.bf16.msra.mxu1 %v6124_v55  ;;  %3834 = vmatprep.subr.bf16.mxu0 %v6129_v56  ;;  %v6214_v55 = vld [vmem:[#allocation5 + $0x10f8] ss:$72 sps:$4 sm:$0xff]   ;;  %v6219_v56 = vld [vmem:[#allocation5 + $0x76c] ss:$72 sps:$4 sm:$0xff]  }
  0xf4   : > { %3875 = vmatprep.subr.bf16.mxu1 %v6132_v57  ;;  %v6222_v57 = vld [vmem:[#allocation5 + $0x106c] ss:$72 sps:$4 sm:$0xff]  }
  0xf6   : > { %3835 = vmatpush2.bf16.msra.mxu0 %v6127_v58  ;;  %v6217_v58 = vld [vmem:[#allocation5 + $0x768] ss:$72 sps:$4 sm:$0xff]  }
  0xf7   : > { %3876 = vmatpush2.bf16.msra.mxu1 %v6130_v59  ;;  %3836 = vmatprep.subr.bf16.mxu0 %v6135_v60  ;;  %v6220_v59 = vld [vmem:[#allocation5 + $0x1068] ss:$72 sps:$4 sm:$0xff]   ;;  %v6225_v60 = vld [vmem:[#allocation5 + $0x6dc] ss:$72 sps:$4 sm:$0xff]  }
  0xf8   : > { %3877 = vmatprep.subr.bf16.mxu1 %v6138_v61  ;;  %v6228_v61 = vld [vmem:[#allocation5 + $0xfdc] ss:$72 sps:$4 sm:$0xff]  }
  0xfa   : > { %3837 = vmatpush2.bf16.msra.mxu0 %v6133_v62  ;;  %v6223_v62 = vld [vmem:[#allocation5 + $0x6d8] ss:$72 sps:$4 sm:$0xff]  }
  0xfb   : > { %3878 = vmatpush2.bf16.msra.mxu1 %v6136_v63  ;;  %3838 = vmatprep.subr.bf16.mxu0 %v6141_v0  ;;  %v6226_v63 = vld [vmem:[#allocation5 + $0xfd8] ss:$72 sps:$4 sm:$0xff]   ;;  %v6231_v0 = vld [vmem:[#allocation5 + $0x64c] ss:$72 sps:$4 sm:$0xff]  }
  0xfc   : > { %3879 = vmatprep.subr.bf16.mxu1 %v6144_v1  ;;  %v6234_v1 = vld [vmem:[#allocation5 + $0xf4c] ss:$72 sps:$4 sm:$0xff]  }
  0xfe   : > { %3839 = vmatpush2.bf16.msra.mxu0 %v6139_v2  ;;  %v6229_v2 = vld [vmem:[#allocation5 + $0x648] ss:$72 sps:$4 sm:$0xff]  }
  0xff   : > { %3880 = vmatpush2.bf16.msra.mxu1 %v6142_v3  ;;  %3840 = vmatprep.subr.bf16.mxu0 %v6147_v4  ;;  %v6232_v3 = vld [vmem:[#allocation5 + $0xf48] ss:$72 sps:$4 sm:$0xff]   ;;  %v6237_v4 = vld [vmem:[#allocation5 + $0x5bc] ss:$72 sps:$4 sm:$0xff]  }
 0x100   : > { %3881 = vmatprep.subr.bf16.mxu1 %v6150_v5  ;;  %v6240_v5 = vld [vmem:[#allocation5 + $0xebc] ss:$72 sps:$4 sm:$0xff]  }
 0x102   : > { %3841 = vmatpush2.bf16.msra.mxu0 %v6145_v8  ;;  %v6235_v8 = vld [vmem:[#allocation5 + $0x5b8] ss:$72 sps:$4 sm:$0xff]  }
 0x103   : > { %3882 = vmatpush2.bf16.msra.mxu1 %v6148_v9  ;;  %3842 = vmatprep.subr.bf16.mxu0 %v6153_v10  ;;  %v6238_v9 = vld [vmem:[#allocation5 + $0xeb8] ss:$72 sps:$4 sm:$0xff]   ;;  %v6243_v10 = vld [vmem:[#allocation5 + $0x52c] ss:$72 sps:$4 sm:$0xff]  }
 0x104   : > { %3883 = vmatprep.subr.bf16.mxu1 %v6156_v11  ;;  %v6246_v11 = vld [vmem:[#allocation5 + $0xe2c] ss:$72 sps:$4 sm:$0xff]  }
 0x106   : > { %3843 = vmatpush2.bf16.msra.mxu0 %v6151_v12  ;;  %v6241_v12 = vld [vmem:[#allocation5 + $0x528] ss:$72 sps:$4 sm:$0xff]  }
 0x107   : > { %3884 = vmatpush2.bf16.msra.mxu1 %v6154_v13  ;;  %3894 = vmatprep.subr.bf16.mxu0 %v6159_v14  ;;  %v6244_v13 = vld [vmem:[#allocation5 + $0xe28] ss:$72 sps:$4 sm:$0xff]   ;;  %v6249_v14 = vld [vmem:[#allocation5 + $0x49c] ss:$72 sps:$4 sm:$0xff]  }
 0x108   : > { %3935 = vmatprep.subr.bf16.mxu1 %v6162_v15  ;;  %v6252_v15 = vld [vmem:[#allocation5 + $0xd9c] ss:$72 sps:$4 sm:$0xff]  }
 0x109   : > { %3845 = vmatmul.mubr.bf16.vlgmr.msra.gmra.mxu0 %v7032_v6 }
 0x10a   : > { %3886 = vmatmul.mubr.bf16.vlgmr.msra.gmra.mxu1 %v7034_v7  ;;  %3895 = vmatpush1.bf16.msra.mxu0 %v6157_v16  ;;  %v6247_v16 = vld [vmem:[#allocation5 + $0x498] ss:$72 sps:$4 sm:$0xff]  }
 0x10b   : > { %3936 = vmatpush1.bf16.msra.mxu1 %v6160_v17  ;;  %3896 = vmatprep.subr.bf16.mxu0 %v6165_v18  ;;  %v6250_v17 = vld [vmem:[#allocation5 + $0xd98] ss:$72 sps:$4 sm:$0xff]   ;;  %v6255_v18 = vld [vmem:[#allocation5 + $0x414] ss:$72 sps:$4 sm:$0xff]  }
 0x10c   : > { %3937 = vmatprep.subr.bf16.mxu1 %v6168_v19  ;;  %3926 = vmatprep.mubr.bf16.mxu0 %v7025_v47  ;;  %v6258_v19 = vld [vmem:[#allocation5 + $0xd14] ss:$72 sps:$4 sm:$0xff]  }
 0x10d   : > { %3967 = vmatprep.mubr.bf16.mxu1 %v7028_v51 }
 0x10e   : > { %3897 = vmatpush1.bf16.msra.mxu0 %v6163_v20  ;;  %v6253_v20 = vld [vmem:[#allocation5 + $0x410] ss:$72 sps:$4 sm:$0xff]  }
 0x10f   : > { %3938 = vmatpush1.bf16.msra.mxu1 %v6166_v21  ;;  %3898 = vmatprep.subr.bf16.mxu0 %v6171_v22  ;;  %v6256_v21 = vld [vmem:[#allocation5 + $0xd10] ss:$72 sps:$4 sm:$0xff]   ;;  %v6261_v22 = vld [vmem:[#allocation5 + $0x384] ss:$72 sps:$4 sm:$0xff]  }
 0x110   : > { %3939 = vmatprep.subr.bf16.mxu1 %v6174_v23  ;;  %v6264_v23 = vld [vmem:[#allocation5 + $0xc84] ss:$72 sps:$4 sm:$0xff]  }
 0x112   : > { %3899 = vmatpush1.bf16.msra.mxu0 %v6169_v24  ;;  %v6259_v24 = vld [vmem:[#allocation5 + $0x380] ss:$72 sps:$4 sm:$0xff]  }
 0x113   : > { %3940 = vmatpush1.bf16.msra.mxu1 %v6172_v25  ;;  %3900 = vmatprep.subr.bf16.mxu0 %v6177_v26 }
 0x114   : > { %3941 = vmatprep.subr.bf16.mxu1 %v6180_v27  ;;  %v6262_v27 = vld [vmem:[#allocation5 + $0xc80] ss:$72 sps:$4 sm:$0xff]  }
 0x116   : > { %3901 = vmatpush1.bf16.msra.mxu0 %v6175_v28 }
 0x117   : > { %3942 = vmatpush1.bf16.msra.mxu1 %v6178_v29  ;;  %3902 = vmatprep.subr.bf16.mxu0 %v6183_v30 }
 0x118   : > { %3943 = vmatprep.subr.bf16.mxu1 %v6186_v31  ;;  %v6267_v31 = vld [vmem:[#allocation5 + $0x2f4] ss:$72 sps:$4 sm:$0xff]  }
 0x11a   : > { %3903 = vmatpush1.bf16.msra.mxu0 %v6181_v32  ;;  %v6270_v32 = vld [vmem:[#allocation5 + $0xbf4] ss:$72 sps:$4 sm:$0xff]  }
 0x11b   : > { %3944 = vmatpush1.bf16.msra.mxu1 %v6184_v33  ;;  %3904 = vmatprep.subr.bf16.mxu0 %v6189_v34  ;;  %v6265_v34 = vld [vmem:[#allocation5 + $0x2f0] ss:$72 sps:$4 sm:$0xff]  }
 0x11c   : > { %3945 = vmatprep.subr.bf16.mxu1 %v6192_v35  ;;  %v6268_v35 = vld [vmem:[#allocation5 + $0xbf0] ss:$72 sps:$4 sm:$0xff]  }
 0x11e   : > { %3905 = vmatpush1.bf16.msra.mxu0 %v6187_v36 }
 0x11f   : > { %3946 = vmatpush1.bf16.msra.mxu1 %v6190_v37  ;;  %3906 = vmatprep.subr.bf16.mxu0 %v6195_v38 }
 0x120   : > { %3947 = vmatprep.subr.bf16.mxu1 %v6198_v39  ;;  %v6273_v39 = vld [vmem:[#allocation5 + $0x264] ss:$72 sps:$4 sm:$0xff]  }
 0x122   : > { %3907 = vmatpush1.bf16.msra.mxu0 %v6193_v40  ;;  %v6276_v40 = vld [vmem:[#allocation5 + $0xb64] ss:$72 sps:$4 sm:$0xff]  }
 0x123   : > { %3948 = vmatpush1.bf16.msra.mxu1 %v6196_v41  ;;  %3908 = vmatprep.subr.bf16.mxu0 %v6201_v42  ;;  %v6271_v42 = vld [vmem:[#allocation5 + $0x260] ss:$72 sps:$4 sm:$0xff]  }
 0x124   : > { %3949 = vmatprep.subr.bf16.mxu1 %v6204_v43  ;;  %v6274_v43 = vld [vmem:[#allocation5 + $0xb60] ss:$72 sps:$4 sm:$0xff]  }
 0x126   : > { %3909 = vmatpush1.bf16.msra.mxu0 %v6199_v44  ;;  %v6279_v44 = vld [vmem:[#allocation5 + $0x1d4] ss:$72 sps:$4 sm:$0xff]  }
 0x127   : > { %3950 = vmatpush1.bf16.msra.mxu1 %v6202_v45  ;;  %3910 = vmatprep.subr.bf16.mxu0 %v6207_v46  ;;  %v6282_v45 = vld [vmem:[#allocation5 + $0xad4] ss:$72 sps:$4 sm:$0xff]   ;;  %v6277_v46 = vld [vmem:[#allocation5 + $0x1d0] ss:$72 sps:$4 sm:$0xff]  }
 0x128   : > { %3951 = vmatprep.subr.bf16.mxu1 %v6210_v48  ;;  %v6280_v48 = vld [vmem:[#allocation5 + $0xad0] ss:$72 sps:$4 sm:$0xff]  }
 0x12a   : > { %3911 = vmatpush2.bf16.msra.mxu0 %v6205_v49  ;;  %v6285_v49 = vld [vmem:[#allocation5 + $0x144] ss:$72 sps:$4 sm:$0xff]  }
 0x12b   : > { %3952 = vmatpush2.bf16.msra.mxu1 %v6208_v50  ;;  %3912 = vmatprep.subr.bf16.mxu0 %v6213_v52  ;;  %v6288_v50 = vld [vmem:[#allocation5 + $0xa44] ss:$72 sps:$4 sm:$0xff]   ;;  %v6283_v52 = vld [vmem:[#allocation5 + $0x140] ss:$72 sps:$4 sm:$0xff]  }
 0x12c   : > { %3953 = vmatprep.subr.bf16.mxu1 %v6216_v53  ;;  %v6286_v53 = vld [vmem:[#allocation5 + $0xa40] ss:$72 sps:$4 sm:$0xff]  }
 0x12e   : > { %3913 = vmatpush2.bf16.msra.mxu0 %v6211_v54  ;;  %v6291_v54 = vld [vmem:[#allocation5 + $0xb4] ss:$72 sps:$4 sm:$0xff]  }
 0x12f   : > { %3954 = vmatpush2.bf16.msra.mxu1 %v6214_v55  ;;  %3914 = vmatprep.subr.bf16.mxu0 %v6219_v56  ;;  %v6294_v55 = vld [vmem:[#allocation5 + $0x9b4] ss:$72 sps:$4 sm:$0xff]   ;;  %v6289_v56 = vld [vmem:[#allocation5 + $0xb0] ss:$72 sps:$4 sm:$0xff]  }
 0x130   : > { %3955 = vmatprep.subr.bf16.mxu1 %v6222_v57  ;;  %v6292_v57 = vld [vmem:[#allocation5 + $0x9b0] ss:$72 sps:$4 sm:$0xff]  }
 0x132   : > { %3915 = vmatpush2.bf16.msra.mxu0 %v6217_v58  ;;  %v6297_v58 = vld [vmem:[#allocation5 + $0x24] ss:$72 sps:$4 sm:$0xff]  }
 0x133   : > { %3956 = vmatpush2.bf16.msra.mxu1 %v6220_v59  ;;  %3916 = vmatprep.subr.bf16.mxu0 %v6225_v60  ;;  %v6300_v59 = vld [vmem:[#allocation5 + $0x924] ss:$72 sps:$4 sm:$0xff]   ;;  %v6295_v60 = vld [vmem:[#allocation5 + $0x20] ss:$72 sps:$4 sm:$0xff]  }
 0x134   : > { %3957 = vmatprep.subr.bf16.mxu1 %v6228_v61  ;;  %v6298_v61 = vld [vmem:[#allocation5 + $0x920] ss:$72 sps:$4 sm:$0xff]  }
 0x136   : > { %3917 = vmatpush2.bf16.msra.mxu0 %v6223_v62  ;;  %v6303_v62 = vld [vmem:[#allocation5 + $0x894] ss:$72 sps:$4 sm:$0xff]  }
 0x137   : > { %3958 = vmatpush2.bf16.msra.mxu1 %v6226_v63  ;;  %3918 = vmatprep.subr.bf16.mxu0 %v6231_v0  ;;  %v6306_v63 = vld [vmem:[#allocation5 + $0x1194] ss:$72 sps:$4 sm:$0xff]   ;;  %v6301_v0 = vld [vmem:[#allocation5 + $0x890] ss:$72 sps:$4 sm:$0xff]  }
 0x138   : > { %3959 = vmatprep.subr.bf16.mxu1 %v6234_v1  ;;  %v6304_v1 = vld [vmem:[#allocation5 + $0x1190] ss:$72 sps:$4 sm:$0xff]  }
 0x13a   : > { %3919 = vmatpush2.bf16.msra.mxu0 %v6229_v2  ;;  %v6309_v2 = vld [vmem:[#allocation5 + $0x804] ss:$72 sps:$4 sm:$0xff]  }
 0x13b   : > { %3960 = vmatpush2.bf16.msra.mxu1 %v6232_v3  ;;  %3920 = vmatprep.subr.bf16.mxu0 %v6237_v4  ;;  %v6312_v3 = vld [vmem:[#allocation5 + $0x1104] ss:$72 sps:$4 sm:$0xff]   ;;  %v6307_v4 = vld [vmem:[#allocation5 + $0x800] ss:$72 sps:$4 sm:$0xff]  }
 0x13c   : > { %3961 = vmatprep.subr.bf16.mxu1 %v6240_v5  ;;  %v6310_v5 = vld [vmem:[#allocation5 + $0x1100] ss:$72 sps:$4 sm:$0xff]  }
 0x13e   : > { %3921 = vmatpush2.bf16.msra.mxu0 %v6235_v8  ;;  %v6315_v8 = vld [vmem:[#allocation5 + $0x774] ss:$72 sps:$4 sm:$0xff]  }
 0x13f   : > { %3962 = vmatpush2.bf16.msra.mxu1 %v6238_v9  ;;  %3922 = vmatprep.subr.bf16.mxu0 %v6243_v10  ;;  %v6318_v9 = vld [vmem:[#allocation5 + $0x1074] ss:$72 sps:$4 sm:$0xff]   ;;  %v6313_v10 = vld [vmem:[#allocation5 + $0x770] ss:$72 sps:$4 sm:$0xff]  }
 0x140   : > { %3963 = vmatprep.subr.bf16.mxu1 %v6246_v11  ;;  %v6316_v11 = vld [vmem:[#allocation5 + $0x1070] ss:$72 sps:$4 sm:$0xff]  }
 0x142   : > { %3923 = vmatpush2.bf16.msra.mxu0 %v6241_v12  ;;  %v6321_v12 = vld [vmem:[#allocation5 + $0x6e4] ss:$72 sps:$4 sm:$0xff]  }
 0x143   : > { %3964 = vmatpush2.bf16.msra.mxu1 %v6244_v13  ;;  %3924 = vmatprep.subr.bf16.mxu0 %v6249_v14  ;;  %v6324_v13 = vld [vmem:[#allocation5 + $0xfe4] ss:$72 sps:$4 sm:$0xff]   ;;  %v6319_v14 = vld [vmem:[#allocation5 + $0x6e0] ss:$72 sps:$4 sm:$0xff]  }
 0x144   : > { %3965 = vmatprep.subr.bf16.mxu1 %v6252_v15  ;;  %v6322_v15 = vld [vmem:[#allocation5 + $0xfe0] ss:$72 sps:$4 sm:$0xff]  }
 0x146   : > { %3925 = vmatpush2.bf16.msra.mxu0 %v6247_v16  ;;  %v6327_v16 = vld [vmem:[#allocation5 + $0x654] ss:$72 sps:$4 sm:$0xff]  }
 0x147   : > { %3966 = vmatpush2.bf16.msra.mxu1 %v6250_v17  ;;  %3976 = vmatprep.subr.bf16.mxu0 %v6255_v18  ;;  %v6330_v17 = vld [vmem:[#allocation5 + $0xf54] ss:$72 sps:$4 sm:$0xff]   ;;  %v6325_v18 = vld [vmem:[#allocation5 + $0x650] ss:$72 sps:$4 sm:$0xff]  }
 0x148   : > { %4017 = vmatprep.subr.bf16.mxu1 %v6258_v19  ;;  %v6328_v19 = vld [vmem:[#allocation5 + $0xf50] ss:$72 sps:$4 sm:$0xff]  }
 0x149   : > { %v3682_v25 = vpop.f32.mrf.mxu0  ;;  %3927 = vmatmul.mubr.bf16.vlgmr.msra.gmra.mxu0 %v7032_v6 }
 0x14a   : > { %v3723_v26 = vpop.f32.mrf.mxu1  ;;  %3968 = vmatmul.mubr.bf16.vlgmr.msra.gmra.mxu1 %v7034_v7  ;;  %3977 = vmatpush1.bf16.msra.mxu0 %v6253_v20  ;;  %v6333_v20 = vld [vmem:[#allocation5 + $0x5c4] ss:$72 sps:$4 sm:$0xff]  }
 0x14b   : > { %v7050_v28 = vadd.f32 %v3723_v26, %v3682_v25  ;;  %4018 = vmatpush1.bf16.msra.mxu1 %v6256_v21  ;;  %v3684_v29 = vpop.f32.mrf.mxu0  ;;  %3978 = vmatprep.subr.bf16.mxu0 %v6261_v22  ;;  %v6336_v21 = vld [vmem:[#allocation5 + $0xec4] ss:$72 sps:$4 sm:$0xff]   ;;  %v6331_v22 = vld [vmem:[#allocation5 + $0x5c0] ss:$72 sps:$4 sm:$0xff]   ;;  %v6342_v25 = vld [vmem:[#allocation5 + $0xe34] ss:$72 sps:$4 sm:$0xff]  }
 0x14c   : > { %v3725_v30 = vpop.f32.mrf.mxu1  ;;  %4019 = vmatprep.subr.bf16.mxu1 %v6264_v23  ;;  %4008 = vmatprep.mubr.bf16.mxu0 %v7025_v47  ;;  %v6334_v23 = vld [vmem:[#allocation5 + $0xec0] ss:$72 sps:$4 sm:$0xff]   ;;  %v6337_v26 = vld [vmem:[#allocation5 + $0x530] ss:$72 sps:$4 sm:$0xff]  }
 0x14d   : > { %v7052_v33 = vadd.f32 %v3725_v30, %v3684_v29  ;;  %4049 = vmatprep.mubr.bf16.mxu1 %v7028_v51  ;;  %v3686_v36 = vpop.f32.mrf.mxu0  ;;  %v6345_v29 = vld [vmem:[#allocation5 + $0x4a4] ss:$72 sps:$4 sm:$0xff]  }
 0x14e   : > { %v3727_v37 = vpop.f32.mrf.mxu1  ;;  %3979 = vmatpush1.bf16.msra.mxu0 %v6259_v24  ;;  %v6339_v24 = vld [vmem:[#allocation5 + $0x534] ss:$72 sps:$4 sm:$0xff]   ;;  %v6348_v30 = vld [vmem:[#allocation5 + $0xda4] ss:$72 sps:$4 sm:$0xff]   ;;  %v6349_v36 = vld [vmem:[#allocation5 + $0x418] ss:$72 sps:$4 sm:$0xff]  }
 0x14f   : > { %4020 = vmatpush1.bf16.msra.mxu1 %v6262_v27  ;;  %v3687_v38 = vpop.f32.mrf.mxu0  ;;  %3980 = vmatprep.subr.bf16.mxu0 %v6267_v31  ;;  %v6340_v27 = vld [vmem:[#allocation5 + $0xe30] ss:$72 sps:$4 sm:$0xff]   ;;  %v6343_v31 = vld [vmem:[#allocation5 + $0x4a0] ss:$72 sps:$4 sm:$0xff]  }
 0x150   : > { %4021 = vmatprep.subr.bf16.mxu1 %v6270_v32  ;;  %v3728_v41 = vpop.f32.mrf.mxu1  ;;  %v6346_v32 = vld [vmem:[#allocation5 + $0xda0] ss:$72 sps:$4 sm:$0xff]   ;;  %v6357_v38 = vld [vmem:[#allocation5 + $0x38c] ss:$72 sps:$4 sm:$0xff]  }
 0x151   : > { %v6352_v37 = vld [vmem:[#allocation5 + $0xd18] ss:$72 sps:$4 sm:$0xff]   ;;  %v6358_v41 = vld [vmem:[#allocation5 + $0xc88] ss:$72 sps:$4 sm:$0xff]  }
 0x152   : > { %3981 = vmatpush1.bf16.msra.mxu0 %v6265_v34  ;;  %v6351_v34 = vld [vmem:[#allocation5 + $0x41c] ss:$72 sps:$4 sm:$0xff]  }
 0x153   : > { %4022 = vmatpush1.bf16.msra.mxu1 %v6268_v35  ;;  %3982 = vmatprep.subr.bf16.mxu0 %v6273_v39  ;;  %v6354_v35 = vld [vmem:[#allocation5 + $0xd1c] ss:$72 sps:$4 sm:$0xff]   ;;  %v6360_v39 = vld [vmem:[#allocation5 + $0xc8c] ss:$72 sps:$4 sm:$0xff]  }
 0x154   : > { %4023 = vmatprep.subr.bf16.mxu1 %v6276_v40  ;;  %v6355_v40 = vld [vmem:[#allocation5 + $0x388] ss:$72 sps:$4 sm:$0xff]  }
 0x156   : > { %3983 = vmatpush1.bf16.msra.mxu0 %v6271_v42 }
 0x157   : > { %4024 = vmatpush1.bf16.msra.mxu1 %v6274_v43  ;;  %3984 = vmatprep.subr.bf16.mxu0 %v6279_v44 }
 0x158   : > { %4025 = vmatprep.subr.bf16.mxu1 %v6282_v45 }
 0x15a   : > { %3985 = vmatpush1.bf16.msra.mxu0 %v6277_v46 }
 0x15b   : > { %4026 = vmatpush1.bf16.msra.mxu1 %v6280_v48  ;;  %3986 = vmatprep.subr.bf16.mxu0 %v6285_v49  ;;  %v6363_v48 = vld [vmem:[#allocation5 + $0x2fc] ss:$72 sps:$4 sm:$0xff]  }
 0x15c   : > { %4027 = vmatprep.subr.bf16.mxu1 %v6288_v50  ;;  %v6366_v49 = vld [vmem:[#allocation5 + $0xbfc] ss:$72 sps:$4 sm:$0xff]  }
 0x15e   : > { %3987 = vmatpush1.bf16.msra.mxu0 %v6283_v52  ;;  %v6361_v52 = vld [vmem:[#allocation5 + $0x2f8] ss:$72 sps:$4 sm:$0xff]  }
 0x15f   : > { %4028 = vmatpush1.bf16.msra.mxu1 %v6286_v53  ;;  %3988 = vmatprep.subr.bf16.mxu0 %v6291_v54  ;;  %v6364_v53 = vld [vmem:[#allocation5 + $0xbf8] ss:$72 sps:$4 sm:$0xff]  }
 0x160   : > { %4029 = vmatprep.subr.bf16.mxu1 %v6294_v55 }
 0x162   : > { %3989 = vmatpush1.bf16.msra.mxu0 %v6289_v56 }
 0x163   : > { %4030 = vmatpush1.bf16.msra.mxu1 %v6292_v57  ;;  %3990 = vmatprep.subr.bf16.mxu0 %v6297_v58  ;;  %v6369_v57 = vld [vmem:[#allocation5 + $0x26c] ss:$72 sps:$4 sm:$0xff]  }
 0x164   : > { %4031 = vmatprep.subr.bf16.mxu1 %v6300_v59  ;;  %v6372_v58 = vld [vmem:[#allocation5 + $0xb6c] ss:$72 sps:$4 sm:$0xff]  }
 0x166   : > { %3991 = vmatpush1.bf16.msra.mxu0 %v6295_v60  ;;  %v6367_v60 = vld [vmem:[#allocation5 + $0x268] ss:$72 sps:$4 sm:$0xff]  }
 0x167   : > { %4032 = vmatpush1.bf16.msra.mxu1 %v6298_v61  ;;  %3992 = vmatprep.subr.bf16.mxu0 %v6303_v62  ;;  %v6370_v61 = vld [vmem:[#allocation5 + $0xb68] ss:$72 sps:$4 sm:$0xff]   ;;  %v6375_v62 = vld [vmem:[#allocation5 + $0x1dc] ss:$72 sps:$4 sm:$0xff]  }
 0x168   : > { %4033 = vmatprep.subr.bf16.mxu1 %v6306_v63  ;;  %v6378_v63 = vld [vmem:[#allocation5 + $0xadc] ss:$72 sps:$4 sm:$0xff]  }
 0x16a   : > { %3993 = vmatpush2.bf16.msra.mxu0 %v6301_v0  ;;  %v6373_v0 = vld [vmem:[#allocation5 + $0x1d8] ss:$72 sps:$4 sm:$0xff]  }
 0x16b   : > { %4034 = vmatpush2.bf16.msra.mxu1 %v6304_v1  ;;  %3994 = vmatprep.subr.bf16.mxu0 %v6309_v2  ;;  %v6376_v1 = vld [vmem:[#allocation5 + $0xad8] ss:$72 sps:$4 sm:$0xff]   ;;  %v6381_v2 = vld [vmem:[#allocation5 + $0x14c] ss:$72 sps:$4 sm:$0xff]  }
 0x16c   : > { %4035 = vmatprep.subr.bf16.mxu1 %v6312_v3  ;;  %v6384_v3 = vld [vmem:[#allocation5 + $0xa4c] ss:$72 sps:$4 sm:$0xff]  }
 0x16e   : > { %3995 = vmatpush2.bf16.msra.mxu0 %v6307_v4  ;;  %v6379_v4 = vld [vmem:[#allocation5 + $0x148] ss:$72 sps:$4 sm:$0xff]  }
 0x16f   : > { %4036 = vmatpush2.bf16.msra.mxu1 %v6310_v5  ;;  %3996 = vmatprep.subr.bf16.mxu0 %v6315_v8  ;;  %v6382_v5 = vld [vmem:[#allocation5 + $0xa48] ss:$72 sps:$4 sm:$0xff]   ;;  %v6387_v8 = vld [vmem:[#allocation5 + $0xbc] ss:$72 sps:$4 sm:$0xff]  }
 0x170   : > { %4037 = vmatprep.subr.bf16.mxu1 %v6318_v9  ;;  %v6390_v9 = vld [vmem:[#allocation5 + $0x9bc] ss:$72 sps:$4 sm:$0xff]  }
 0x172   : > { %3997 = vmatpush2.bf16.msra.mxu0 %v6313_v10  ;;  %v6385_v10 = vld [vmem:[#allocation5 + $0xb8] ss:$72 sps:$4 sm:$0xff]  }
 0x173   : > { %4038 = vmatpush2.bf16.msra.mxu1 %v6316_v11  ;;  %3998 = vmatprep.subr.bf16.mxu0 %v6321_v12  ;;  %v6388_v11 = vld [vmem:[#allocation5 + $0x9b8] ss:$72 sps:$4 sm:$0xff]   ;;  %v6393_v12 = vld [vmem:[#allocation5 + $0x2c] ss:$72 sps:$4 sm:$0xff]  }
 0x174   : > { %4039 = vmatprep.subr.bf16.mxu1 %v6324_v13  ;;  %v6396_v13 = vld [vmem:[#allocation5 + $0x92c] ss:$72 sps:$4 sm:$0xff]  }
 0x176   : > { %3999 = vmatpush2.bf16.msra.mxu0 %v6319_v14  ;;  %v6391_v14 = vld [vmem:[#allocation5 + $0x28] ss:$72 sps:$4 sm:$0xff]  }
 0x177   : > { %4040 = vmatpush2.bf16.msra.mxu1 %v6322_v15  ;;  %4000 = vmatprep.subr.bf16.mxu0 %v6327_v16  ;;  %v6394_v15 = vld [vmem:[#allocation5 + $0x928] ss:$72 sps:$4 sm:$0xff]   ;;  %v6399_v16 = vld [vmem:[#allocation5 + $0x89c] ss:$72 sps:$4 sm:$0xff]  }
 0x178   : > { %4041 = vmatprep.subr.bf16.mxu1 %v6330_v17  ;;  %v6402_v17 = vld [vmem:[#allocation5 + $0x119c] ss:$72 sps:$4 sm:$0xff]  }
 0x17a   : > { %4001 = vmatpush2.bf16.msra.mxu0 %v6325_v18  ;;  %v6397_v18 = vld [vmem:[#allocation5 + $0x898] ss:$72 sps:$4 sm:$0xff]  }
 0x17b   : > { %4042 = vmatpush2.bf16.msra.mxu1 %v6328_v19  ;;  %4002 = vmatprep.subr.bf16.mxu0 %v6333_v20  ;;  %v6400_v19 = vld [vmem:[#allocation5 + $0x1198] ss:$72 sps:$4 sm:$0xff]   ;;  %v6405_v20 = vld [vmem:[#allocation5 + $0x80c] ss:$72 sps:$4 sm:$0xff]  }
 0x17c   : > { %4043 = vmatprep.subr.bf16.mxu1 %v6336_v21  ;;  %v6408_v21 = vld [vmem:[#allocation5 + $0x110c] ss:$72 sps:$4 sm:$0xff]  }
 0x17e   : > { %4003 = vmatpush2.bf16.msra.mxu0 %v6331_v22  ;;  %v6403_v22 = vld [vmem:[#allocation5 + $0x808] ss:$72 sps:$4 sm:$0xff]  }
 0x17f   : > { %4044 = vmatpush2.bf16.msra.mxu1 %v6334_v23  ;;  %4004 = vmatprep.subr.bf16.mxu0 %v6339_v24  ;;  %v6406_v23 = vld [vmem:[#allocation5 + $0x1108] ss:$72 sps:$4 sm:$0xff]   ;;  %v6411_v24 = vld [vmem:[#allocation5 + $0x77c] ss:$72 sps:$4 sm:$0xff]  }
 0x180   : > { %4045 = vmatprep.subr.bf16.mxu1 %v6342_v25  ;;  %v6414_v25 = vld [vmem:[#allocation5 + $0x107c] ss:$72 sps:$4 sm:$0xff]  }
 0x182   : > { %4005 = vmatpush2.bf16.msra.mxu0 %v6337_v26  ;;  %v6409_v26 = vld [vmem:[#allocation5 + $0x778] ss:$72 sps:$4 sm:$0xff]  }
 0x183   : > { %4046 = vmatpush2.bf16.msra.mxu1 %v6340_v27  ;;  %4006 = vmatprep.subr.bf16.mxu0 %v6345_v29  ;;  %v6412_v27 = vld [vmem:[#allocation5 + $0x1078] ss:$72 sps:$4 sm:$0xff]   ;;  %v6417_v29 = vld [vmem:[#allocation5 + $0x6ec] ss:$72 sps:$4 sm:$0xff]  }
 0x184   : > { %4047 = vmatprep.subr.bf16.mxu1 %v6348_v30  ;;  %v6420_v30 = vld [vmem:[#allocation5 + $0xfec] ss:$72 sps:$4 sm:$0xff]  }
 0x186   : > { %4007 = vmatpush2.bf16.msra.mxu0 %v6343_v31  ;;  %v6415_v31 = vld [vmem:[#allocation5 + $0x6e8] ss:$72 sps:$4 sm:$0xff]  }
 0x187   : > { %4048 = vmatpush2.bf16.msra.mxu1 %v6346_v32  ;;  %4058 = vmatprep.subr.bf16.mxu0 %v6351_v34  ;;  %v6418_v32 = vld [vmem:[#allocation5 + $0xfe8] ss:$72 sps:$4 sm:$0xff]   ;;  %v6423_v34 = vld [vmem:[#allocation5 + $0x65c] ss:$72 sps:$4 sm:$0xff]  }
 0x188   : > { %4099 = vmatprep.subr.bf16.mxu1 %v6354_v35  ;;  %v6426_v35 = vld [vmem:[#allocation5 + $0xf5c] ss:$72 sps:$4 sm:$0xff]  }
 0x189   : > { %v3764_v42 = vpop.f32.mrf.mxu0  ;;  %4009 = vmatmul.mubr.bf16.vlgmr.msra.gmra.mxu0 %v7032_v6 }
 0x18a   : > { %v3805_v43 = vpop.f32.mrf.mxu1  ;;  %4050 = vmatmul.mubr.bf16.vlgmr.msra.gmra.mxu1 %v7034_v7  ;;  %4059 = vmatpush1.bf16.msra.mxu0 %v6349_v36  ;;  %v6421_v36 = vld [vmem:[#allocation5 + $0x658] ss:$72 sps:$4 sm:$0xff]  }
 0x18b   : > { %v7058_v44 = vadd.f32 %v3805_v43, %v3764_v42  ;;  %4100 = vmatpush1.bf16.msra.mxu1 %v6352_v37  ;;  %v3766_v45 = vpop.f32.mrf.mxu0  ;;  %4060 = vmatprep.subr.bf16.mxu0 %v6357_v38  ;;  %v6424_v37 = vld [vmem:[#allocation5 + $0xf58] ss:$72 sps:$4 sm:$0xff]   ;;  %v6429_v38 = vld [vmem:[#allocation5 + $0x5cc] ss:$72 sps:$4 sm:$0xff]   ;;  %v6435_v42 = vld [vmem:[#allocation5 + $0x53c] ss:$72 sps:$4 sm:$0xff]  }
 0x18c   : > { %v3807_v46 = vpop.f32.mrf.mxu1  ;;  %4101 = vmatprep.subr.bf16.mxu1 %v6360_v39  ;;  %4090 = vmatprep.mubr.bf16.mxu0 %v7025_v47  ;;  %v6432_v39 = vld [vmem:[#allocation5 + $0xecc] ss:$72 sps:$4 sm:$0xff]   ;;  %v6438_v43 = vld [vmem:[#allocation5 + $0xe3c] ss:$72 sps:$4 sm:$0xff]  }
 0x18d   : > { %v7060_v50 = vadd.f32 %v3807_v46, %v3766_v45  ;;  %4131 = vmatprep.mubr.bf16.mxu1 %v7028_v51  ;;  %v3768_v54 = vpop.f32.mrf.mxu0  ;;  %v6433_v45 = vld [vmem:[#allocation5 + $0x538] ss:$72 sps:$4 sm:$0xff]  }
 0x18e   : > { %v3809_v55 = vpop.f32.mrf.mxu1  ;;  %4061 = vmatpush1.bf16.msra.mxu0 %v6355_v40  ;;  %v6427_v40 = vld [vmem:[#allocation5 + $0x5c8] ss:$72 sps:$4 sm:$0xff]   ;;  %v6436_v46 = vld [vmem:[#allocation5 + $0xe38] ss:$72 sps:$4 sm:$0xff]   ;;  %v6447_v54 = vld [vmem:[#allocation5 + $0x424] ss:$72 sps:$4 sm:$0xff]  }
 0x18f   : > { %4102 = vmatpush1.bf16.msra.mxu1 %v6358_v41  ;;  %v3769_v56 = vpop.f32.mrf.mxu0  ;;  %4062 = vmatprep.subr.bf16.mxu0 %v6363_v48  ;;  %v6430_v41 = vld [vmem:[#allocation5 + $0xec8] ss:$72 sps:$4 sm:$0xff]   ;;  %v6441_v48 = vld [vmem:[#allocation5 + $0x4ac] ss:$72 sps:$4 sm:$0xff]  }
 0x190   : > { %4103 = vmatprep.subr.bf16.mxu1 %v6366_v49  ;;  %v3810_v59 = vpop.f32.mrf.mxu1  ;;  %v6444_v49 = vld [vmem:[#allocation5 + $0xdac] ss:$72 sps:$4 sm:$0xff]   ;;  %v6445_v56 = vld [vmem:[#allocation5 + $0x420] ss:$72 sps:$4 sm:$0xff]  }
 0x191   : > { %v6450_v55 = vld [vmem:[#allocation5 + $0xd24] ss:$72 sps:$4 sm:$0xff]   ;;  %v6456_v59 = vld [vmem:[#allocation5 + $0xc94] ss:$72 sps:$4 sm:$0xff]  }
 0x192   : > { %4063 = vmatpush1.bf16.msra.mxu0 %v6361_v52  ;;  %v6439_v52 = vld [vmem:[#allocation5 + $0x4a8] ss:$72 sps:$4 sm:$0xff]  }
 0x193   : > { %4104 = vmatpush1.bf16.msra.mxu1 %v6364_v53  ;;  %4064 = vmatprep.subr.bf16.mxu0 %v6369_v57  ;;  %v6442_v53 = vld [vmem:[#allocation5 + $0xda8] ss:$72 sps:$4 sm:$0xff]  }
 0x194   : > { %4105 = vmatprep.subr.bf16.mxu1 %v6372_v58  ;;  %v6448_v57 = vld [vmem:[#allocation5 + $0xd20] ss:$72 sps:$4 sm:$0xff]   ;;  %v6453_v58 = vld [vmem:[#allocation5 + $0x394] ss:$72 sps:$4 sm:$0xff]  }
 0x196   : > { %4065 = vmatpush1.bf16.msra.mxu0 %v6367_v60 }
 0x197   : > { %4106 = vmatpush1.bf16.msra.mxu1 %v6370_v61  ;;  %4066 = vmatprep.subr.bf16.mxu0 %v6375_v62 }
 0x198   : > { %4107 = vmatprep.subr.bf16.mxu1 %v6378_v63  ;;  %v6451_v63 = vld [vmem:[#allocation5 + $0x390] ss:$72 sps:$4 sm:$0xff]  }
 0x19a   : > { %4067 = vmatpush1.bf16.msra.mxu0 %v6373_v0  ;;  %v6454_v0 = vld [vmem:[#allocation5 + $0xc90] ss:$72 sps:$4 sm:$0xff]  }
 0x19b   : > { %4108 = vmatpush1.bf16.msra.mxu1 %v6376_v1  ;;  %4068 = vmatprep.subr.bf16.mxu0 %v6381_v2 }
 0x19c   : > { %4109 = vmatprep.subr.bf16.mxu1 %v6384_v3  ;;  %v6459_v3 = vld [vmem:[#allocation5 + $0x304] ss:$72 sps:$4 sm:$0xff]  }
 0x19e   : > { %4069 = vmatpush1.bf16.msra.mxu0 %v6379_v4  ;;  %v6462_v4 = vld [vmem:[#allocation5 + $0xc04] ss:$72 sps:$4 sm:$0xff]  }
 0x19f   : > { %4110 = vmatpush1.bf16.msra.mxu1 %v6382_v5  ;;  %4070 = vmatprep.subr.bf16.mxu0 %v6387_v8 }
 0x1a0   : > { %4111 = vmatprep.subr.bf16.mxu1 %v6390_v9 }
 0x1a2   : > { %4071 = vmatpush1.bf16.msra.mxu0 %v6385_v10  ;;  %v6457_v10 = vld [vmem:[#allocation5 + $0x300] ss:$72 sps:$4 sm:$0xff]  }
 0x1a3   : > { %4112 = vmatpush1.bf16.msra.mxu1 %v6388_v11  ;;  %4072 = vmatprep.subr.bf16.mxu0 %v6393_v12  ;;  %v6460_v11 = vld [vmem:[#allocation5 + $0xc00] ss:$72 sps:$4 sm:$0xff]  }
 0x1a4   : > { %4113 = vmatprep.subr.bf16.mxu1 %v6396_v13  ;;  %v6465_v13 = vld [vmem:[#allocation5 + $0x274] ss:$72 sps:$4 sm:$0xff]  }
 0x1a6   : > { %4073 = vmatpush1.bf16.msra.mxu0 %v6391_v14  ;;  %v6468_v14 = vld [vmem:[#allocation5 + $0xb74] ss:$72 sps:$4 sm:$0xff]  }
 0x1a7   : > { %4114 = vmatpush1.bf16.msra.mxu1 %v6394_v15  ;;  %4074 = vmatprep.subr.bf16.mxu0 %v6399_v16  ;;  %v6463_v16 = vld [vmem:[#allocation5 + $0x270] ss:$72 sps:$4 sm:$0xff]  }
 0x1a8   : > { %4115 = vmatprep.subr.bf16.mxu1 %v6402_v17  ;;  %v6466_v17 = vld [vmem:[#allocation5 + $0xb70] ss:$72 sps:$4 sm:$0xff]  }
 0x1aa   : > { %4075 = vmatpush2.bf16.msra.mxu0 %v6397_v18  ;;  %v6471_v18 = vld [vmem:[#allocation5 + $0x1e4] ss:$72 sps:$4 sm:$0xff]  }
 0x1ab   : > { %4116 = vmatpush2.bf16.msra.mxu1 %v6400_v19  ;;  %4076 = vmatprep.subr.bf16.mxu0 %v6405_v20  ;;  %v6474_v19 = vld [vmem:[#allocation5 + $0xae4] ss:$72 sps:$4 sm:$0xff]   ;;  %v6469_v20 = vld [vmem:[#allocation5 + $0x1e0] ss:$72 sps:$4 sm:$0xff]  }
 0x1ac   : > { %4117 = vmatprep.subr.bf16.mxu1 %v6408_v21  ;;  %v6472_v21 = vld [vmem:[#allocation5 + $0xae0] ss:$72 sps:$4 sm:$0xff]  }
 0x1ae   : > { %4077 = vmatpush2.bf16.msra.mxu0 %v6403_v22  ;;  %v6477_v22 = vld [vmem:[#allocation5 + $0x154] ss:$72 sps:$4 sm:$0xff]  }
 0x1af   : > { %4118 = vmatpush2.bf16.msra.mxu1 %v6406_v23  ;;  %4078 = vmatprep.subr.bf16.mxu0 %v6411_v24  ;;  %v6480_v23 = vld [vmem:[#allocation5 + $0xa54] ss:$72 sps:$4 sm:$0xff]   ;;  %v6475_v24 = vld [vmem:[#allocation5 + $0x150] ss:$72 sps:$4 sm:$0xff]  }
 0x1b0   : > { %4119 = vmatprep.subr.bf16.mxu1 %v6414_v25  ;;  %v6478_v25 = vld [vmem:[#allocation5 + $0xa50] ss:$72 sps:$4 sm:$0xff]  }
 0x1b2   : > { %4079 = vmatpush2.bf16.msra.mxu0 %v6409_v26  ;;  %v6483_v26 = vld [vmem:[#allocation5 + $0xc4] ss:$72 sps:$4 sm:$0xff]  }
 0x1b3   : > { %4120 = vmatpush2.bf16.msra.mxu1 %v6412_v27  ;;  %4080 = vmatprep.subr.bf16.mxu0 %v6417_v29  ;;  %v6486_v27 = vld [vmem:[#allocation5 + $0x9c4] ss:$72 sps:$4 sm:$0xff]   ;;  %v6481_v29 = vld [vmem:[#allocation5 + $0xc0] ss:$72 sps:$4 sm:$0xff]  }
 0x1b4   : > { %4121 = vmatprep.subr.bf16.mxu1 %v6420_v30  ;;  %v6484_v30 = vld [vmem:[#allocation5 + $0x9c0] ss:$72 sps:$4 sm:$0xff]  }
 0x1b6   : > { %4081 = vmatpush2.bf16.msra.mxu0 %v6415_v31  ;;  %v6489_v31 = vld [vmem:[#allocation5 + $0x34] ss:$72 sps:$4 sm:$0xff]  }
 0x1b7   : > { %4122 = vmatpush2.bf16.msra.mxu1 %v6418_v32  ;;  %4082 = vmatprep.subr.bf16.mxu0 %v6423_v34  ;;  %v6492_v32 = vld [vmem:[#allocation5 + $0x934] ss:$72 sps:$4 sm:$0xff]   ;;  %v6487_v34 = vld [vmem:[#allocation5 + $0x30] ss:$72 sps:$4 sm:$0xff]  }
 0x1b8   : > { %4123 = vmatprep.subr.bf16.mxu1 %v6426_v35  ;;  %v6490_v35 = vld [vmem:[#allocation5 + $0x930] ss:$72 sps:$4 sm:$0xff]  }
 0x1ba   : > { %4083 = vmatpush2.bf16.msra.mxu0 %v6421_v36  ;;  %v6495_v36 = vld [vmem:[#allocation5 + $0x8a4] ss:$72 sps:$4 sm:$0xff]  }
 0x1bb   : > { %4124 = vmatpush2.bf16.msra.mxu1 %v6424_v37  ;;  %4084 = vmatprep.subr.bf16.mxu0 %v6429_v38  ;;  %v6498_v37 = vld [vmem:[#allocation5 + $0x11a4] ss:$72 sps:$4 sm:$0xff]   ;;  %v6493_v38 = vld [vmem:[#allocation5 + $0x8a0] ss:$72 sps:$4 sm:$0xff]  }
 0x1bc   : > { %4125 = vmatprep.subr.bf16.mxu1 %v6432_v39  ;;  %v6496_v39 = vld [vmem:[#allocation5 + $0x11a0] ss:$72 sps:$4 sm:$0xff]  }
 0x1be   : > { %4085 = vmatpush2.bf16.msra.mxu0 %v6427_v40  ;;  %v6501_v40 = vld [vmem:[#allocation5 + $0x814] ss:$72 sps:$4 sm:$0xff]  }
 0x1bf   : > { %4126 = vmatpush2.bf16.msra.mxu1 %v6430_v41  ;;  %4086 = vmatprep.subr.bf16.mxu0 %v6435_v42  ;;  %v6504_v41 = vld [vmem:[#allocation5 + $0x1114] ss:$72 sps:$4 sm:$0xff]   ;;  %v6499_v42 = vld [vmem:[#allocation5 + $0x810] ss:$72 sps:$4 sm:$0xff]  }
 0x1c0   : > { %4127 = vmatprep.subr.bf16.mxu1 %v6438_v43  ;;  %v6502_v43 = vld [vmem:[#allocation5 + $0x1110] ss:$72 sps:$4 sm:$0xff]  }
 0x1c2   : > { %4087 = vmatpush2.bf16.msra.mxu0 %v6433_v45  ;;  %v6507_v45 = vld [vmem:[#allocation5 + $0x784] ss:$72 sps:$4 sm:$0xff]  }
 0x1c3   : > { %4128 = vmatpush2.bf16.msra.mxu1 %v6436_v46  ;;  %4088 = vmatprep.subr.bf16.mxu0 %v6441_v48  ;;  %v6510_v46 = vld [vmem:[#allocation5 + $0x1084] ss:$72 sps:$4 sm:$0xff]   ;;  %v6505_v48 = vld [vmem:[#allocation5 + $0x780] ss:$72 sps:$4 sm:$0xff]  }
 0x1c4   : > { %4129 = vmatprep.subr.bf16.mxu1 %v6444_v49  ;;  %v6508_v49 = vld [vmem:[#allocation5 + $0x1080] ss:$72 sps:$4 sm:$0xff]  }
 0x1c6   : > { %4089 = vmatpush2.bf16.msra.mxu0 %v6439_v52  ;;  %v6513_v52 = vld [vmem:[#allocation5 + $0x6f4] ss:$72 sps:$4 sm:$0xff]  }
 0x1c7   : > { %4130 = vmatpush2.bf16.msra.mxu1 %v6442_v53  ;;  %4140 = vmatprep.subr.bf16.mxu0 %v6447_v54  ;;  %v6516_v53 = vld [vmem:[#allocation5 + $0xff4] ss:$72 sps:$4 sm:$0xff]   ;;  %v6511_v54 = vld [vmem:[#allocation5 + $0x6f0] ss:$72 sps:$4 sm:$0xff]  }
 0x1c8   : > { %4181 = vmatprep.subr.bf16.mxu1 %v6450_v55  ;;  %v6514_v55 = vld [vmem:[#allocation5 + $0xff0] ss:$72 sps:$4 sm:$0xff]  }
 0x1c9   : > { %v3846_v60 = vpop.f32.mrf.mxu0  ;;  %4091 = vmatmul.mubr.bf16.vlgmr.msra.gmra.mxu0 %v7032_v6 }
 0x1ca   : > { %v3887_v61 = vpop.f32.mrf.mxu1  ;;  %4132 = vmatmul.mubr.bf16.vlgmr.msra.gmra.mxu1 %v7034_v7  ;;  %4141 = vmatpush1.bf16.msra.mxu0 %v6445_v56  ;;  %v6519_v56 = vld [vmem:[#allocation5 + $0x664] ss:$72 sps:$4 sm:$0xff]  }
 0x1cb   : > { %v7066_v62 = vadd.f32 %v3887_v61, %v3846_v60  ;;  %4182 = vmatpush1.bf16.msra.mxu1 %v6448_v57  ;;  %v3848_v1 = vpop.f32.mrf.mxu0  ;;  %4142 = vmatprep.subr.bf16.mxu0 %v6453_v58  ;;  %v6522_v57 = vld [vmem:[#allocation5 + $0xf64] ss:$72 sps:$4 sm:$0xff]   ;;  %v6517_v58 = vld [vmem:[#allocation5 + $0x660] ss:$72 sps:$4 sm:$0xff]   ;;  %v6525_v60 = vld [vmem:[#allocation5 + $0x5d4] ss:$72 sps:$4 sm:$0xff]  }
 0x1cc   : > { %v3889_v2 = vpop.f32.mrf.mxu1  ;;  %4183 = vmatprep.subr.bf16.mxu1 %v6456_v59  ;;  %4172 = vmatprep.mubr.bf16.mxu0 %v7025_v47  ;;  %v6520_v59 = vld [vmem:[#allocation5 + $0xf60] ss:$72 sps:$4 sm:$0xff]   ;;  %v6528_v61 = vld [vmem:[#allocation5 + $0xed4] ss:$72 sps:$4 sm:$0xff]  }
 0x1cd   : > { %v7068_v5 = vadd.f32 %v3889_v2, %v3848_v1  ;;  %4213 = vmatprep.mubr.bf16.mxu1 %v7028_v51  ;;  %v3850_v8 = vpop.f32.mrf.mxu0  ;;  %v6531_v1 = vld [vmem:[#allocation5 + $0x544] ss:$72 sps:$4 sm:$0xff]  }
 0x1ce   : > { %v3891_v9 = vpop.f32.mrf.mxu1  ;;  %4143 = vmatpush1.bf16.msra.mxu0 %v6451_v63  ;;  %v6523_v63 = vld [vmem:[#allocation5 + $0x5d0] ss:$72 sps:$4 sm:$0xff]   ;;  %v6534_v2 = vld [vmem:[#allocation5 + $0xe44] ss:$72 sps:$4 sm:$0xff]   ;;  %v6537_v8 = vld [vmem:[#allocation5 + $0x4b4] ss:$72 sps:$4 sm:$0xff]  }
 0x1cf   : > { %4184 = vmatpush1.bf16.msra.mxu1 %v6454_v0  ;;  %v3851_v12 = vpop.f32.mrf.mxu0  ;;  %4144 = vmatprep.subr.bf16.mxu0 %v6459_v3  ;;  %v6526_v0 = vld [vmem:[#allocation5 + $0xed0] ss:$72 sps:$4 sm:$0xff]   ;;  %v6529_v3 = vld [vmem:[#allocation5 + $0x540] ss:$72 sps:$4 sm:$0xff]   ;;  %v6540_v9 = vld [vmem:[#allocation5 + $0xdb4] ss:$72 sps:$4 sm:$0xff]  }
 0x1d0   : > { %4185 = vmatprep.subr.bf16.mxu1 %v6462_v4  ;;  %v3892_v15 = vpop.f32.mrf.mxu1  ;;  %v6532_v4 = vld [vmem:[#allocation5 + $0xe40] ss:$72 sps:$4 sm:$0xff]   ;;  %v6543_v12 = vld [vmem:[#allocation5 + $0x42c] ss:$72 sps:$4 sm:$0xff]  }
 0x1d1   : > { %v6544_v15 = vld [vmem:[#allocation5 + $0xd28] ss:$72 sps:$4 sm:$0xff]  }
 0x1d2   : > { %4145 = vmatpush1.bf16.msra.mxu0 %v6457_v10  ;;  %v6535_v10 = vld [vmem:[#allocation5 + $0x4b0] ss:$72 sps:$4 sm:$0xff]  }
 0x1d3   : > { %4186 = vmatpush1.bf16.msra.mxu1 %v6460_v11  ;;  %4146 = vmatprep.subr.bf16.mxu0 %v6465_v13  ;;  %v6538_v11 = vld [vmem:[#allocation5 + $0xdb0] ss:$72 sps:$4 sm:$0xff]   ;;  %v6546_v13 = vld [vmem:[#allocation5 + $0xd2c] ss:$72 sps:$4 sm:$0xff]  }
 0x1d4   : > { %4187 = vmatprep.subr.bf16.mxu1 %v6468_v14  ;;  %v6541_v14 = vld [vmem:[#allocation5 + $0x428] ss:$72 sps:$4 sm:$0xff]  }
 0x1d6   : > { %4147 = vmatpush1.bf16.msra.mxu0 %v6463_v16  ;;  %v6549_v16 = vld [vmem:[#allocation5 + $0x39c] ss:$72 sps:$4 sm:$0xff]  }
 0x1d7   : > { %4188 = vmatpush1.bf16.msra.mxu1 %v6466_v17  ;;  %4148 = vmatprep.subr.bf16.mxu0 %v6471_v18  ;;  %v6552_v17 = vld [vmem:[#allocation5 + $0xc9c] ss:$72 sps:$4 sm:$0xff]  }
 0x1d8   : > { %4189 = vmatprep.subr.bf16.mxu1 %v6474_v19 }
 0x1da   : > { %4149 = vmatpush1.bf16.msra.mxu0 %v6469_v20 }
 0x1db   : > { %4190 = vmatpush1.bf16.msra.mxu1 %v6472_v21  ;;  %4150 = vmatprep.subr.bf16.mxu0 %v6477_v22  ;;  %v6547_v21 = vld [vmem:[#allocation5 + $0x398] ss:$72 sps:$4 sm:$0xff]  }
 0x1dc   : > { %4191 = vmatprep.subr.bf16.mxu1 %v6480_v23  ;;  %v6550_v22 = vld [vmem:[#allocation5 + $0xc98] ss:$72 sps:$4 sm:$0xff]  }
 0x1de   : > { %4151 = vmatpush1.bf16.msra.mxu0 %v6475_v24 }
 0x1df   : > { %4192 = vmatpush1.bf16.msra.mxu1 %v6478_v25  ;;  %4152 = vmatprep.subr.bf16.mxu0 %v6483_v26  ;;  %v6555_v25 = vld [vmem:[#allocation5 + $0x30c] ss:$72 sps:$4 sm:$0xff]  }
 0x1e0   : > { %4193 = vmatprep.subr.bf16.mxu1 %v6486_v27  ;;  %v6558_v26 = vld [vmem:[#allocation5 + $0xc0c] ss:$72 sps:$4 sm:$0xff]  }
 0x1e2   : > { %4153 = vmatpush1.bf16.msra.mxu0 %v6481_v29 }
 0x1e3   : > { %4194 = vmatpush1.bf16.msra.mxu1 %v6484_v30  ;;  %4154 = vmatprep.subr.bf16.mxu0 %v6489_v31  ;;  %v6553_v31 = vld [vmem:[#allocation5 + $0x308] ss:$72 sps:$4 sm:$0xff]  }
 0x1e4   : > { %4195 = vmatprep.subr.bf16.mxu1 %v6492_v32  ;;  %v6556_v32 = vld [vmem:[#allocation5 + $0xc08] ss:$72 sps:$4 sm:$0xff]  }
 0x1e6   : > { %4155 = vmatpush1.bf16.msra.mxu0 %v6487_v34 }
 0x1e7   : > { %4196 = vmatpush1.bf16.msra.mxu1 %v6490_v35  ;;  %4156 = vmatprep.subr.bf16.mxu0 %v6495_v36  ;;  %v6561_v35 = vld [vmem:[#allocation5 + $0x27c] ss:$72 sps:$4 sm:$0xff]  }
 0x1e8   : > { %4197 = vmatprep.subr.bf16.mxu1 %v6498_v37  ;;  %v6564_v36 = vld [vmem:[#allocation5 + $0xb7c] ss:$72 sps:$4 sm:$0xff]  }
 0x1ea   : > { %4157 = vmatpush2.bf16.msra.mxu0 %v6493_v38  ;;  %v6559_v38 = vld [vmem:[#allocation5 + $0x278] ss:$72 sps:$4 sm:$0xff]  }
 0x1eb   : > { %4198 = vmatpush2.bf16.msra.mxu1 %v6496_v39  ;;  %4158 = vmatprep.subr.bf16.mxu0 %v6501_v40  ;;  %v6562_v39 = vld [vmem:[#allocation5 + $0xb78] ss:$72 sps:$4 sm:$0xff]   ;;  %v6567_v40 = vld [vmem:[#allocation5 + $0x1ec] ss:$72 sps:$4 sm:$0xff]  }
 0x1ec   : > { %4199 = vmatprep.subr.bf16.mxu1 %v6504_v41  ;;  %v6570_v41 = vld [vmem:[#allocation5 + $0xaec] ss:$72 sps:$4 sm:$0xff]  }
 0x1ee   : > { %4159 = vmatpush2.bf16.msra.mxu0 %v6499_v42  ;;  %v6565_v42 = vld [vmem:[#allocation5 + $0x1e8] ss:$72 sps:$4 sm:$0xff]  }
 0x1ef   : > { %4200 = vmatpush2.bf16.msra.mxu1 %v6502_v43  ;;  %4160 = vmatprep.subr.bf16.mxu0 %v6507_v45  ;;  %v6568_v43 = vld [vmem:[#allocation5 + $0xae8] ss:$72 sps:$4 sm:$0xff]   ;;  %v6573_v45 = vld [vmem:[#allocation5 + $0x15c] ss:$72 sps:$4 sm:$0xff]  }
 0x1f0   : > { %4201 = vmatprep.subr.bf16.mxu1 %v6510_v46  ;;  %v6576_v46 = vld [vmem:[#allocation5 + $0xa5c] ss:$72 sps:$4 sm:$0xff]  }
 0x1f2   : > { %4161 = vmatpush2.bf16.msra.mxu0 %v6505_v48  ;;  %v6571_v48 = vld [vmem:[#allocation5 + $0x158] ss:$72 sps:$4 sm:$0xff]  }
 0x1f3   : > { %4202 = vmatpush2.bf16.msra.mxu1 %v6508_v49  ;;  %4162 = vmatprep.subr.bf16.mxu0 %v6513_v52  ;;  %v6574_v49 = vld [vmem:[#allocation5 + $0xa58] ss:$72 sps:$4 sm:$0xff]   ;;  %v6579_v52 = vld [vmem:[#allocation5 + $0xcc] ss:$72 sps:$4 sm:$0xff]  }
 0x1f4   : > { %4203 = vmatprep.subr.bf16.mxu1 %v6516_v53  ;;  %v6582_v53 = vld [vmem:[#allocation5 + $0x9cc] ss:$72 sps:$4 sm:$0xff]  }
 0x1f6   : > { %4163 = vmatpush2.bf16.msra.mxu0 %v6511_v54  ;;  %v6577_v54 = vld [vmem:[#allocation5 + $0xc8] ss:$72 sps:$4 sm:$0xff]  }
 0x1f7   : > { %4204 = vmatpush2.bf16.msra.mxu1 %v6514_v55  ;;  %4164 = vmatprep.subr.bf16.mxu0 %v6519_v56  ;;  %v6580_v55 = vld [vmem:[#allocation5 + $0x9c8] ss:$72 sps:$4 sm:$0xff]   ;;  %v6585_v56 = vld [vmem:[#allocation5 + $0x3c] ss:$72 sps:$4 sm:$0xff]  }
 0x1f8   : > { %4205 = vmatprep.subr.bf16.mxu1 %v6522_v57  ;;  %v6588_v57 = vld [vmem:[#allocation5 + $0x93c] ss:$72 sps:$4 sm:$0xff]  }
 0x1fa   : > { %4165 = vmatpush2.bf16.msra.mxu0 %v6517_v58  ;;  %v6583_v58 = vld [vmem:[#allocation5 + $0x38] ss:$72 sps:$4 sm:$0xff]  }
 0x1fb   : > { %4206 = vmatpush2.bf16.msra.mxu1 %v6520_v59  ;;  %4166 = vmatprep.subr.bf16.mxu0 %v6525_v60  ;;  %v6586_v59 = vld [vmem:[#allocation5 + $0x938] ss:$72 sps:$4 sm:$0xff]   ;;  %v6591_v60 = vld [vmem:[#allocation5 + $0x8ac] ss:$72 sps:$4 sm:$0xff]  }
 0x1fc   : > { %4207 = vmatprep.subr.bf16.mxu1 %v6528_v61  ;;  %v6594_v61 = vld [vmem:[#allocation5 + $0x11ac] ss:$72 sps:$4 sm:$0xff]  }
 0x1fe   : > { %4167 = vmatpush2.bf16.msra.mxu0 %v6523_v63  ;;  %v6589_v63 = vld [vmem:[#allocation5 + $0x8a8] ss:$72 sps:$4 sm:$0xff]  }
 0x1ff   : > { %4208 = vmatpush2.bf16.msra.mxu1 %v6526_v0  ;;  %4168 = vmatprep.subr.bf16.mxu0 %v6531_v1  ;;  %v6592_v0 = vld [vmem:[#allocation5 + $0x11a8] ss:$72 sps:$4 sm:$0xff]   ;;  %v6597_v1 = vld [vmem:[#allocation5 + $0x81c] ss:$72 sps:$4 sm:$0xff]  }
 0x200   : > { %4209 = vmatprep.subr.bf16.mxu1 %v6534_v2  ;;  %v6600_v2 = vld [vmem:[#allocation5 + $0x111c] ss:$72 sps:$4 sm:$0xff]  }
 0x202   : > { %4169 = vmatpush2.bf16.msra.mxu0 %v6529_v3  ;;  %v6595_v3 = vld [vmem:[#allocation5 + $0x818] ss:$72 sps:$4 sm:$0xff]  }
 0x203   : > { %4210 = vmatpush2.bf16.msra.mxu1 %v6532_v4  ;;  %4170 = vmatprep.subr.bf16.mxu0 %v6537_v8  ;;  %v6598_v4 = vld [vmem:[#allocation5 + $0x1118] ss:$72 sps:$4 sm:$0xff]   ;;  %v6603_v8 = vld [vmem:[#allocation5 + $0x78c] ss:$72 sps:$4 sm:$0xff]  }
 0x204   : > { %4211 = vmatprep.subr.bf16.mxu1 %v6540_v9  ;;  %v6606_v9 = vld [vmem:[#allocation5 + $0x108c] ss:$72 sps:$4 sm:$0xff]  }
 0x206   : > { %4171 = vmatpush2.bf16.msra.mxu0 %v6535_v10  ;;  %v6601_v10 = vld [vmem:[#allocation5 + $0x788] ss:$72 sps:$4 sm:$0xff]  }
 0x207   : > { %4212 = vmatpush2.bf16.msra.mxu1 %v6538_v11  ;;  %4222 = vmatprep.subr.bf16.mxu0 %v6543_v12  ;;  %v6604_v11 = vld [vmem:[#allocation5 + $0x1088] ss:$72 sps:$4 sm:$0xff]   ;;  %v6609_v12 = vld [vmem:[#allocation5 + $0x6fc] ss:$72 sps:$4 sm:$0xff]  }
 0x208   : > { %4263 = vmatprep.subr.bf16.mxu1 %v6546_v13  ;;  %v6612_v13 = vld [vmem:[#allocation5 + $0xffc] ss:$72 sps:$4 sm:$0xff]  }
 0x209   : > { %v3928_v18 = vpop.f32.mrf.mxu0  ;;  %4173 = vmatmul.mubr.bf16.vlgmr.msra.gmra.mxu0 %v7032_v6 }
 0x20a   : > { %v3969_v19 = vpop.f32.mrf.mxu1  ;;  %4214 = vmatmul.mubr.bf16.vlgmr.msra.gmra.mxu1 %v7034_v7  ;;  %4223 = vmatpush1.bf16.msra.mxu0 %v6541_v14  ;;  %v6607_v14 = vld [vmem:[#allocation5 + $0x6f8] ss:$72 sps:$4 sm:$0xff]  }
 0x20b   : > { %v7074_v20 = vadd.f32 %v3969_v19, %v3928_v18  ;;  %4264 = vmatpush1.bf16.msra.mxu1 %v6544_v15  ;;  %v3930_v23 = vpop.f32.mrf.mxu0  ;;  %4224 = vmatprep.subr.bf16.mxu0 %v6549_v16  ;;  %v6610_v15 = vld [vmem:[#allocation5 + $0xff8] ss:$72 sps:$4 sm:$0xff]   ;;  %v6615_v16 = vld [vmem:[#allocation5 + $0x66c] ss:$72 sps:$4 sm:$0xff]   ;;  %v6613_v18 = vld [vmem:[#allocation5 + $0x668] ss:$72 sps:$4 sm:$0xff]  }
 0x20c   : > { %v3971_v24 = vpop.f32.mrf.mxu1  ;;  %4265 = vmatprep.subr.bf16.mxu1 %v6552_v17  ;;  %4254 = vmatprep.mubr.bf16.mxu0 %v7025_v47  ;;  %v6618_v17 = vld [vmem:[#allocation5 + $0xf6c] ss:$72 sps:$4 sm:$0xff]   ;;  %v6616_v19 = vld [vmem:[#allocation5 + $0xf68] ss:$72 sps:$4 sm:$0xff]  }
 0x20d   : > { %v7076_v27 = vadd.f32 %v3971_v24, %v3930_v23  ;;  %4295 = vmatprep.mubr.bf16.mxu1 %v7028_v51  ;;  %v3932_v29 = vpop.f32.mrf.mxu0  ;;  %v6619_v23 = vld [vmem:[#allocation5 + $0x5d8] ss:$72 sps:$4 sm:$0xff]  }
 0x20e   : > { %v3973_v30 = vpop.f32.mrf.mxu1  ;;  %4225 = vmatpush1.bf16.msra.mxu0 %v6547_v21  ;;  %v6621_v21 = vld [vmem:[#allocation5 + $0x5dc] ss:$72 sps:$4 sm:$0xff]   ;;  %v6622_v24 = vld [vmem:[#allocation5 + $0xed8] ss:$72 sps:$4 sm:$0xff]   ;;  %v6625_v29 = vld [vmem:[#allocation5 + $0x548] ss:$72 sps:$4 sm:$0xff]  }
 0x20f   : > { %4266 = vmatpush1.bf16.msra.mxu1 %v6550_v22  ;;  %v3933_v34 = vpop.f32.mrf.mxu0  ;;  %4226 = vmatprep.subr.bf16.mxu0 %v6555_v25  ;;  %v6624_v22 = vld [vmem:[#allocation5 + $0xedc] ss:$72 sps:$4 sm:$0xff]   ;;  %v6627_v25 = vld [vmem:[#allocation5 + $0x54c] ss:$72 sps:$4 sm:$0xff]   ;;  %v6628_v30 = vld [vmem:[#allocation5 + $0xe48] ss:$72 sps:$4 sm:$0xff]  }
 0x210   : > { %4267 = vmatprep.subr.bf16.mxu1 %v6558_v26  ;;  %v3974_v37 = vpop.f32.mrf.mxu1  ;;  %v6630_v26 = vld [vmem:[#allocation5 + $0xe4c] ss:$72 sps:$4 sm:$0xff]   ;;  %v6631_v34 = vld [vmem:[#allocation5 + $0x4b8] ss:$72 sps:$4 sm:$0xff]  }
 0x211   : > { %v6642_v37 = vld [vmem:[#allocation5 + $0xd34] ss:$72 sps:$4 sm:$0xff]  }
 0x212   : > { %4227 = vmatpush1.bf16.msra.mxu0 %v6553_v31  ;;  %v6633_v31 = vld [vmem:[#allocation5 + $0x4bc] ss:$72 sps:$4 sm:$0xff]  }
 0x213   : > { %4268 = vmatpush1.bf16.msra.mxu1 %v6556_v32  ;;  %4228 = vmatprep.subr.bf16.mxu0 %v6561_v35  ;;  %v6636_v32 = vld [vmem:[#allocation5 + $0xdbc] ss:$72 sps:$4 sm:$0xff]   ;;  %v6634_v35 = vld [vmem:[#allocation5 + $0xdb8] ss:$72 sps:$4 sm:$0xff]  }
 0x214   : > { %4269 = vmatprep.subr.bf16.mxu1 %v6564_v36  ;;  %v6639_v36 = vld [vmem:[#allocation5 + $0x434] ss:$72 sps:$4 sm:$0xff]  }
 0x216   : > { %4229 = vmatpush1.bf16.msra.mxu0 %v6559_v38  ;;  %v6637_v38 = vld [vmem:[#allocation5 + $0x430] ss:$72 sps:$4 sm:$0xff]  }
 0x217   : > { %4270 = vmatpush1.bf16.msra.mxu1 %v6562_v39  ;;  %4230 = vmatprep.subr.bf16.mxu0 %v6567_v40  ;;  %v6640_v39 = vld [vmem:[#allocation5 + $0xd30] ss:$72 sps:$4 sm:$0xff]   ;;  %v6645_v40 = vld [vmem:[#allocation5 + $0x3a4] ss:$72 sps:$4 sm:$0xff]  }
 0x218   : > { %4271 = vmatprep.subr.bf16.mxu1 %v6570_v41  ;;  %v6648_v41 = vld [vmem:[#allocation5 + $0xca4] ss:$72 sps:$4 sm:$0xff]  }
 0x21a   : > { %4231 = vmatpush1.bf16.msra.mxu0 %v6565_v42 }
 0x21b   : > { %4272 = vmatpush1.bf16.msra.mxu1 %v6568_v43  ;;  %4232 = vmatprep.subr.bf16.mxu0 %v6573_v45 }
 0x21c   : > { %4273 = vmatprep.subr.bf16.mxu1 %v6576_v46  ;;  %v6643_v46 = vld [vmem:[#allocation5 + $0x3a0] ss:$72 sps:$4 sm:$0xff]  }
 0x21e   : > { %4233 = vmatpush1.bf16.msra.mxu0 %v6571_v48  ;;  %v6646_v48 = vld [vmem:[#allocation5 + $0xca0] ss:$72 sps:$4 sm:$0xff]  }
 0x21f   : > { %4274 = vmatpush1.bf16.msra.mxu1 %v6574_v49  ;;  %4234 = vmatprep.subr.bf16.mxu0 %v6579_v52 }
 0x220   : > { %4275 = vmatprep.subr.bf16.mxu1 %v6582_v53  ;;  %v6651_v53 = vld [vmem:[#allocation5 + $0x314] ss:$72 sps:$4 sm:$0xff]  }
 0x222   : > { %4235 = vmatpush1.bf16.msra.mxu0 %v6577_v54  ;;  %v6654_v54 = vld [vmem:[#allocation5 + $0xc14] ss:$72 sps:$4 sm:$0xff]  }
 0x223   : > { %4276 = vmatpush1.bf16.msra.mxu1 %v6580_v55  ;;  %4236 = vmatprep.subr.bf16.mxu0 %v6585_v56 }
 0x224   : > { %4277 = vmatprep.subr.bf16.mxu1 %v6588_v57 }
 0x226   : > { %4237 = vmatpush1.bf16.msra.mxu0 %v6583_v58  ;;  %v6649_v58 = vld [vmem:[#allocation5 + $0x310] ss:$72 sps:$4 sm:$0xff]  }
 0x227   : > { %4278 = vmatpush1.bf16.msra.mxu1 %v6586_v59  ;;  %4238 = vmatprep.subr.bf16.mxu0 %v6591_v60  ;;  %v6652_v59 = vld [vmem:[#allocation5 + $0xc10] ss:$72 sps:$4 sm:$0xff]  }
 0x228   : > { %4279 = vmatprep.subr.bf16.mxu1 %v6594_v61  ;;  %v6657_v61 = vld [vmem:[#allocation5 + $0x284] ss:$72 sps:$4 sm:$0xff]  }
 0x22a   : > { %4239 = vmatpush2.bf16.msra.mxu0 %v6589_v63  ;;  %v6660_v63 = vld [vmem:[#allocation5 + $0xb84] ss:$72 sps:$4 sm:$0xff]  }
 0x22b   : > { %4280 = vmatpush2.bf16.msra.mxu1 %v6592_v0  ;;  %4240 = vmatprep.subr.bf16.mxu0 %v6597_v1  ;;  %v6655_v1 = vld [vmem:[#allocation5 + $0x280] ss:$72 sps:$4 sm:$0xff]  }
 0x22c   : > { %4281 = vmatprep.subr.bf16.mxu1 %v6600_v2  ;;  %v6658_v2 = vld [vmem:[#allocation5 + $0xb80] ss:$72 sps:$4 sm:$0xff]  }
 0x22e   : > { %4241 = vmatpush2.bf16.msra.mxu0 %v6595_v3  ;;  %v6661_v3 = vld [vmem:[#allocation5 + $0x1f0] ss:$72 sps:$4 sm:$0xff]  }
 0x22f   : > { %4282 = vmatpush2.bf16.msra.mxu1 %v6598_v4  ;;  %4242 = vmatprep.subr.bf16.mxu0 %v6603_v8  ;;  %v6664_v4 = vld [vmem:[#allocation5 + $0xaf0] ss:$72 sps:$4 sm:$0xff]   ;;  %v6669_v8 = vld [vmem:[#allocation5 + $0x164] ss:$72 sps:$4 sm:$0xff]  }
 0x230   : > { %4283 = vmatprep.subr.bf16.mxu1 %v6606_v9  ;;  %v6672_v9 = vld [vmem:[#allocation5 + $0xa64] ss:$72 sps:$4 sm:$0xff]  }
 0x232   : > { %4243 = vmatpush2.bf16.msra.mxu0 %v6601_v10  ;;  %v6667_v10 = vld [vmem:[#allocation5 + $0x160] ss:$72 sps:$4 sm:$0xff]  }
 0x233   : > { %4284 = vmatpush2.bf16.msra.mxu1 %v6604_v11  ;;  %4244 = vmatprep.subr.bf16.mxu0 %v6609_v12  ;;  %v6670_v11 = vld [vmem:[#allocation5 + $0xa60] ss:$72 sps:$4 sm:$0xff]   ;;  %v6675_v12 = vld [vmem:[#allocation5 + $0xd4] ss:$72 sps:$4 sm:$0xff]  }
 0x234   : > { %4285 = vmatprep.subr.bf16.mxu1 %v6612_v13  ;;  %v6678_v13 = vld [vmem:[#allocation5 + $0x9d4] ss:$72 sps:$4 sm:$0xff]  }
 0x236   : > { %4245 = vmatpush2.bf16.msra.mxu0 %v6607_v14  ;;  %v6673_v14 = vld [vmem:[#allocation5 + $0xd0] ss:$72 sps:$4 sm:$0xff]  }
 0x237   : > { %4286 = vmatpush2.bf16.msra.mxu1 %v6610_v15  ;;  %4246 = vmatprep.subr.bf16.mxu0 %v6615_v16  ;;  %v6676_v15 = vld [vmem:[#allocation5 + $0x9d0] ss:$72 sps:$4 sm:$0xff]   ;;  %v6681_v16 = vld [vmem:[#allocation5 + $0x44] ss:$72 sps:$4 sm:$0xff]  }
 0x238   : > { %4287 = vmatprep.subr.bf16.mxu1 %v6618_v17  ;;  %v6684_v17 = vld [vmem:[#allocation5 + $0x944] ss:$72 sps:$4 sm:$0xff]  }
 0x23a   : > { %4247 = vmatpush2.bf16.msra.mxu0 %v6613_v18  ;;  %v6679_v18 = vld [vmem:[#allocation5 + $0x40] ss:$72 sps:$4 sm:$0xff]  }
 0x23b   : > { %4288 = vmatpush2.bf16.msra.mxu1 %v6616_v19  ;;  %4248 = vmatprep.subr.bf16.mxu0 %v6621_v21  ;;  %v6682_v19 = vld [vmem:[#allocation5 + $0x940] ss:$72 sps:$4 sm:$0xff]   ;;  %v6687_v21 = vld [vmem:[#allocation5 + $0x8b4] ss:$72 sps:$4 sm:$0xff]  }
 0x23c   : > { %4289 = vmatprep.subr.bf16.mxu1 %v6624_v22  ;;  %v6690_v22 = vld [vmem:[#allocation5 + $0x11b4] ss:$72 sps:$4 sm:$0xff]  }
 0x23e   : > { %4249 = vmatpush2.bf16.msra.mxu0 %v6619_v23  ;;  %v6685_v23 = vld [vmem:[#allocation5 + $0x8b0] ss:$72 sps:$4 sm:$0xff]  }
 0x23f   : > { %4290 = vmatpush2.bf16.msra.mxu1 %v6622_v24  ;;  %4250 = vmatprep.subr.bf16.mxu0 %v6627_v25  ;;  %v6688_v24 = vld [vmem:[#allocation5 + $0x11b0] ss:$72 sps:$4 sm:$0xff]   ;;  %v6693_v25 = vld [vmem:[#allocation5 + $0x824] ss:$72 sps:$4 sm:$0xff]  }
 0x240   : > { %4291 = vmatprep.subr.bf16.mxu1 %v6630_v26  ;;  %v6696_v26 = vld [vmem:[#allocation5 + $0x1124] ss:$72 sps:$4 sm:$0xff]  }
 0x242   : > { %4251 = vmatpush2.bf16.msra.mxu0 %v6625_v29  ;;  %v6691_v29 = vld [vmem:[#allocation5 + $0x820] ss:$72 sps:$4 sm:$0xff]  }
 0x243   : > { %4292 = vmatpush2.bf16.msra.mxu1 %v6628_v30  ;;  %4252 = vmatprep.subr.bf16.mxu0 %v6633_v31  ;;  %v6694_v30 = vld [vmem:[#allocation5 + $0x1120] ss:$72 sps:$4 sm:$0xff]   ;;  %v6699_v31 = vld [vmem:[#allocation5 + $0x794] ss:$72 sps:$4 sm:$0xff]  }
 0x244   : > { %4293 = vmatprep.subr.bf16.mxu1 %v6636_v32  ;;  %v6702_v32 = vld [vmem:[#allocation5 + $0x1094] ss:$72 sps:$4 sm:$0xff]  }
 0x246   : > { %4253 = vmatpush2.bf16.msra.mxu0 %v6631_v34  ;;  %v6697_v34 = vld [vmem:[#allocation5 + $0x790] ss:$72 sps:$4 sm:$0xff]  }
 0x247   : > { %4294 = vmatpush2.bf16.msra.mxu1 %v6634_v35  ;;  %4304 = vmatprep.subr.bf16.mxu0 %v6639_v36  ;;  %v6700_v35 = vld [vmem:[#allocation5 + $0x1090] ss:$72 sps:$4 sm:$0xff]   ;;  %v6705_v36 = vld [vmem:[#allocation5 + $0x704] ss:$72 sps:$4 sm:$0xff]  }
 0x248   : > { %4345 = vmatprep.subr.bf16.mxu1 %v6642_v37  ;;  %v6708_v37 = vld [vmem:[#allocation5 + $0x1004] ss:$72 sps:$4 sm:$0xff]  }
 0x249   : > { %v4010_v42 = vpop.f32.mrf.mxu0  ;;  %4255 = vmatmul.mubr.bf16.vlgmr.msra.gmra.mxu0 %v7032_v6 }
 0x24a   : > { %v4051_v43 = vpop.f32.mrf.mxu1  ;;  %4296 = vmatmul.mubr.bf16.vlgmr.msra.gmra.mxu1 %v7034_v7  ;;  %4305 = vmatpush1.bf16.msra.mxu0 %v6637_v38  ;;  %v6703_v38 = vld [vmem:[#allocation5 + $0x700] ss:$72 sps:$4 sm:$0xff]  }
 0x24b   : > { %v7082_v45 = vadd.f32 %v4051_v43, %v4010_v42  ;;  %4346 = vmatpush1.bf16.msra.mxu1 %v6640_v39  ;;  %v4012_v49 = vpop.f32.mrf.mxu0  ;;  %4306 = vmatprep.subr.bf16.mxu0 %v6645_v40  ;;  %v6706_v39 = vld [vmem:[#allocation5 + $0x1000] ss:$72 sps:$4 sm:$0xff]   ;;  %v6711_v40 = vld [vmem:[#allocation5 + $0x674] ss:$72 sps:$4 sm:$0xff]   ;;  %v6709_v42 = vld [vmem:[#allocation5 + $0x670] ss:$72 sps:$4 sm:$0xff]  }
 0x24c   : > { %v4053_v52 = vpop.f32.mrf.mxu1  ;;  %4347 = vmatprep.subr.bf16.mxu1 %v6648_v41  ;;  %4336 = vmatprep.mubr.bf16.mxu0 %v7025_v47  ;;  %v6663_v47 = vld [vmem:[#allocation5 + $0x1f4] ss:$72 sps:$4 sm:$0xff]   ;;  %v6712_v43 = vld [vmem:[#allocation5 + $0xf70] ss:$72 sps:$4 sm:$0xff]  }
 0x24d   : > { %v7084_v55 = vadd.f32 %v4053_v52, %v4012_v49  ;;  %4377 = vmatprep.mubr.bf16.mxu1 %v7028_v51  ;;  %v4014_v56 = vpop.f32.mrf.mxu0  ;;  %v6666_v51 = vld [vmem:[#allocation5 + $0xaf4] ss:$72 sps:$4 sm:$0xff]   ;;  %v6715_v49 = vld [vmem:[#allocation5 + $0x5e0] ss:$72 sps:$4 sm:$0xff]  }
 0x24e   : > { %v4055_v57 = vpop.f32.mrf.mxu1  ;;  %4307 = vmatpush1.bf16.msra.mxu0 %v6643_v46  ;;  %v6714_v41 = vld [vmem:[#allocation5 + $0xf74] ss:$72 sps:$4 sm:$0xff]   ;;  %v6717_v46 = vld [vmem:[#allocation5 + $0x5e4] ss:$72 sps:$4 sm:$0xff]   ;;  %v6718_v52 = vld [vmem:[#allocation5 + $0xee0] ss:$72 sps:$4 sm:$0xff]  }
 0x24f   : > { %4348 = vmatpush1.bf16.msra.mxu1 %v6646_v48  ;;  %v4015_v60 = vpop.f32.mrf.mxu0  ;;  %4308 = vmatprep.subr.bf16.mxu0 %v6651_v53  ;;  %v6720_v48 = vld [vmem:[#allocation5 + $0xee4] ss:$72 sps:$4 sm:$0xff]   ;;  %v6723_v53 = vld [vmem:[#allocation5 + $0x554] ss:$72 sps:$4 sm:$0xff]   ;;  %v6721_v56 = vld [vmem:[#allocation5 + $0x550] ss:$72 sps:$4 sm:$0xff]  }
 0x250   : > { %4349 = vmatprep.subr.bf16.mxu1 %v6654_v54  ;;  %v4056_v0 = vpop.f32.mrf.mxu1  ;;  %v6726_v54 = vld [vmem:[#allocation5 + $0xe54] ss:$72 sps:$4 sm:$0xff]   ;;  %v6724_v57 = vld [vmem:[#allocation5 + $0xe50] ss:$72 sps:$4 sm:$0xff]   ;;  %v6727_v60 = vld [vmem:[#allocation5 + $0x4c0] ss:$72 sps:$4 sm:$0xff]  }
 0x251   : > { %v4392_v0 = vpack.c.bf16 %v7074_v20, %v7074_v20 }
 0x252   : > { %4309 = vmatpush1.bf16.msra.mxu0 %v6649_v58  ;;  %v6729_v58 = vld [vmem:[#allocation5 + $0x4c4] ss:$72 sps:$4 sm:$0xff]  }
 0x253   : > { %4350 = vmatpush1.bf16.msra.mxu1 %v6652_v59  ;;  %4310 = vmatprep.subr.bf16.mxu0 %v6657_v61  ;;  %v6732_v59 = vld [vmem:[#allocation5 + $0xdc4] ss:$72 sps:$4 sm:$0xff]   ;;  %v6730_v61 = vld [vmem:[#allocation5 + $0xdc0] ss:$72 sps:$4 sm:$0xff]  }
 0x254   : > { %4351 = vmatprep.subr.bf16.mxu1 %v6660_v63  ;;  %v6885_v63 = vmov 0.0  }
 0x256   : > { %4311 = vmatpush1.bf16.msra.mxu0 %v6655_v1 }
 0x257   : > { %4352 = vmatpush1.bf16.msra.mxu1 %v6658_v2  ;;  %4312 = vmatprep.subr.bf16.mxu0 %v6663_v47 }
 0x258   : > { %4353 = vmatprep.subr.bf16.mxu1 %v6666_v51 }
 0x25a   : > { %4313 = vmatpush1.bf16.msra.mxu0 %v6661_v3 }
 0x25b   : > { %4354 = vmatpush1.bf16.msra.mxu1 %v6664_v4  ;;  %4314 = vmatprep.subr.bf16.mxu0 %v6669_v8  ;;  %v4386_v4 = vpack.c.bf16 %v7050_v28, %v7050_v28  ;;  %v4388_v28 = vpack.c.bf16 %v7058_v44, %v7058_v44 }
 0x25c   : > { %4355 = vmatprep.subr.bf16.mxu1 %v6672_v9  ;;  %v4387_v9 = vpack.c.bf16 %v7052_v33, %v7052_v33 }
 0x25e   : > { %4315 = vmatpush1.bf16.msra.mxu0 %v6667_v10  ;;  %v4394_v10 = vpack.c.bf16 %v7082_v45, %v7082_v45  ;;  %v4389_v45 = vpack.c.bf16 %v7060_v50, %v7060_v50  ;;  %v4391_v50 = vpack.c.bf16 %v7068_v5, %v7068_v5 }
 0x25f   : > { %4356 = vmatpush1.bf16.msra.mxu1 %v6670_v11  ;;  %4316 = vmatprep.subr.bf16.mxu0 %v6675_v12 }
 0x260   : > { %4357 = vmatprep.subr.bf16.mxu1 %v6678_v13 }
 0x262   : > { %4317 = vmatpush1.bf16.msra.mxu0 %v6673_v14 }
 0x263   : > { %4358 = vmatpush1.bf16.msra.mxu1 %v6676_v15  ;;  %4318 = vmatprep.subr.bf16.mxu0 %v6681_v16 }
 0x264   : > { %4359 = vmatprep.subr.bf16.mxu1 %v6684_v17 }
 0x266   : > { %4319 = vmatpush1.bf16.msra.mxu0 %v6679_v18 }
 0x267   : > { %4360 = vmatpush1.bf16.msra.mxu1 %v6682_v19  ;;  %4320 = vmatprep.subr.bf16.mxu0 %v6687_v21 }
 0x268   : > { %4361 = vmatprep.subr.bf16.mxu1 %v6690_v22 }
 0x26a   : > { %4321 = vmatpush2.bf16.msra.mxu0 %v6685_v23 }
 0x26b   : > { %4362 = vmatpush2.bf16.msra.mxu1 %v6688_v24  ;;  %4322 = vmatprep.subr.bf16.mxu0 %v6693_v25 }
 0x26c   : > { %4363 = vmatprep.subr.bf16.mxu1 %v6696_v26 }
 0x26e   : > { %4323 = vmatpush2.bf16.msra.mxu0 %v6691_v29 }
 0x26f   : > { %4364 = vmatpush2.bf16.msra.mxu1 %v6694_v30  ;;  %4324 = vmatprep.subr.bf16.mxu0 %v6699_v31 }
 0x270   : > { %4365 = vmatprep.subr.bf16.mxu1 %v6702_v32 }
 0x272   : > { %4325 = vmatpush2.bf16.msra.mxu0 %v6697_v34 }
 0x273   : > { %4366 = vmatpush2.bf16.msra.mxu1 %v6700_v35  ;;  %4326 = vmatprep.subr.bf16.mxu0 %v6705_v36 }
 0x274   : > { %4367 = vmatprep.subr.bf16.mxu1 %v6708_v37  ;;  %v4404_v37 = vlaneseq }
 0x276   : > { %4327 = vmatpush2.bf16.msra.mxu0 %v6703_v38 }
 0x277   : > { %4368 = vmatpush2.bf16.msra.mxu1 %v6706_v39  ;;  %4328 = vmatprep.subr.bf16.mxu0 %v6711_v40 }
 0x278   : > { %4369 = vmatprep.subr.bf16.mxu1 %v6714_v41 }
 0x27a   : > { %4329 = vmatpush2.bf16.msra.mxu0 %v6709_v42 }
 0x27b   : > { %4370 = vmatpush2.bf16.msra.mxu1 %v6712_v43  ;;  %4330 = vmatprep.subr.bf16.mxu0 %v6717_v46  ;;  %v4405_v43 = vshrl.u32 %v4404_v37, 7  ;;  %v4407_v46 = vand.u32 127, %v4404_v37 }
 0x27c   : > { %4371 = vmatprep.subr.bf16.mxu1 %v6720_v48 }
 0x27d   : > { %vm7143_vm2 = vcmp.le.s32.totalorder %v4407_v46, %v4405_v43 }
 0x27e   : > { %4331 = vmatpush2.bf16.msra.mxu0 %v6715_v49 }
 0x27f   : > { %4372 = vmatpush2.bf16.msra.mxu1 %v6718_v52  ;;  %4332 = vmatprep.subr.bf16.mxu0 %v6723_v53 }
 0x280   : > { %4373 = vmatprep.subr.bf16.mxu1 %v6726_v54 }
 0x282   : > { %4333 = vmatpush2.bf16.msra.mxu0 %v6721_v56 }
 0x283   : > { %4374 = vmatpush2.bf16.msra.mxu1 %v6724_v57  ;;  %4334 = vmatprep.subr.bf16.mxu0 %v6729_v58 }
 0x284   : > { %4375 = vmatprep.subr.bf16.mxu1 %v6732_v59 }
 0x286   : > { %4335 = vmatpush2.bf16.msra.mxu0 %v6727_v60 }
 0x287   : > { %4376 = vmatpush2.bf16.msra.mxu1 %v6730_v61  ;;  %5730 = vmatprep.subr.bf16.mxu0 %v6885_v63 }
 0x288   : > { %5736 = vmatprep.subr.bf16.mxu1 %v6885_v63 }
 0x289   : > { %v4092_v1 = vpop.f32.mrf.mxu0  ;;  %4337 = vmatmul.mubr.bf16.vlgmr.msra.gmra.mxu0 %v7032_v6 }
 0x28a   : > { %v4133_v2 = vpop.f32.mrf.mxu1  ;;  %4378 = vmatmul.mubr.bf16.vlgmr.msra.gmra.mxu1 %v7034_v7  ;;  %5731 = vmatpush3.bf16.xpose.msra.mxu0 %v4392_v0  ;;  %v4393_v7 = vpack.c.bf16 %v7076_v27, %v7076_v27  ;;  %v4395_v27 = vpack.c.bf16 %v7084_v55, %v7084_v55  ;;  %v4390_v55 = vpack.c.bf16 %v7066_v62, %v7066_v62 }
 0x28b   : > { %5732 = vmatprep.mubr.msk.bf16.mxu0 %vm6886_vm0, %v6885_v63  ;;  %v4094_v47 = vpop.f32.mrf.mxu0  ;;  %5742 = vmatprep.subr.bf16.mxu0 %v6885_v63  ;;  %v4134_v33 = vadd.f32 %v4133_v2, %v4092_v1 }
 0x28c   : > { %v4135_v51 = vpop.f32.mrf.mxu1  ;;  %5738 = vmatprep.mubr.msk.bf16.mxu1 %vm6886_vm0, %v6885_v63 }
 0x28d   : > { %v4096_v3 = vpop.f32.mrf.mxu0  ;;  %v4396_v11 = vpack.c.bf16 %v4134_v33, %v4134_v33  ;;  %v4136_v44 = vadd.f32 %v4135_v51, %v4094_v47 }
 0x28e   : > { %v4137_v20 = vpop.f32.mrf.mxu1 }
 0x28f   : > { %v4097_v6 = vpop.f32.mrf.mxu0  ;;  %v4397_v12 = vpack.c.bf16 %v4136_v44, %v4136_v44 }
 0x290   : > { %v4138_v8 = vpop.f32.mrf.mxu1 }
 0x291   : > { %5733 = vmatmul.mubr.bf16.vlgmr.msra.gmra.mxu0 %v4386_v4 }
 0x292   : > { %5743 = vmatpush3.bf16.xpose.msra.mxu0 %v4393_v7  ;;  %5744 = vmatprep.mubr.msk.bf16.mxu0 %vm6886_vm0, %v6885_v63 }
 0x293   : > { %5754 = vmatprep.subr.bf16.mxu0 %v6885_v63 }
 0x299   : > { %5745 = vmatmul.mubr.bf16.vlgmr.msra.gmra.mxu0 %v4387_v9 }
 0x29a   : > { %5755 = vmatpush3.bf16.xpose.msra.mxu0 %v4394_v10  ;;  %5756 = vmatprep.mubr.msk.bf16.mxu0 %vm6886_vm0, %v6885_v63 }
 0x29b   : > { %5766 = vmatprep.subr.bf16.mxu0 %v6885_v63 }
 0x2a1   : > { %5757 = vmatmul.mubr.bf16.vlgmr.msra.gmra.mxu0 %v4388_v28 }
 0x2a2   : > { %5767 = vmatpush3.bf16.xpose.msra.mxu0 %v4395_v27  ;;  %5768 = vmatprep.mubr.msk.bf16.mxu0 %vm6886_vm0, %v6885_v63 }
 0x2a3   : > { %5778 = vmatprep.subr.bf16.mxu0 %v6885_v63 }
 0x2a9   : > { %5769 = vmatmul.mubr.bf16.vlgmr.msra.gmra.mxu0 %v4389_v45 }
 0x2aa   : > { %5779 = vmatpush3.bf16.xpose.msra.mxu0 %v4396_v11  ;;  %5780 = vmatprep.mubr.msk.bf16.mxu0 %vm6886_vm0, %v6885_v63 }
 0x2ab   : > { %5790 = vmatprep.subr.bf16.mxu0 %v6885_v63 }
 0x2b1   : > { %5781 = vmatmul.mubr.bf16.vlgmr.msra.gmra.mxu0 %v4390_v55 }
 0x2b2   : > { %5791 = vmatpush3.bf16.xpose.msra.mxu0 %v4397_v12  ;;  %5792 = vmatprep.mubr.msk.bf16.mxu0 %vm6886_vm0, %v6885_v63 }
 0x2b9   : > { %5793 = vmatmul.mubr.bf16.vlgmr.msra.gmra.mxu0 %v4391_v50 }
 0x2c9   : > { %v4174_v13 = vpop.f32.mrf.mxu0 }
 0x2ca   : > { %v4215_v14 = vpop.f32.mrf.mxu1 }
 0x2cb   : > { %v4216_v15 = vadd.f32 %v4215_v14, %v4174_v13  ;;  %v4176_v16 = vpop.f32.mrf.mxu0 }
 0x2cc   : > { %v4217_v17 = vpop.f32.mrf.mxu1 }
 0x2cd   : > { %v4398_v18 = vpack.c.bf16 %v4216_v15, %v4216_v15  ;;  %v7131_v19 = vadd.f32 %v4217_v17, %v4176_v16  ;;  %v4178_v62 = vpop.f32.mrf.mxu0 }
 0x2ce   : > { %v4219_v21 = vpop.f32.mrf.mxu1 }
 0x2cf   : > { %v4468_v22 = vsel %vm4466_vm1, %v4398_v18, 0  ;;  %v4179_v23 = vpop.f32.mrf.mxu0 }
 0x2d0   : > { %5737 = vmatpush3.bf16.msra.mxu1 %v4468_v22  ;;  %v4220_v24 = vpop.f32.mrf.mxu1 }
 0x2d1   : > { %5748 = vmatprep.subr.bf16.mxu1 %v6885_v63 }
 0x309   : > { %v4256_v5 = vpop.f32.mrf.mxu0 }
 0x30a   : > { %v4297_v25 = vpop.f32.mrf.mxu1 }
 0x30b   : > { %v7135_v26 = vadd.f32 %v4297_v25, %v4256_v5  ;;  %v4258_v29 = vpop.f32.mrf.mxu0 }
 0x30c   : > { %v4299_v30 = vpop.f32.mrf.mxu1 }
 0x30d   : > { %v7137_v31 = vadd.f32 %v4299_v30, %v4258_v29  ;;  %v4260_v32 = vpop.f32.mrf.mxu0 }
 0x30e   : > { %v4301_v34 = vpop.f32.mrf.mxu1 }
 0x30f   : > { %v4261_v35 = vpop.f32.mrf.mxu0 }
 0x310   : > { %v4302_v36 = vpop.f32.mrf.mxu1 }
 0x349   : > { %v4338_v38 = vpop.f32.mrf.mxu0 }
 0x34a   : > { %v4379_v39 = vpop.f32.mrf.mxu1 }
 0x34b   : > { %v7139_v40 = vadd.f32 %v4379_v39, %v4338_v38  ;;  %v4340_v41 = vpop.f32.mrf.mxu0 }
 0x34c   : > { %v4381_v42 = vpop.f32.mrf.mxu1 }
 0x34d   : > { %v7141_v48 = vadd.f32 %v4381_v42, %v4340_v41  ;;  %v4342_v49 = vpop.f32.mrf.mxu0 }
 0x34e   : > { %v4383_v52 = vpop.f32.mrf.mxu1 }
 0x34f   : > { %v4343_v53 = vpop.f32.mrf.mxu0 }
 0x350   : > { %v4384_v56 = vpop.f32.mrf.mxu1 }
 0x351   : > { %v4443_v57 = vpop.f32.mrf.mxu0 }
 0x352   : > { %v4449_v58 = vsel %vm7143_vm2, %v4443_v57, -inf }
 0x353   : > { %v5734_v59 = vpop.f32.mrf.mxu0  ;;  %v4451_v60 = vsel %vm4450_vm3, %v4449_v58, -inf }
 0x354   : > { %4452 = vmax.xlane.f32.xlu0 %v4451_v60 }
 0x355   : > { %v4446_v61 = vpop.f32.mrf.mxu0 }
 0x357   : > { %v5735_v0 = vpop.f32.mrf.mxu0 }
 0x359   : > { %v4545_v1 = vpop.f32.mrf.mxu0 }
 0x35a   : > { %v4551_v2 = vsel %vm7143_vm2, %v4545_v1, -inf }
 0x35b   : > { %v5746_v47 = vpop.f32.mrf.mxu0  ;;  %v4552_v51 = vsel %vm4450_vm3, %v4551_v2, -inf }
 0x35c   : > { %4553 = vmax.xlane.f32.xlu0 %v4552_v51 }
 0x35d   : > { %v4548_v3 = vpop.f32.mrf.mxu0 }
 0x35f   : > { %v5747_v20 = vpop.f32.mrf.mxu0 }
 0x360   : > { %v4399_v20 = vpack.c.bf16 %v7131_v19, %v7131_v19 }
 0x361   : > { %v4645_v4 = vpop.f32.mrf.mxu0 }
 0x362   : > { %v4651_v6 = vsel %vm7143_vm2, %v4645_v4, -inf }
 0x363   : > { %v5758_v8 = vpop.f32.mrf.mxu0  ;;  %v4652_v7 = vsel %vm4450_vm3, %v4651_v6, -inf }
 0x364   : > { %4653 = vmax.xlane.f32.xlu1 %v4652_v7  ;;  %v4568_v7 = vsel %vm4466_vm1, %v4399_v20, 0 }
 0x365   : > { %v4648_v9 = vpop.f32.mrf.mxu0 }
 0x367   : > { %v5759_v10 = vpop.f32.mrf.mxu0 }
 0x368   : > { %v4400_v10 = vpack.c.bf16 %v7135_v26, %v7135_v26 }
 0x369   : > { %v4745_v28 = vpop.f32.mrf.mxu0 }
 0x36a   : > { %v4751_v27 = vsel %vm7143_vm2, %v4745_v28, -inf }
 0x36b   : > { %v5770_v33 = vpop.f32.mrf.mxu0  ;;  %v4752_v45 = vsel %vm4450_vm3, %v4751_v27, -inf }
 0x36c   : > { %4753 = vmax.xlane.f32.xlu1 %v4752_v45  ;;  %v4668_v33 = vsel %vm4466_vm1, %v4400_v10, 0 }
 0x36d   : > { %v4748_v11 = vpop.f32.mrf.mxu0 }
 0x36e   : > { %v4401_v11 = vpack.c.bf16 %v7137_v31, %v7137_v31 }
 0x36f   : > { %v5771_v44 = vpop.f32.mrf.mxu0 }
 0x371   : > { %v4845_v55 = vpop.f32.mrf.mxu0 }
 0x372   : > { %v4851_v12 = vsel %vm7143_vm2, %v4845_v55, -inf }
 0x373   : > { %v5782_v50 = vpop.f32.mrf.mxu0  ;;  %v4852_v13 = vsel %vm4450_vm3, %v4851_v12, -inf }
 0x374   : > { %4853 = vmax.xlane.f32.xlu0 %v4852_v13  ;;  %v4402_v13 = vpack.c.bf16 %v7139_v40, %v7139_v40 }
 0x375   : > { %v4848_v14 = vpop.f32.mrf.mxu0 }
 0x377   : > { %v5783_v15 = vpop.f32.mrf.mxu0 }
 0x379   : > { %v4945_v16 = vpop.f32.mrf.mxu0 }
 0x37a   : > { %v4951_v17 = vsel %vm7143_vm2, %v4945_v16, -inf  ;;  %v4868_v16 = vsel %vm4466_vm1, %v4402_v13, 0 }
 0x37b   : > { %v5794_v18 = vpop.f32.mrf.mxu0  ;;  %v4952_v62 = vsel %vm4450_vm3, %v4951_v17, -inf }
 0x37c   : > { %4953 = vmax.xlane.f32.xlu1 %v4952_v62  ;;  %v4403_v18 = vpack.c.bf16 %v7141_v48, %v7141_v48 }
 0x37d   : > { %v4948_v21 = vpop.f32.mrf.mxu0 }
 0x37e   : > { %v4968_v21 = vsel %vm4466_vm1, %v4403_v18, 0 }
 0x37f   : > { %v5795_v22 = vpop.f32.mrf.mxu0 }
 0x3dd   : > { %v4453_v23 = vpop.xlane.xlu0 %4452 }
 0x3de   : > { %v4454_v24 = vsub.f32 %v4449_v58, %v4453_v23 }
 0x3e0   : > { %v4455_v5 = vmul.f32 1.442695, %v4454_v24 }
 0x3e2   : > { %6733 = vpow2.f32 %v4455_v5 }
 0x3e5   : > { %v4554_v25 = vpop.xlane.xlu0 %4553 }
 0x3e6   : > { %v4555_v29 = vsub.f32 %v4551_v2, %v4554_v25 }
 0x3e8   : > { %v4556_v30 = vmul.f32 1.442695, %v4555_v29 }
 0x3ea   : > { %6735 = vpow2.f32 %v4556_v30 }
 0x3ed   : > { %v4654_v32 = vpop.xlane.xlu1 %4653 }
 0x3ee   : > { %v4655_v34 = vsub.f32 %v4651_v6, %v4654_v32 }
 0x3ef   : > { %v6734_v35 = vpop.eup %6733 }
 0x3f0   : > { %v4656_v36 = vmul.f32 1.442695, %v4655_v34  ;;  %v4457_v37 = vsel %vm4450_vm3, %v6734_v35, 0.0 }
 0x3f1   : > { %4458 = vadd.xlane.f32.xlu0 %v4457_v37 }
 0x3f2   : > { %6737 = vpow2.f32 %v4656_v36 }
 0x3f5   : > { %v4754_v38 = vpop.xlane.xlu1 %4753 }
 0x3f6   : > { %v4755_v39 = vsub.f32 %v4751_v27, %v4754_v38 }
 0x3f7   : > { %v6736_v41 = vpop.eup %6735 }
 0x3f8   : > { %v4756_v42 = vmul.f32 1.442695, %v4755_v39  ;;  %v4558_v43 = vsel %vm4450_vm3, %v6736_v41, 0.0 }
 0x3f9   : > { %4559 = vadd.xlane.f32.xlu1 %v4558_v43 }
 0x3fa   : > { %6739 = vpow2.f32 %v4756_v42 }
 0x3fd   : > { %v4854_v46 = vpop.xlane.xlu0 %4853 }
 0x3fe   : > { %v4855_v49 = vsub.f32 %v4851_v12, %v4854_v46  ;;  %v4768_v12 = vsel %vm4466_vm1, %v4401_v11, 0 }
 0x3ff   : > { %v6738_v52 = vpop.eup %6737 }
 0x400   : > { %v4856_v53 = vmul.f32 1.442695, %v4855_v49  ;;  %v4658_v54 = vsel %vm4450_vm3, %v6738_v52, 0.0 }
 0x401   : > { %4659 = vadd.xlane.f32.xlu0 %v4658_v54 }
 0x402   : > { %6741 = vpow2.f32 %v4856_v53 }
 0x405   : > { %v4954_v56 = vpop.xlane.xlu1 %4953 }
 0x406   : > { %v4955_v57 = vsub.f32 %v4951_v17, %v4954_v56 }
 0x407   : > { %v6740_v58 = vpop.eup %6739 }
 0x408   : > { %v4956_v59 = vmul.f32 1.442695, %v4955_v57  ;;  %v4758_v60 = vsel %vm4450_vm3, %v6740_v58, 0.0 }
 0x409   : > { %4759 = vadd.xlane.f32.xlu1 %v4758_v60 }
 0x40a   : > { %6743 = vpow2.f32 %v4956_v59 }
 0x40f   : > { %v6742_v61 = vpop.eup %6741 }
 0x410   : > { %v4858_v0 = vsel %vm4450_vm3, %v6742_v61, 0.0 }
 0x411   : > { %4859 = vadd.xlane.f32.xlu0 %v4858_v0 }
 0x417   : > { %v6744_v1 = vpop.eup %6743 }
 0x418   : > { %v4958_v2 = vsel %vm4450_vm3, %v6744_v1, 0.0 }
 0x419   : > { %4959 = vadd.xlane.f32.xlu1 %v4958_v2 }
 0x47a   : > { %v4459_v47 = vpop.xlane.xlu0 %4458 }
 0x47b   : > { %6745 = vrcp.f32 %v4459_v47 }
 0x482   : > { %v4560_v51 = vpop.xlane.xlu1 %4559 }
 0x483   : > { %6747 = vrcp.f32 %v4560_v51 }
 0x488   : > { %v6746_v3 = vpop.eup %6745 }
 0x489   : > { %v4461_v4 = vmul.f32 %v6746_v3, %v6734_v35 }
 0x48a   : > { %v4660_v6 = vpop.xlane.xlu0 %4659 }
 0x48b   : > { %6749 = vrcp.f32 %v4660_v6  ;;  %v4462_v8 = vpack.c.bf16 %v4461_v4, %v4461_v4 }
 0x48d   : > { %5739 = vmatmul.mubr.msk.bf16.vlgmr.msra.gmra.mxu1 %vm4450_vm3, %v4462_v8 }
 0x48e   : > { %5749 = vmatpush3.bf16.msra.mxu1 %v4568_v7  ;;  %5750 = vmatprep.mubr.msk.bf16.mxu1 %vm6886_vm0, %v6885_v63 }
 0x48f   : > { %5760 = vmatprep.subr.bf16.mxu1 %v6885_v63 }
 0x490   : > { %v6748_v9 = vpop.eup %6747 }
 0x491   : > { %v4562_v28 = vmul.f32 %v6748_v9, %v6736_v41 }
 0x492   : > { %v4760_v19 = vpop.xlane.xlu1 %4759 }
 0x493   : > { %6751 = vrcp.f32 %v4760_v19  ;;  %v4563_v27 = vpack.c.bf16 %v4562_v28, %v4562_v28 }
 0x495   : > { %5751 = vmatmul.mubr.msk.bf16.vlgmr.msra.gmra.mxu1 %vm4450_vm3, %v4563_v27 }
 0x496   : > { %5761 = vmatpush3.bf16.msra.mxu1 %v4668_v33  ;;  %5762 = vmatprep.mubr.msk.bf16.mxu1 %vm6886_vm0, %v6885_v63 }
 0x497   : > { %5772 = vmatprep.subr.bf16.mxu1 %v6885_v63 }
 0x498   : > { %v6750_v45 = vpop.eup %6749 }
 0x499   : > { %v4662_v44 = vmul.f32 %v6750_v45, %v6738_v52 }
 0x49a   : > { %v4860_v26 = vpop.xlane.xlu0 %4859 }
 0x49b   : > { %6753 = vrcp.f32 %v4860_v26  ;;  %v4663_v55 = vpack.c.bf16 %v4662_v44, %v4662_v44 }
 0x49d   : > { %5763 = vmatmul.mubr.msk.bf16.vlgmr.msra.gmra.mxu1 %vm4450_vm3, %v4663_v55 }
 0x49e   : > { %5773 = vmatpush3.bf16.msra.mxu1 %v4768_v12  ;;  %5774 = vmatprep.mubr.msk.bf16.mxu1 %vm6886_vm0, %v6885_v63 }
 0x49f   : > { %5784 = vmatprep.subr.bf16.mxu1 %v6885_v63 }
 0x4a0   : > { %v6752_v50 = vpop.eup %6751 }
 0x4a1   : > { %v4762_v14 = vmul.f32 %v6752_v50, %v6740_v58 }
 0x4a2   : > { %v4960_v31 = vpop.xlane.xlu1 %4959 }
 0x4a3   : > { %6755 = vrcp.f32 %v4960_v31  ;;  %v4763_v15 = vpack.c.bf16 %v4762_v14, %v4762_v14 }
 0x4a5   : > { %5775 = vmatmul.mubr.msk.bf16.vlgmr.msra.gmra.mxu1 %vm4450_vm3, %v4763_v15 }
 0x4a6   : > { %5785 = vmatpush3.bf16.msra.mxu1 %v4868_v16  ;;  %5786 = vmatprep.mubr.msk.bf16.mxu1 %vm6886_vm0, %v6885_v63 }
 0x4a7   : > { %5796 = vmatprep.subr.bf16.mxu1 %v6885_v63 }
 0x4a8   : > { %v6754_v17 = vpop.eup %6753 }
 0x4a9   : > { %v4862_v40 = vmul.f32 %v6754_v17, %v6742_v61 }
 0x4ab   : > { %v4863_v62 = vpack.c.bf16 %v4862_v40, %v4862_v40 }
 0x4ad   : > { %5787 = vmatmul.mubr.msk.bf16.vlgmr.msra.gmra.mxu1 %vm4450_vm3, %v4863_v62 }
 0x4ae   : > { %5797 = vmatpush3.bf16.msra.mxu1 %v4968_v21  ;;  %5798 = vmatprep.mubr.msk.bf16.mxu1 %vm6886_vm0, %v6885_v63 }
 0x4b0   : > { %v6756_v22 = vpop.eup %6755 }
 0x4b1   : > { %v4962_v23 = vmul.f32 %v6756_v22, %v6744_v1 }
 0x4b3   : > { %v4963_v24 = vpack.c.bf16 %v4962_v23, %v4962_v23 }
 0x4b5   : > { %5799 = vmatmul.mubr.msk.bf16.vlgmr.msra.gmra.mxu1 %vm4450_vm3, %v4963_v24 }
 0x54d   : > { %v4504_v5 = vpop.f32.mrf.mxu1 }
 0x54e   : > { %4510 = vst [vmem:[%s174_s17] sm:$0xff] %v4504_v5 }
 0x54f   : > { %v5740_v48 = vpop.f32.mrf.mxu1 }
 0x551   : > { %v4507_v25 = vpop.f32.mrf.mxu1 }
 0x553   : > { %v5741_v29 = vpop.f32.mrf.mxu1 }
 0x555   : > { %v4604_v30 = vpop.f32.mrf.mxu1 }
 0x556   : > { %4610 = vst [vmem:[%s174_s17 + $0x8] sm:$0xff] %v4604_v30 }
 0x557   : > { %v5752_v32 = vpop.f32.mrf.mxu1 }
 0x559   : > { %v4607_v34 = vpop.f32.mrf.mxu1 }
 0x55b   : > { %v5753_v35 = vpop.f32.mrf.mxu1 }
 0x55d   : > { %v4704_v36 = vpop.f32.mrf.mxu1 }
 0x55e   : > { %4710 = vst [vmem:[%s174_s17 + $0x10] sm:$0xff] %v4704_v36 }
 0x55f   : > { %v5764_v63 = vpop.f32.mrf.mxu1 }
 0x561   : > { %v4707_v37 = vpop.f32.mrf.mxu1 }
 0x563   : > { %v5765_v38 = vpop.f32.mrf.mxu1 }
 0x565   : > { %v4804_v39 = vpop.f32.mrf.mxu1 }
 0x566   : > { %4810 = vst [vmem:[%s174_s17 + $0x18] sm:$0xff] %v4804_v39 }
 0x567   : > { %v5776_v41 = vpop.f32.mrf.mxu1 }
 0x569   : > { %v4807_v42 = vpop.f32.mrf.mxu1 }
 0x56b   : > { %v5777_v43 = vpop.f32.mrf.mxu1 }
 0x56d   : > { %v4904_v46 = vpop.f32.mrf.mxu1 }
 0x56e   : > { %4910 = vst [vmem:[%s174_s17 + $0x20] sm:$0xff] %v4904_v46 }
 0x56f   : > { %v5788_v49 = vpop.f32.mrf.mxu1 }
 0x571   : > { %v4907_v52 = vpop.f32.mrf.mxu1 }
 0x573   : > { %v5789_v53 = vpop.f32.mrf.mxu1 }
 0x575   : > { %v5004_v54 = vpop.f32.mrf.mxu1 }
 0x576   : > { %5010 = vst [vmem:[%s174_s17 + $0x28] sm:$0xff] %v5004_v54 }
 0x577   : > { %v5800_v56 = vpop.f32.mrf.mxu1 }
 0x578   : > { %6824 = shalt.err (!%p6821_p0)
}
 0x579   : > { %s6825_s28 = scalar_lea.hbm %s7211_s23, 768  ;;  %s6829_s5 = scalar_lea.hbm %s7256_s2, 1536 }
 0x57a   : > { %p6826_p5 = scmp.ne.s32.totalorder %s7211_s23, %s6825_s28  ;;  %p6830_p1 = scmp.lt.s32.totalorder %s7211_s23, %s7256_s2 }
 0x57b   : > { %p6831_p4 = scmp.lt.s32.totalorder %s6829_s5, %s6825_s28 }
 0x57c   : > { %p6827_p9 = pnand %p6826_p5, %p7274_p3 }
 0x57d   : > { %p6832_p6 = por %p6831_p4, %p6830_p1 }
 0x57e   : > { %p6828_p12 = pneg %p6827_p9 }
 0x580   : > { %p6833_p8 = pnand %p6832_p6, %p6828_p12 }
 0x582   : > { %6836 = shalt.err (!%p6833_p8)
}
 0x583   : > { %5810 = dma.vmem_to_hbm [thread:$0]  (%p7274_p3), %s7213_s18, 768, %s7211_s23, %s5012_s24   ;;  %v5007_v57 = vpop.f32.mrf.mxu1 }
 0x585   : > { %v5801_v58 = vpop.f32.mrf.mxu1 }
 0x586 PF: > { %s5038_s14 = sand.u32 1, %s6867_s9   ;;  %p7275_p11 = scmp.ne.s32.totalorder %s7262_s16, 0 }
 0x587   : > { %p7276_p7 = scmp.ge.s32.totalorder %s6879_s12, 2  ;;  %s5039_s22 = scalar_lea.sflag [#allocation4], %s5038_s14 }
 0x589   : > { %p5821_p10 = pnand %p7276_p7, %p7275_p11 }
 0x58b   : > { %p5822_p2 = pneg %p5821_p10 }
 0x58d   : > { %6862 = dma.done.wait (%p5822_p2), %s5039_s22, 768  }
 0x58e   : > { %6864 = vsyncadd (%p5822_p2), %s5039_s22, 4294966528  ;;  %p16_p3 = scmp.ge.s32.totalorder %s6957_s21, 4   ;;  %s7277_s9 = smov %s6871_s10 }
 0x58f   : > { %s7278_s10 = smov %s6875_s11  ;;  %s7279_s11 = smov %s6974_s29 }
 0x590   : > { %s7280_s12 = smov %s6957_s21  ;;  %18 = sbr.rel (!%p16_p3) target bundleno = 6 (0x6), region = 77 }
 0x595   :  { %5044 = vsyncpa [#allocation3], 1 }
 0x596   :  { %5046 = vsyncpa [#allocation3 + $0x1], 1 }
 0x597   :  { %5047 = vsyncpa [#allocation6], 1 }
 0x598   :  { %5048 = vsyncpa [#allocation4], 1 }
 0x599   :  { %5050 = vsyncpa [#allocation4 + $0x1], 1 }

</bundles_post_ra>
